<compile_context>
chip_gen: v5e
topology: v5e:2x2
jax: 0.10.0
libtpu: 0.0.40
codegen_flags: <defaults>
</compile_context>

<pallas_src>
import functools

import jax
import jax.numpy as jnp
from jax.experimental import pallas as pl
from jax.experimental.pallas import tpu as pltpu

_EPS = 1e-5


# ---------------------------------------------------------------------------
# Pass 1: per-branch conv1-output statistics + global-branch pooling sums.
# ---------------------------------------------------------------------------
def _stats1_kernel(x_ref, y_ref, z_ref, w1t_ref, b1_ref,
                   sum1_ref, sumsq1_ref, pooled_ref):
    b = pl.program_id(0)
    t = pl.program_id(1)

    @pl.when((b == 0) & (t == 0))
    def _():
        sum1_ref[...] = jnp.zeros_like(sum1_ref)
        sumsq1_ref[...] = jnp.zeros_like(sumsq1_ref)

    @pl.when(t == 0)
    def _():
        pooled_ref[...] = jnp.zeros_like(pooled_ref)

    x = x_ref[...]
    y = y_ref[...]
    z = z_ref[...]
    s = x + y + z
    w1t = w1t_ref[...]
    b1 = b1_ref[...]

    minus = (z, y, x)   # xa1 = x+y = s-z, xa2 = z+x = s-y, xa3 = y+z = s-x
    for k in range(3):
        xa = s - minus[k]
        pooled_ref[:, k:k + 1] += jnp.sum(xa, axis=1, keepdims=True)
        h1 = jnp.dot(w1t, xa, preferred_element_type=jnp.float32) + b1
        sum1_ref[:, k:k + 1] += jnp.sum(h1, axis=1, keepdims=True)
        sumsq1_ref[:, k:k + 1] += jnp.sum(h1 * h1, axis=1, keepdims=True)


# ---------------------------------------------------------------------------
# Pass 2: per-branch conv2-output statistics (BN1 folded into scale/bias).
# ---------------------------------------------------------------------------
def _stats2_kernel(x_ref, y_ref, z_ref, w1t_ref, scale1_ref, bias1_ref,
                   w2t_ref, b2_ref, sum2_ref, sumsq2_ref):
    b = pl.program_id(0)
    t = pl.program_id(1)

    @pl.when((b == 0) & (t == 0))
    def _():
        sum2_ref[...] = jnp.zeros_like(sum2_ref)
        sumsq2_ref[...] = jnp.zeros_like(sumsq2_ref)

    x = x_ref[...]
    y = y_ref[...]
    z = z_ref[...]
    s = x + y + z
    w1t = w1t_ref[...]
    w2t = w2t_ref[...]
    b2 = b2_ref[...]

    minus = (z, y, x)
    for k in range(3):
        xa = s - minus[k]
        a1 = jnp.dot(w1t, xa, preferred_element_type=jnp.float32)
        a1 = jnp.maximum(a1 * scale1_ref[:, k:k + 1] + bias1_ref[:, k:k + 1], 0.0)
        h2 = jnp.dot(w2t, a1, preferred_element_type=jnp.float32) + b2
        sum2_ref[:, k:k + 1] += jnp.sum(h2, axis=1, keepdims=True)
        sumsq2_ref[:, k:k + 1] += jnp.sum(h2 * h2, axis=1, keepdims=True)


# ---------------------------------------------------------------------------
# Pass 3: apply folded BNs, add global attention, sigmoid, blend.
# ---------------------------------------------------------------------------
def _final_kernel(x_ref, y_ref, z_ref, w1t_ref, scale1_ref, bias1_ref,
                  w2t_ref, scale2_ref, bias2_ref, g_ref, o_ref):
    x = x_ref[...]
    y = y_ref[...]
    z = z_ref[...]
    s = x + y + z
    w1t = w1t_ref[...]
    w2t = w2t_ref[...]

    # xo = x*(w1+1-w2) + y*(1-w1+w3) + z*(1-w3+w2)
    #    = (x+y+z) + w1*(x-y) + w2*(z-x) + w3*(y-z)
    acc = s
    minus = (z, y, x)
    diff_a = (x, z, y)
    diff_b = (y, x, z)
    for k in range(3):
        xa = s - minus[k]
        a1 = jnp.dot(w1t, xa, preferred_element_type=jnp.float32)
        a1 = jnp.maximum(a1 * scale1_ref[:, k:k + 1] + bias1_ref[:, k:k + 1], 0.0)
        l = jnp.dot(w2t, a1, preferred_element_type=jnp.float32)
        l = l * scale2_ref[:, k:k + 1] + bias2_ref[:, k:k + 1] + g_ref[:, k:k + 1]
        acc = acc + jax.nn.sigmoid(l) * (diff_a[k] - diff_b[k])
    o_ref[...] = acc


# ---------------------------------------------------------------------------
# Wrapper
# ---------------------------------------------------------------------------
def _pick_tile_p(P, C, tile_p):
    if tile_p is not None:
        assert P % tile_p == 0, "tile_p must divide H*W"
        return tile_p
    if P % 128 != 0:
        return P                        # full spatial row as one lane block
    budget = 8 * 1024 * 1024            # stay well inside default scoped VMEM
    cap = max(128, budget // (14 * C * 4))
    t = 128
    while t * 2 <= min(cap, P) and P % (t * 2) == 0:
        t *= 2
    return t


def _bn_rows(h, gamma, beta):
    """Training-mode BatchNorm over the leading (row) axis of a 2D array."""
    mu = jnp.mean(h, axis=0, keepdims=True)
    var = jnp.maximum(jnp.mean(h * h, axis=0, keepdims=True) - mu * mu, 0.0)
    return (h - mu) * jax.lax.rsqrt(var + _EPS) * gamma + beta


@functools.partial(jax.jit, static_argnames=("tile_p",))
def aff_forward(x, y, z, params, tile_p=None):
    B, C, H, W = x.shape
    P = H * W
    inter = params["lw1"].shape[0]
    TILE_P = _pick_tile_p(P, C, tile_p)
    T = P // TILE_P
    f32 = jnp.float32

    # NCHW -> (B, C, H*W): a pure reshape, channels on sublanes, pixels on lanes.
    x3 = x.reshape(B, C, P).astype(f32)
    y3 = y.reshape(B, C, P).astype(f32)
    z3 = z.reshape(B, C, P).astype(f32)

    w1t = params["lw1"].astype(f32)                       # (inter, C)  (out, in)
    b1 = params["lb1"].reshape(inter, 1).astype(f32)
    w2t = params["lw2"].astype(f32)                       # (C, inter)
    b2 = params["lb2"].reshape(C, 1).astype(f32)

    big_spec = pl.BlockSpec((None, C, TILE_P), lambda b, t: (b, 0, t))
    per_b_spec = pl.BlockSpec((None, C, 3), lambda b, t: (b, 0, 0))

    def const_spec(shape):
        return pl.BlockSpec(shape, lambda b, t: (0,) * len(shape))

    seq = pltpu.CompilerParams(dimension_semantics=("arbitrary", "arbitrary"))
    par = pltpu.CompilerParams(dimension_semantics=("parallel", "parallel"))

    # ---- pass 1: conv1 stats + global pooling sums ---------------------------
    sum1, sumsq1, pooled = pl.pallas_call(
        _stats1_kernel,
        grid=(B, T),
        in_specs=[big_spec, big_spec, big_spec,
                  const_spec((inter, C)), const_spec((inter, 1))],
        out_specs=[const_spec((inter, 3)), const_spec((inter, 3)), per_b_spec],
        out_shape=[jax.ShapeDtypeStruct((inter, 3), f32),
                   jax.ShapeDtypeStruct((inter, 3), f32),
                   jax.ShapeDtypeStruct((B, C, 3), f32)],
        compiler_params=seq,
    )(x3, y3, z3, w1t, b1)

    n = jnp.asarray(B * P, f32)
    mean1 = sum1 / n
    var1 = jnp.maximum(sumsq1 / n - mean1 * mean1, 0.0)
    g1 = params["lg1"].reshape(inter, 1).astype(f32)
    be1 = params["lbe1"].reshape(inter, 1).astype(f32)
    scale1 = g1 * jax.lax.rsqrt(var1 + _EPS)              # (inter, 3) per branch
    bias1 = scale1 * b1 + (be1 - mean1 * scale1)          # conv bias folded in

    # ---- pass 2: conv2 stats (needs BN1 folded) ------------------------------
    sum2, sumsq2 = pl.pallas_call(
        _stats2_kernel,
        grid=(B, T),
        in_specs=[big_spec, big_spec, big_spec,
                  const_spec((inter, C)), const_spec((inter, 3)),
                  const_spec((inter, 3)), const_spec((C, inter)),
                  const_spec((C, 1))],
        out_specs=[const_spec((C, 3)), const_spec((C, 3))],
        out_shape=[jax.ShapeDtypeStruct((C, 3), f32),
                   jax.ShapeDtypeStruct((C, 3), f32)],
        compiler_params=seq,
    )(x3, y3, z3, w1t, scale1, bias1, w2t, b2)

    mean2 = sum2 / n
    var2 = jnp.maximum(sumsq2 / n - mean2 * mean2, 0.0)
    g2 = params["lg2"].reshape(C, 1).astype(f32)
    be2 = params["lbe2"].reshape(C, 1).astype(f32)
    scale2 = g2 * jax.lax.rsqrt(var2 + _EPS)              # (C, 3)
    bias2 = scale2 * b2 + (be2 - mean2 * scale2)

    # ---- global-attention branch: tiny (B, C) MLP finalized in plain JAX -----
    pooled_mean = pooled / jnp.asarray(P, f32)            # (B, C, 3) = avgpool(xa_k)
    g_branches = []
    for k in range(3):
        u = pooled_mean[:, :, k]                          # (B, C)
        h = u @ params["gw1"].astype(f32).T + params["gb1"].astype(f32)[None, :]
        h = _bn_rows(h, params["gg1"].astype(f32)[None, :],
                     params["gbe1"].astype(f32)[None, :])
        h = jnp.maximum(h, 0.0)
        h = h @ params["gw2"].astype(f32).T + params["gb2"].astype(f32)[None, :]
        h = _bn_rows(h, params["gg2"].astype(f32)[None, :],
                     params["gbe2"].astype(f32)[None, :])
        g_branches.append(h)
    g = jnp.stack(g_branches, axis=-1)                    # (B, C, 3)

    # ---- pass 3: apply, sigmoid, blend ---------------------------------------
    out3 = pl.pallas_call(
        _final_kernel,
        grid=(B, T),
        in_specs=[big_spec, big_spec, big_spec,
                  const_spec((inter, C)), const_spec((inter, 3)),
                  const_spec((inter, 3)), const_spec((C, inter)),
                  const_spec((C, 3)), const_spec((C, 3)), per_b_spec],
        out_specs=big_spec,
        out_shape=jax.ShapeDtypeStruct((B, C, P), f32),
        compiler_params=par,
    )(x3, y3, z3, w1t, scale1, bias1, w2t, scale2, bias2, g)

    return out3.reshape(B, C, H, W)


# ---------------------------------------------------------------------------
# Synthetic parameters + pure-JAX reference (for correctness checking)
# ---------------------------------------------------------------------------
def init_aff_params(key, channels, r):
    """Conv weights stored (out_channels, in_channels); BN gamma=1, beta=0."""
    inter = int(channels // r)
    ks = jax.random.split(key, 8)
    w = lambda k, o, i: jax.random.normal(k, (o, i), jnp.float32) * 0.1
    v = lambda k, n: jax.random.normal(k, (n,), jnp.float32) * 0.1
    return dict(
        lw1=w(ks[0], inter, channels), lb1=v(ks[1], inter),
        lg1=jnp.ones((inter,), jnp.float32), lbe1=jnp.zeros((inter,), jnp.float32),
        lw2=w(ks[2], channels, inter), lb2=v(ks[3], channels),
        lg2=jnp.ones((channels,), jnp.float32), lbe2=jnp.zeros((channels,), jnp.float32),
        gw1=w(ks[4], inter, channels), gb1=v(ks[5], inter),
        gg1=jnp.ones((inter,), jnp.float32), gbe1=jnp.zeros((inter,), jnp.float32),
        gw2=w(ks[6], channels, inter), gb2=v(ks[7], channels),
        gg2=jnp.ones((channels,), jnp.float32), gbe2=jnp.zeros((channels,), jnp.float32),
    )


def _bn_nchw_ref(h, gamma, beta):
    mu = jnp.mean(h, axis=(0, 2, 3), keepdims=True)
    var = jnp.mean((h - mu) ** 2, axis=(0, 2, 3), keepdims=True)
    return ((h - mu) * jax.lax.rsqrt(var + _EPS) * gamma[None, :, None, None]
            + beta[None, :, None, None])


def aff_reference(x, y, z, p):
    """Pure-JAX mirror of the PyTorch module (training-mode BatchNorm)."""
    def conv1x1(a, w, b):
        return jnp.einsum("oi,bihw->bohw", w, a) + b[None, :, None, None]

    def local_att(a):
        h = conv1x1(a, p["lw1"], p["lb1"])
        h = jnp.maximum(_bn_nchw_ref(h, p["lg1"], p["lbe1"]), 0.0)
        h = conv1x1(h, p["lw2"], p["lb2"])
        return _bn_nchw_ref(h, p["lg2"], p["lbe2"])

    def global_att(a):
        u = jnp.mean(a, axis=(2, 3), keepdims=True)
        h = conv1x1(u, p["gw1"], p["gb1"])
        h = jnp.maximum(_bn_nchw_ref(h, p["gg1"], p["gbe1"]), 0.0)
        h = conv1x1(h, p["gw2"], p["gb2"])
        return _bn_nchw_ref(h, p["gg2"], p["gbe2"])

    xa1, xa2, xa3 = x + y, z + x, y + z
    w1 = jax.nn.sigmoid(local_att(xa1) + global_att(xa1))
    w2 = jax.nn.sigmoid(local_att(xa2) + global_att(xa2))
    w3 = jax.nn.sigmoid(local_att(xa3) + global_att(xa3))
    return x * (w1 + 1 - w2) + y * (1 - w1 + w3) + z * (1 - w3 + w2)


if __name__ == "__main__":
    key = jax.random.PRNGKey(0)
    kx, ky, kz, kp = jax.random.split(key, 4)

    B, C, H, W, r = 2, 16, 32, 32, 4          # P = 1024 -> two lane tiles of 512
    x = jax.random.normal(kx, (B, C, H, W), jnp.float32)
    y = jax.random.normal(ky, (B, C, H, W), jnp.float32)
    z = jax.random.normal(kz, (B, C, H, W), jnp.float32)
    params = init_aff_params(kp, C, r)

    out = aff_forward(x, y, z, params, tile_p=512)
    jax.block_until_ready(out)
    assert out.shape == (B, C, H, W) and out.dtype == jnp.float32

    ref = aff_reference(x, y, z, params)
    max_err = float(jnp.max(jnp.abs(out - ref)))
    assert max_err < 5e-2, f"mismatch vs reference: max |err| = {max_err}"

    print("KERNEL_OK")
</pallas_src>

<mosaic_0001>
module attributes {stable_mosaic.version = 11 : i64} {
  func.func @_stats1_kernel(%arg0: i32, %arg1: i32, %arg2: memref<1x16x512xf32, #tpu.memory_space<vmem>>, %arg3: memref<1x16x512xf32, #tpu.memory_space<vmem>>, %arg4: memref<1x16x512xf32, #tpu.memory_space<vmem>>, %arg5: memref<4x16xf32, #tpu.memory_space<vmem>>, %arg6: memref<4x1xf32, #tpu.memory_space<vmem>>, %arg7: memref<4x3xf32, #tpu.memory_space<vmem>>, %arg8: memref<4x3xf32, #tpu.memory_space<vmem>>, %arg9: memref<1x16x3xf32, #tpu.memory_space<vmem>>) attributes {dimension_semantics = [#tpu.dimension_semantics<arbitrary>, #tpu.dimension_semantics<arbitrary>], iteration_bounds = array<i64: 2, 2>, scalar_prefetch = 0 : i64, scratch_operands = 0 : i64, tpu.core_type = #tpu.core_type<tc>, window_params = [{transform_indices = @transform_0, window_bounds = array<i64: 1, 16, 512>}, {transform_indices = @transform_1, window_bounds = array<i64: 1, 16, 512>}, {transform_indices = @transform_2, window_bounds = array<i64: 1, 16, 512>}, {pipeline_mode = #tpu.pipeline_mode<synchronous>, transform_indices = @transform_3, window_bounds = array<i64: 4, 16>}, {pipeline_mode = #tpu.pipeline_mode<synchronous>, transform_indices = @transform_4, window_bounds = array<i64: 4, 1>}, {pipeline_mode = #tpu.pipeline_mode<synchronous>, transform_indices = @transform_5, window_bounds = array<i64: 4, 3>}, {pipeline_mode = #tpu.pipeline_mode<synchronous>, transform_indices = @transform_6, window_bounds = array<i64: 4, 3>}, {transform_indices = @transform_7, window_bounds = array<i64: 1, 16, 3>}]} {
    %c0_i32 = arith.constant 0 : i32
    %0 = arith.cmpi eq, %arg0, %c0_i32 : i32
    %c0_i32_0 = arith.constant 0 : i32
    %1 = arith.cmpi eq, %arg1, %c0_i32_0 : i32
    %2 = arith.andi %0, %1 : i1
    %3 = arith.extui %2 : i1 to i32
    %c0_i32_1 = arith.constant 0 : i32
    %4 = arith.cmpi ne, %3, %c0_i32_1 : i32
    scf.if %4 {
      %cst_67 = arith.constant 0.000000e+00 : f32
      %87 = vector.broadcast %cst_67 : f32 to vector<4x3xf32>
      %c0_68 = arith.constant 0 : index
      %c0_69 = arith.constant 0 : index
      %88 = vector.load %arg7[%c0_68, %c0_69] : memref<4x3xf32, #tpu.memory_space<vmem>>, vector<4x3xf32>
      tpu.vector_store %arg7[%c0_68, %c0_69], %87 {strides = array<i32>} : memref<4x3xf32, #tpu.memory_space<vmem>>, vector<4x3xf32>,
      %cst_70 = arith.constant 0.000000e+00 : f32
      %89 = vector.broadcast %cst_70 : f32 to vector<4x3xf32>
      %c0_71 = arith.constant 0 : index
      %c0_72 = arith.constant 0 : index
      %90 = vector.load %arg8[%c0_71, %c0_72] : memref<4x3xf32, #tpu.memory_space<vmem>>, vector<4x3xf32>
      tpu.vector_store %arg8[%c0_71, %c0_72], %89 {strides = array<i32>} : memref<4x3xf32, #tpu.memory_space<vmem>>, vector<4x3xf32>,
    } else {
    }
    %c0_i32_2 = arith.constant 0 : i32
    %5 = arith.cmpi eq, %arg1, %c0_i32_2 : i32
    %6 = arith.extui %5 : i1 to i32
    %c0_i32_3 = arith.constant 0 : i32
    %7 = arith.cmpi ne, %6, %c0_i32_3 : i32
    scf.if %7 {
      %cst_67 = arith.constant 0.000000e+00 : f32
      %87 = vector.broadcast %cst_67 : f32 to vector<16x3xf32>
      %c0_68 = arith.constant 0 : index
      %c0_69 = arith.constant 0 : index
      %c0_70 = arith.constant 0 : index
      %88 = vector.load %arg9[%c0_68, %c0_69, %c0_70] : memref<1x16x3xf32, #tpu.memory_space<vmem>>, vector<1x16x3xf32>
      %89 = vector.shape_cast %88 : vector<1x16x3xf32> to vector<16x3xf32>
      %90 = vector.shape_cast %87 : vector<16x3xf32> to vector<1x16x3xf32>
      tpu.vector_store %arg9[%c0_68, %c0_69, %c0_70], %90 {strides = array<i32>} : memref<1x16x3xf32, #tpu.memory_space<vmem>>, vector<1x16x3xf32>,
    } else {
    }
    %c0 = arith.constant 0 : index
    %c0_4 = arith.constant 0 : index
    %c0_5 = arith.constant 0 : index
    %8 = vector.load %arg2[%c0, %c0_4, %c0_5] : memref<1x16x512xf32, #tpu.memory_space<vmem>>, vector<1x16x512xf32>
    %9 = vector.shape_cast %8 : vector<1x16x512xf32> to vector<16x512xf32>
    %c0_6 = arith.constant 0 : index
    %c0_7 = arith.constant 0 : index
    %c0_8 = arith.constant 0 : index
    %10 = vector.load %arg3[%c0_6, %c0_7, %c0_8] : memref<1x16x512xf32, #tpu.memory_space<vmem>>, vector<1x16x512xf32>
    %11 = vector.shape_cast %10 : vector<1x16x512xf32> to vector<16x512xf32>
    %c0_9 = arith.constant 0 : index
    %c0_10 = arith.constant 0 : index
    %c0_11 = arith.constant 0 : index
    %12 = vector.load %arg4[%c0_9, %c0_10, %c0_11] : memref<1x16x512xf32, #tpu.memory_space<vmem>>, vector<1x16x512xf32>
    %13 = vector.shape_cast %12 : vector<1x16x512xf32> to vector<16x512xf32>
    %14 = arith.addf %9, %11 : vector<16x512xf32>
    %15 = arith.addf %14, %13 : vector<16x512xf32>
    %c0_12 = arith.constant 0 : index
    %c0_13 = arith.constant 0 : index
    %16 = vector.load %arg5[%c0_12, %c0_13] : memref<4x16xf32, #tpu.memory_space<vmem>>, vector<4x16xf32>
    %c0_14 = arith.constant 0 : index
    %c0_15 = arith.constant 0 : index
    %17 = vector.load %arg6[%c0_14, %c0_15] : memref<4x1xf32, #tpu.memory_space<vmem>>, vector<4x1xf32>
    %18 = arith.subf %15, %13 : vector<16x512xf32>
    %c0_16 = arith.constant 0 : index
    %c0_17 = arith.constant 0 : index
    %c0_18 = arith.constant 0 : index
    %19 = vector.load %arg9[%c0_16, %c0_17, %c0_18] : memref<1x16x3xf32, #tpu.memory_space<vmem>>, vector<1x16x1xf32>
    %20 = vector.shape_cast %19 : vector<1x16x1xf32> to vector<16x1xf32>
    %cst = arith.constant dense<0.000000e+00> : vector<16xf32>
    %21 = vector.multi_reduction <add>, %18, %cst [1] : vector<16x512xf32> to vector<16xf32>
    %22 = vector.shape_cast %21 : vector<16xf32> to vector<16x1xf32>
    %23 = arith.addf %20, %22 : vector<16x1xf32>
    %c0_19 = arith.constant 0 : index
    %c0_20 = arith.constant 0 : index
    %c0_21 = arith.constant 0 : index
    %24 = vector.load %arg9[%c0_19, %c0_20, %c0_21] : memref<1x16x3xf32, #tpu.memory_space<vmem>>, vector<1x16x1xf32>
    %25 = vector.shape_cast %24 : vector<1x16x1xf32> to vector<16x1xf32>
    %26 = vector.shape_cast %23 : vector<16x1xf32> to vector<1x16x1xf32>
    tpu.vector_store %arg9[%c0_19, %c0_20, %c0_21], %26 {strides = array<i32>} : memref<1x16x3xf32, #tpu.memory_space<vmem>>, vector<1x16x1xf32>,
    %cst_22 = arith.constant dense<0.000000e+00> : vector<4x512xf32>
    %27 = tpu.matmul %16, %18, %cst_22 {dimension_numbers = #tpu.dot_dimension_numbers<[1], [0], [0], [1], [0, 0, 1, 1], [], []>} : vector<4x16xf32>, vector<16x512xf32>, vector<4x512xf32> -> vector<4x512xf32>
    %28 = vector.broadcast %17 : vector<4x1xf32> to vector<4x512xf32>
    %29 = arith.addf %27, %28 : vector<4x512xf32>
    %c0_23 = arith.constant 0 : index
    %c0_24 = arith.constant 0 : index
    %30 = vector.load %arg7[%c0_23, %c0_24] : memref<4x3xf32, #tpu.memory_space<vmem>>, vector<4x1xf32>
    %cst_25 = arith.constant dense<0.000000e+00> : vector<4xf32>
    %31 = vector.multi_reduction <add>, %29, %cst_25 [1] : vector<4x512xf32> to vector<4xf32>
    %32 = vector.shape_cast %31 : vector<4xf32> to vector<4x1xf32>
    %33 = arith.addf %30, %32 : vector<4x1xf32>
    %c0_26 = arith.constant 0 : index
    %c0_27 = arith.constant 0 : index
    %34 = vector.load %arg7[%c0_26, %c0_27] : memref<4x3xf32, #tpu.memory_space<vmem>>, vector<4x1xf32>
    tpu.vector_store %arg7[%c0_26, %c0_27], %33 {strides = array<i32>} : memref<4x3xf32, #tpu.memory_space<vmem>>, vector<4x1xf32>,
    %c0_28 = arith.constant 0 : index
    %c0_29 = arith.constant 0 : index
    %35 = vector.load %arg8[%c0_28, %c0_29] : memref<4x3xf32, #tpu.memory_space<vmem>>, vector<4x1xf32>
    %36 = arith.mulf %29, %29 : vector<4x512xf32>
    %cst_30 = arith.constant dense<0.000000e+00> : vector<4xf32>
    %37 = vector.multi_reduction <add>, %36, %cst_30 [1] : vector<4x512xf32> to vector<4xf32>
    %38 = vector.shape_cast %37 : vector<4xf32> to vector<4x1xf32>
    %39 = arith.addf %35, %38 : vector<4x1xf32>
    %c0_31 = arith.constant 0 : index
    %c0_32 = arith.constant 0 : index
    %40 = vector.load %arg8[%c0_31, %c0_32] : memref<4x3xf32, #tpu.memory_space<vmem>>, vector<4x1xf32>
    tpu.vector_store %arg8[%c0_31, %c0_32], %39 {strides = array<i32>} : memref<4x3xf32, #tpu.memory_space<vmem>>, vector<4x1xf32>,
    %41 = arith.subf %15, %11 : vector<16x512xf32>
    %c0_33 = arith.constant 0 : index
    %c0_34 = arith.constant 0 : index
    %c1 = arith.constant 1 : index
    %42 = vector.load %arg9[%c0_33, %c0_34, %c1] : memref<1x16x3xf32, #tpu.memory_space<vmem>>, vector<1x16x1xf32>
    %43 = vector.shape_cast %42 : vector<1x16x1xf32> to vector<16x1xf32>
    %cst_35 = arith.constant dense<0.000000e+00> : vector<16xf32>
    %44 = vector.multi_reduction <add>, %41, %cst_35 [1] : vector<16x512xf32> to vector<16xf32>
    %45 = vector.shape_cast %44 : vector<16xf32> to vector<16x1xf32>
    %46 = arith.addf %43, %45 : vector<16x1xf32>
    %c0_36 = arith.constant 0 : index
    %c0_37 = arith.constant 0 : index
    %c1_38 = arith.constant 1 : index
    %47 = vector.load %arg9[%c0_36, %c0_37, %c1_38] : memref<1x16x3xf32, #tpu.memory_space<vmem>>, vector<1x16x1xf32>
    %48 = vector.shape_cast %47 : vector<1x16x1xf32> to vector<16x1xf32>
    %49 = vector.shape_cast %46 : vector<16x1xf32> to vector<1x16x1xf32>
    tpu.vector_store %arg9[%c0_36, %c0_37, %c1_38], %49 {strides = array<i32>} : memref<1x16x3xf32, #tpu.memory_space<vmem>>, vector<1x16x1xf32>,
    %cst_39 = arith.constant dense<0.000000e+00> : vector<4x512xf32>
    %50 = tpu.matmul %16, %41, %cst_39 {dimension_numbers = #tpu.dot_dimension_numbers<[1], [0], [0], [1], [0, 0, 1, 1], [], []>} : vector<4x16xf32>, vector<16x512xf32>, vector<4x512xf32> -> vector<4x512xf32>
    %51 = vector.broadcast %17 : vector<4x1xf32> to vector<4x512xf32>
    %52 = arith.addf %50, %51 : vector<4x512xf32>
    %c0_40 = arith.constant 0 : index
    %c1_41 = arith.constant 1 : index
    %53 = vector.load %arg7[%c0_40, %c1_41] : memref<4x3xf32, #tpu.memory_space<vmem>>, vector<4x1xf32>
    %cst_42 = arith.constant dense<0.000000e+00> : vector<4xf32>
    %54 = vector.multi_reduction <add>, %52, %cst_42 [1] : vector<4x512xf32> to vector<4xf32>
    %55 = vector.shape_cast %54 : vector<4xf32> to vector<4x1xf32>
    %56 = arith.addf %53, %55 : vector<4x1xf32>
    %c0_43 = arith.constant 0 : index
    %c1_44 = arith.constant 1 : index
    %57 = vector.load %arg7[%c0_43, %c1_44] : memref<4x3xf32, #tpu.memory_space<vmem>>, vector<4x1xf32>
    tpu.vector_store %arg7[%c0_43, %c1_44], %56 {strides = array<i32>} : memref<4x3xf32, #tpu.memory_space<vmem>>, vector<4x1xf32>,
    %c0_45 = arith.constant 0 : index
    %c1_46 = arith.constant 1 : index
    %58 = vector.load %arg8[%c0_45, %c1_46] : memref<4x3xf32, #tpu.memory_space<vmem>>, vector<4x1xf32>
    %59 = arith.mulf %52, %52 : vector<4x512xf32>
    %cst_47 = arith.constant dense<0.000000e+00> : vector<4xf32>
    %60 = vector.multi_reduction <add>, %59, %cst_47 [1] : vector<4x512xf32> to vector<4xf32>
    %61 = vector.shape_cast %60 : vector<4xf32> to vector<4x1xf32>
    %62 = arith.addf %58, %61 : vector<4x1xf32>
    %c0_48 = arith.constant 0 : index
    %c1_49 = arith.constant 1 : index
    %63 = vector.load %arg8[%c0_48, %c1_49] : memref<4x3xf32, #tpu.memory_space<vmem>>, vector<4x1xf32>
    tpu.vector_store %arg8[%c0_48, %c1_49], %62 {strides = array<i32>} : memref<4x3xf32, #tpu.memory_space<vmem>>, vector<4x1xf32>,
    %64 = arith.subf %15, %9 : vector<16x512xf32>
    %c0_50 = arith.constant 0 : index
    %c0_51 = arith.constant 0 : index
    %c2 = arith.constant 2 : index
    %65 = vector.load %arg9[%c0_50, %c0_51, %c2] : memref<1x16x3xf32, #tpu.memory_space<vmem>>, vector<1x16x1xf32>
    %66 = vector.shape_cast %65 : vector<1x16x1xf32> to vector<16x1xf32>
    %cst_52 = arith.constant dense<0.000000e+00> : vector<16xf32>
    %67 = vector.multi_reduction <add>, %64, %cst_52 [1] : vector<16x512xf32> to vector<16xf32>
    %68 = vector.shape_cast %67 : vector<16xf32> to vector<16x1xf32>
    %69 = arith.addf %66, %68 : vector<16x1xf32>
    %c0_53 = arith.constant 0 : index
    %c0_54 = arith.constant 0 : index
    %c2_55 = arith.constant 2 : index
    %70 = vector.load %arg9[%c0_53, %c0_54, %c2_55] : memref<1x16x3xf32, #tpu.memory_space<vmem>>, vector<1x16x1xf32>
    %71 = vector.shape_cast %70 : vector<1x16x1xf32> to vector<16x1xf32>
    %72 = vector.shape_cast %69 : vector<16x1xf32> to vector<1x16x1xf32>
    tpu.vector_store %arg9[%c0_53, %c0_54, %c2_55], %72 {strides = array<i32>} : memref<1x16x3xf32, #tpu.memory_space<vmem>>, vector<1x16x1xf32>,
    %cst_56 = arith.constant dense<0.000000e+00> : vector<4x512xf32>
    %73 = tpu.matmul %16, %64, %cst_56 {dimension_numbers = #tpu.dot_dimension_numbers<[1], [0], [0], [1], [0, 0, 1, 1], [], []>} : vector<4x16xf32>, vector<16x512xf32>, vector<4x512xf32> -> vector<4x512xf32>
    %74 = vector.broadcast %17 : vector<4x1xf32> to vector<4x512xf32>
    %75 = arith.addf %73, %74 : vector<4x512xf32>
    %c0_57 = arith.constant 0 : index
    %c2_58 = arith.constant 2 : index
    %76 = vector.load %arg7[%c0_57, %c2_58] : memref<4x3xf32, #tpu.memory_space<vmem>>, vector<4x1xf32>
    %cst_59 = arith.constant dense<0.000000e+00> : vector<4xf32>
    %77 = vector.multi_reduction <add>, %75, %cst_59 [1] : vector<4x512xf32> to vector<4xf32>
    %78 = vector.shape_cast %77 : vector<4xf32> to vector<4x1xf32>
    %79 = arith.addf %76, %78 : vector<4x1xf32>
    %c0_60 = arith.constant 0 : index
    %c2_61 = arith.constant 2 : index
    %80 = vector.load %arg7[%c0_60, %c2_61] : memref<4x3xf32, #tpu.memory_space<vmem>>, vector<4x1xf32>
    tpu.vector_store %arg7[%c0_60, %c2_61], %79 {strides = array<i32>} : memref<4x3xf32, #tpu.memory_space<vmem>>, vector<4x1xf32>,
    %c0_62 = arith.constant 0 : index
    %c2_63 = arith.constant 2 : index
    %81 = vector.load %arg8[%c0_62, %c2_63] : memref<4x3xf32, #tpu.memory_space<vmem>>, vector<4x1xf32>
    %82 = arith.mulf %75, %75 : vector<4x512xf32>
    %cst_64 = arith.constant dense<0.000000e+00> : vector<4xf32>
    %83 = vector.multi_reduction <add>, %82, %cst_64 [1] : vector<4x512xf32> to vector<4xf32>
    %84 = vector.shape_cast %83 : vector<4xf32> to vector<4x1xf32>
    %85 = arith.addf %81, %84 : vector<4x1xf32>
    %c0_65 = arith.constant 0 : index
    %c2_66 = arith.constant 2 : index
    %86 = vector.load %arg8[%c0_65, %c2_66] : memref<4x3xf32, #tpu.memory_space<vmem>>, vector<4x1xf32>
    tpu.vector_store %arg8[%c0_65, %c2_66], %85 {strides = array<i32>} : memref<4x3xf32, #tpu.memory_space<vmem>>, vector<4x1xf32>,
    return
  }
  func.func @transform_0(%arg0: i32, %arg1: i32) -> (i32, i32, i32) {
    %c0_i32 = arith.constant 0 : i32
    %c0_i32_0 = arith.constant 0 : i32
    return %arg0, %c0_i32, %arg1 : i32, i32, i32
  }
  func.func @transform_1(%arg0: i32, %arg1: i32) -> (i32, i32, i32) {
    %c0_i32 = arith.constant 0 : i32
    %c0_i32_0 = arith.constant 0 : i32
    return %arg0, %c0_i32, %arg1 : i32, i32, i32
  }
  func.func @transform_2(%arg0: i32, %arg1: i32) -> (i32, i32, i32) {
    %c0_i32 = arith.constant 0 : i32
    %c0_i32_0 = arith.constant 0 : i32
    return %arg0, %c0_i32, %arg1 : i32, i32, i32
  }
  func.func @transform_3(%arg0: i32, %arg1: i32) -> (i32, i32) {
    %c0_i32 = arith.constant 0 : i32
    %c0_i32_0 = arith.constant 0 : i32
    %c0_i32_1 = arith.constant 0 : i32
    return %c0_i32, %c0_i32_0 : i32, i32
  }
  func.func @transform_4(%arg0: i32, %arg1: i32) -> (i32, i32) {
    %c0_i32 = arith.constant 0 : i32
    %c0_i32_0 = arith.constant 0 : i32
    %c0_i32_1 = arith.constant 0 : i32
    return %c0_i32, %c0_i32_0 : i32, i32
  }
  func.func @transform_5(%arg0: i32, %arg1: i32) -> (i32, i32) {
    %c0_i32 = arith.constant 0 : i32
    %c0_i32_0 = arith.constant 0 : i32
    %c0_i32_1 = arith.constant 0 : i32
    return %c0_i32, %c0_i32_0 : i32, i32
  }
  func.func @transform_6(%arg0: i32, %arg1: i32) -> (i32, i32) {
    %c0_i32 = arith.constant 0 : i32
    %c0_i32_0 = arith.constant 0 : i32
    %c0_i32_1 = arith.constant 0 : i32
    return %c0_i32, %c0_i32_0 : i32, i32
  }
  func.func @transform_7(%arg0: i32, %arg1: i32) -> (i32, i32, i32) {
    %c0_i32 = arith.constant 0 : i32
    %c0_i32_0 = arith.constant 0 : i32
    %c0_i32_1 = arith.constant 0 : i32
    return %arg0, %c0_i32, %c0_i32_0 : i32, i32, i32
  }
}

module attributes {stable_mosaic.version = 11 : i64} {
  func.func @_stats2_kernel(%arg0: i32, %arg1: i32, %arg2: memref<1x16x512xf32, #tpu.memory_space<vmem>>, %arg3: memref<1x16x512xf32, #tpu.memory_space<vmem>>, %arg4: memref<1x16x512xf32, #tpu.memory_space<vmem>>, %arg5: memref<4x16xf32, #tpu.memory_space<vmem>>, %arg6: memref<4x3xf32, #tpu.memory_space<vmem>>, %arg7: memref<4x3xf32, #tpu.memory_space<vmem>>, %arg8: memref<16x4xf32, #tpu.memory_space<vmem>>, %arg9: memref<16x1xf32, #tpu.memory_space<vmem>>, %arg10: memref<16x3xf32, #tpu.memory_space<vmem>>, %arg11: memref<16x3xf32, #tpu.memory_space<vmem>>) attributes {dimension_semantics = [#tpu.dimension_semantics<arbitrary>, #tpu.dimension_semantics<arbitrary>], iteration_bounds = array<i64: 2, 2>, scalar_prefetch = 0 : i64, scratch_operands = 0 : i64, tpu.core_type = #tpu.core_type<tc>, window_params = [{transform_indices = @transform_0, window_bounds = array<i64: 1, 16, 512>}, {transform_indices = @transform_1, window_bounds = array<i64: 1, 16, 512>}, {transform_indices = @transform_2, window_bounds = array<i64: 1, 16, 512>}, {pipeline_mode = #tpu.pipeline_mode<synchronous>, transform_indices = @transform_3, window_bounds = array<i64: 4, 16>}, {pipeline_mode = #tpu.pipeline_mode<synchronous>, transform_indices = @transform_4, window_bounds = array<i64: 4, 3>}, {pipeline_mode = #tpu.pipeline_mode<synchronous>, transform_indices = @transform_5, window_bounds = array<i64: 4, 3>}, {pipeline_mode = #tpu.pipeline_mode<synchronous>, transform_indices = @transform_6, window_bounds = array<i64: 16, 4>}, {pipeline_mode = #tpu.pipeline_mode<synchronous>, transform_indices = @transform_7, window_bounds = array<i64: 16, 1>}, {pipeline_mode = #tpu.pipeline_mode<synchronous>, transform_indices = @transform_8, window_bounds = array<i64: 16, 3>}, {pipeline_mode = #tpu.pipeline_mode<synchronous>, transform_indices = @transform_9, window_bounds = array<i64: 16, 3>}]} {
    %c0_i32 = arith.constant 0 : i32
    %0 = arith.cmpi eq, %arg0, %c0_i32 : i32
    %c0_i32_0 = arith.constant 0 : i32
    %1 = arith.cmpi eq, %arg1, %c0_i32_0 : i32
    %2 = arith.andi %0, %1 : i1
    %3 = arith.extui %2 : i1 to i32
    %c0_i32_1 = arith.constant 0 : i32
    %4 = arith.cmpi ne, %3, %c0_i32_1 : i32
    scf.if %4 {
      %cst_64 = arith.constant 0.000000e+00 : f32
      %88 = vector.broadcast %cst_64 : f32 to vector<16x3xf32>
      %c0_65 = arith.constant 0 : index
      %c0_66 = arith.constant 0 : index
      %89 = vector.load %arg10[%c0_65, %c0_66] : memref<16x3xf32, #tpu.memory_space<vmem>>, vector<16x3xf32>
      tpu.vector_store %arg10[%c0_65, %c0_66], %88 {strides = array<i32>} : memref<16x3xf32, #tpu.memory_space<vmem>>, vector<16x3xf32>,
      %cst_67 = arith.constant 0.000000e+00 : f32
      %90 = vector.broadcast %cst_67 : f32 to vector<16x3xf32>
      %c0_68 = arith.constant 0 : index
      %c0_69 = arith.constant 0 : index
      %91 = vector.load %arg11[%c0_68, %c0_69] : memref<16x3xf32, #tpu.memory_space<vmem>>, vector<16x3xf32>
      tpu.vector_store %arg11[%c0_68, %c0_69], %90 {strides = array<i32>} : memref<16x3xf32, #tpu.memory_space<vmem>>, vector<16x3xf32>,
    } else {
    }
    %c0 = arith.constant 0 : index
    %c0_2 = arith.constant 0 : index
    %c0_3 = arith.constant 0 : index
    %5 = vector.load %arg2[%c0, %c0_2, %c0_3] : memref<1x16x512xf32, #tpu.memory_space<vmem>>, vector<1x16x512xf32>
    %6 = vector.shape_cast %5 : vector<1x16x512xf32> to vector<16x512xf32>
    %c0_4 = arith.constant 0 : index
    %c0_5 = arith.constant 0 : index
    %c0_6 = arith.constant 0 : index
    %7 = vector.load %arg3[%c0_4, %c0_5, %c0_6] : memref<1x16x512xf32, #tpu.memory_space<vmem>>, vector<1x16x512xf32>
    %8 = vector.shape_cast %7 : vector<1x16x512xf32> to vector<16x512xf32>
    %c0_7 = arith.constant 0 : index
    %c0_8 = arith.constant 0 : index
    %c0_9 = arith.constant 0 : index
    %9 = vector.load %arg4[%c0_7, %c0_8, %c0_9] : memref<1x16x512xf32, #tpu.memory_space<vmem>>, vector<1x16x512xf32>
    %10 = vector.shape_cast %9 : vector<1x16x512xf32> to vector<16x512xf32>
    %11 = arith.addf %6, %8 : vector<16x512xf32>
    %12 = arith.addf %11, %10 : vector<16x512xf32>
    %c0_10 = arith.constant 0 : index
    %c0_11 = arith.constant 0 : index
    %13 = vector.load %arg5[%c0_10, %c0_11] : memref<4x16xf32, #tpu.memory_space<vmem>>, vector<4x16xf32>
    %c0_12 = arith.constant 0 : index
    %c0_13 = arith.constant 0 : index
    %14 = vector.load %arg8[%c0_12, %c0_13] : memref<16x4xf32, #tpu.memory_space<vmem>>, vector<16x4xf32>
    %c0_14 = arith.constant 0 : index
    %c0_15 = arith.constant 0 : index
    %15 = vector.load %arg9[%c0_14, %c0_15] : memref<16x1xf32, #tpu.memory_space<vmem>>, vector<16x1xf32>
    %16 = arith.subf %12, %10 : vector<16x512xf32>
    %cst = arith.constant dense<0.000000e+00> : vector<4x512xf32>
    %17 = tpu.matmul %13, %16, %cst {dimension_numbers = #tpu.dot_dimension_numbers<[1], [0], [0], [1], [0, 0, 1, 1], [], []>} : vector<4x16xf32>, vector<16x512xf32>, vector<4x512xf32> -> vector<4x512xf32>
    %c0_16 = arith.constant 0 : index
    %c0_17 = arith.constant 0 : index
    %18 = vector.load %arg6[%c0_16, %c0_17] : memref<4x3xf32, #tpu.memory_space<vmem>>, vector<4x1xf32>
    %19 = vector.broadcast %18 : vector<4x1xf32> to vector<4x512xf32>
    %20 = arith.mulf %17, %19 : vector<4x512xf32>
    %c0_18 = arith.constant 0 : index
    %c0_19 = arith.constant 0 : index
    %21 = vector.load %arg7[%c0_18, %c0_19] : memref<4x3xf32, #tpu.memory_space<vmem>>, vector<4x1xf32>
    %22 = vector.broadcast %21 : vector<4x1xf32> to vector<4x512xf32>
    %23 = arith.addf %20, %22 : vector<4x512xf32>
    %cst_20 = arith.constant 0.000000e+00 : f32
    %24 = vector.broadcast %cst_20 : f32 to vector<4x512xf32>
    %25 = arith.maximumf %23, %24 : vector<4x512xf32>
    %cst_21 = arith.constant dense<0.000000e+00> : vector<16x512xf32>
    %26 = tpu.matmul %14, %25, %cst_21 {dimension_numbers = #tpu.dot_dimension_numbers<[1], [0], [0], [1], [0, 0, 1, 1], [], []>} : vector<16x4xf32>, vector<4x512xf32>, vector<16x512xf32> -> vector<16x512xf32>
    %27 = vector.broadcast %15 : vector<16x1xf32> to vector<16x512xf32>
    %28 = arith.addf %26, %27 : vector<16x512xf32>
    %c0_22 = arith.constant 0 : index
    %c0_23 = arith.constant 0 : index
    %29 = vector.load %arg10[%c0_22, %c0_23] : memref<16x3xf32, #tpu.memory_space<vmem>>, vector<16x1xf32>
    %cst_24 = arith.constant dense<0.000000e+00> : vector<16xf32>
    %30 = vector.multi_reduction <add>, %28, %cst_24 [1] : vector<16x512xf32> to vector<16xf32>
    %31 = vector.shape_cast %30 : vector<16xf32> to vector<16x1xf32>
    %32 = arith.addf %29, %31 : vector<16x1xf32>
    %c0_25 = arith.constant 0 : index
    %c0_26 = arith.constant 0 : index
    %33 = vector.load %arg10[%c0_25, %c0_26] : memref<16x3xf32, #tpu.memory_space<vmem>>, vector<16x1xf32>
    tpu.vector_store %arg10[%c0_25, %c0_26], %32 {strides = array<i32>} : memref<16x3xf32, #tpu.memory_space<vmem>>, vector<16x1xf32>,
    %c0_27 = arith.constant 0 : index
    %c0_28 = arith.constant 0 : index
    %34 = vector.load %arg11[%c0_27, %c0_28] : memref<16x3xf32, #tpu.memory_space<vmem>>, vector<16x1xf32>
    %35 = arith.mulf %28, %28 : vector<16x512xf32>
    %cst_29 = arith.constant dense<0.000000e+00> : vector<16xf32>
    %36 = vector.multi_reduction <add>, %35, %cst_29 [1] : vector<16x512xf32> to vector<16xf32>
    %37 = vector.shape_cast %36 : vector<16xf32> to vector<16x1xf32>
    %38 = arith.addf %34, %37 : vector<16x1xf32>
    %c0_30 = arith.constant 0 : index
    %c0_31 = arith.constant 0 : index
    %39 = vector.load %arg11[%c0_30, %c0_31] : memref<16x3xf32, #tpu.memory_space<vmem>>, vector<16x1xf32>
    tpu.vector_store %arg11[%c0_30, %c0_31], %38 {strides = array<i32>} : memref<16x3xf32, #tpu.memory_space<vmem>>, vector<16x1xf32>,
    %40 = arith.subf %12, %8 : vector<16x512xf32>
    %cst_32 = arith.constant dense<0.000000e+00> : vector<4x512xf32>
    %41 = tpu.matmul %13, %40, %cst_32 {dimension_numbers = #tpu.dot_dimension_numbers<[1], [0], [0], [1], [0, 0, 1, 1], [], []>} : vector<4x16xf32>, vector<16x512xf32>, vector<4x512xf32> -> vector<4x512xf32>
    %c0_33 = arith.constant 0 : index
    %c1 = arith.constant 1 : index
    %42 = vector.load %arg6[%c0_33, %c1] : memref<4x3xf32, #tpu.memory_space<vmem>>, vector<4x1xf32>
    %43 = vector.broadcast %42 : vector<4x1xf32> to vector<4x512xf32>
    %44 = arith.mulf %41, %43 : vector<4x512xf32>
    %c0_34 = arith.constant 0 : index
    %c1_35 = arith.constant 1 : index
    %45 = vector.load %arg7[%c0_34, %c1_35] : memref<4x3xf32, #tpu.memory_space<vmem>>, vector<4x1xf32>
    %46 = vector.broadcast %45 : vector<4x1xf32> to vector<4x512xf32>
    %47 = arith.addf %44, %46 : vector<4x512xf32>
    %cst_36 = arith.constant 0.000000e+00 : f32
    %48 = vector.broadcast %cst_36 : f32 to vector<4x512xf32>
    %49 = arith.maximumf %47, %48 : vector<4x512xf32>
    %cst_37 = arith.constant dense<0.000000e+00> : vector<16x512xf32>
    %50 = tpu.matmul %14, %49, %cst_37 {dimension_numbers = #tpu.dot_dimension_numbers<[1], [0], [0], [1], [0, 0, 1, 1], [], []>} : vector<16x4xf32>, vector<4x512xf32>, vector<16x512xf32> -> vector<16x512xf32>
    %51 = vector.broadcast %15 : vector<16x1xf32> to vector<16x512xf32>
    %52 = arith.addf %50, %51 : vector<16x512xf32>
    %c0_38 = arith.constant 0 : index
    %c1_39 = arith.constant 1 : index
    %53 = vector.load %arg10[%c0_38, %c1_39] : memref<16x3xf32, #tpu.memory_space<vmem>>, vector<16x1xf32>
    %cst_40 = arith.constant dense<0.000000e+00> : vector<16xf32>
    %54 = vector.multi_reduction <add>, %52, %cst_40 [1] : vector<16x512xf32> to vector<16xf32>
    %55 = vector.shape_cast %54 : vector<16xf32> to vector<16x1xf32>
    %56 = arith.addf %53, %55 : vector<16x1xf32>
    %c0_41 = arith.constant 0 : index
    %c1_42 = arith.constant 1 : index
    %57 = vector.load %arg10[%c0_41, %c1_42] : memref<16x3xf32, #tpu.memory_space<vmem>>, vector<16x1xf32>
    tpu.vector_store %arg10[%c0_41, %c1_42], %56 {strides = array<i32>} : memref<16x3xf32, #tpu.memory_space<vmem>>, vector<16x1xf32>,
    %c0_43 = arith.constant 0 : index
    %c1_44 = arith.constant 1 : index
    %58 = vector.load %arg11[%c0_43, %c1_44] : memref<16x3xf32, #tpu.memory_space<vmem>>, vector<16x1xf32>
    %59 = arith.mulf %52, %52 : vector<16x512xf32>
    %cst_45 = arith.constant dense<0.000000e+00> : vector<16xf32>
    %60 = vector.multi_reduction <add>, %59, %cst_45 [1] : vector<16x512xf32> to vector<16xf32>
    %61 = vector.shape_cast %60 : vector<16xf32> to vector<16x1xf32>
    %62 = arith.addf %58, %61 : vector<16x1xf32>
    %c0_46 = arith.constant 0 : index
    %c1_47 = arith.constant 1 : index
    %63 = vector.load %arg11[%c0_46, %c1_47] : memref<16x3xf32, #tpu.memory_space<vmem>>, vector<16x1xf32>
    tpu.vector_store %arg11[%c0_46, %c1_47], %62 {strides = array<i32>} : memref<16x3xf32, #tpu.memory_space<vmem>>, vector<16x1xf32>,
    %64 = arith.subf %12, %6 : vector<16x512xf32>
    %cst_48 = arith.constant dense<0.000000e+00> : vector<4x512xf32>
    %65 = tpu.matmul %13, %64, %cst_48 {dimension_numbers = #tpu.dot_dimension_numbers<[1], [0], [0], [1], [0, 0, 1, 1], [], []>} : vector<4x16xf32>, vector<16x512xf32>, vector<4x512xf32> -> vector<4x512xf32>
    %c0_49 = arith.constant 0 : index
    %c2 = arith.constant 2 : index
    %66 = vector.load %arg6[%c0_49, %c2] : memref<4x3xf32, #tpu.memory_space<vmem>>, vector<4x1xf32>
    %67 = vector.broadcast %66 : vector<4x1xf32> to vector<4x512xf32>
    %68 = arith.mulf %65, %67 : vector<4x512xf32>
    %c0_50 = arith.constant 0 : index
    %c2_51 = arith.constant 2 : index
    %69 = vector.load %arg7[%c0_50, %c2_51] : memref<4x3xf32, #tpu.memory_space<vmem>>, vector<4x1xf32>
    %70 = vector.broadcast %69 : vector<4x1xf32> to vector<4x512xf32>
    %71 = arith.addf %68, %70 : vector<4x512xf32>
    %cst_52 = arith.constant 0.000000e+00 : f32
    %72 = vector.broadcast %cst_52 : f32 to vector<4x512xf32>
    %73 = arith.maximumf %71, %72 : vector<4x512xf32>
    %cst_53 = arith.constant dense<0.000000e+00> : vector<16x512xf32>
    %74 = tpu.matmul %14, %73, %cst_53 {dimension_numbers = #tpu.dot_dimension_numbers<[1], [0], [0], [1], [0, 0, 1, 1], [], []>} : vector<16x4xf32>, vector<4x512xf32>, vector<16x512xf32> -> vector<16x512xf32>
    %75 = vector.broadcast %15 : vector<16x1xf32> to vector<16x512xf32>
    %76 = arith.addf %74, %75 : vector<16x512xf32>
    %c0_54 = arith.constant 0 : index
    %c2_55 = arith.constant 2 : index
    %77 = vector.load %arg10[%c0_54, %c2_55] : memref<16x3xf32, #tpu.memory_space<vmem>>, vector<16x1xf32>
    %cst_56 = arith.constant dense<0.000000e+00> : vector<16xf32>
    %78 = vector.multi_reduction <add>, %76, %cst_56 [1] : vector<16x512xf32> to vector<16xf32>
    %79 = vector.shape_cast %78 : vector<16xf32> to vector<16x1xf32>
    %80 = arith.addf %77, %79 : vector<16x1xf32>
    %c0_57 = arith.constant 0 : index
    %c2_58 = arith.constant 2 : index
    %81 = vector.load %arg10[%c0_57, %c2_58] : memref<16x3xf32, #tpu.memory_space<vmem>>, vector<16x1xf32>
    tpu.vector_store %arg10[%c0_57, %c2_58], %80 {strides = array<i32>} : memref<16x3xf32, #tpu.memory_space<vmem>>, vector<16x1xf32>,
    %c0_59 = arith.constant 0 : index
    %c2_60 = arith.constant 2 : index
    %82 = vector.load %arg11[%c0_59, %c2_60] : memref<16x3xf32, #tpu.memory_space<vmem>>, vector<16x1xf32>
    %83 = arith.mulf %76, %76 : vector<16x512xf32>
    %cst_61 = arith.constant dense<0.000000e+00> : vector<16xf32>
    %84 = vector.multi_reduction <add>, %83, %cst_61 [1] : vector<16x512xf32> to vector<16xf32>
    %85 = vector.shape_cast %84 : vector<16xf32> to vector<16x1xf32>
    %86 = arith.addf %82, %85 : vector<16x1xf32>
    %c0_62 = arith.constant 0 : index
    %c2_63 = arith.constant 2 : index
    %87 = vector.load %arg11[%c0_62, %c2_63] : memref<16x3xf32, #tpu.memory_space<vmem>>, vector<16x1xf32>
    tpu.vector_store %arg11[%c0_62, %c2_63], %86 {strides = array<i32>} : memref<16x3xf32, #tpu.memory_space<vmem>>, vector<16x1xf32>,
    return
  }
  func.func @transform_0(%arg0: i32, %arg1: i32) -> (i32, i32, i32) {
    %c0_i32 = arith.constant 0 : i32
    %c0_i32_0 = arith.constant 0 : i32
    return %arg0, %c0_i32, %arg1 : i32, i32, i32
  }
  func.func @transform_1(%arg0: i32, %arg1: i32) -> (i32, i32, i32) {
    %c0_i32 = arith.constant 0 : i32
    %c0_i32_0 = arith.constant 0 : i32
    return %arg0, %c0_i32, %arg1 : i32, i32, i32
  }
  func.func @transform_2(%arg0: i32, %arg1: i32) -> (i32, i32, i32) {
    %c0_i32 = arith.constant 0 : i32
    %c0_i32_0 = arith.constant 0 : i32
    return %arg0, %c0_i32, %arg1 : i32, i32, i32
  }
  func.func @transform_3(%arg0: i32, %arg1: i32) -> (i32, i32) {
    %c0_i32 = arith.constant 0 : i32
    %c0_i32_0 = arith.constant 0 : i32
    %c0_i32_1 = arith.constant 0 : i32
    return %c0_i32, %c0_i32_0 : i32, i32
  }
  func.func @transform_4(%arg0: i32, %arg1: i32) -> (i32, i32) {
    %c0_i32 = arith.constant 0 : i32
    %c0_i32_0 = arith.constant 0 : i32
    %c0_i32_1 = arith.constant 0 : i32
    return %c0_i32, %c0_i32_0 : i32, i32
  }
  func.func @transform_5(%arg0: i32, %arg1: i32) -> (i32, i32) {
    %c0_i32 = arith.constant 0 : i32
    %c0_i32_0 = arith.constant 0 : i32
    %c0_i32_1 = arith.constant 0 : i32
    return %c0_i32, %c0_i32_0 : i32, i32
  }
  func.func @transform_6(%arg0: i32, %arg1: i32) -> (i32, i32) {
    %c0_i32 = arith.constant 0 : i32
    %c0_i32_0 = arith.constant 0 : i32
    %c0_i32_1 = arith.constant 0 : i32
    return %c0_i32, %c0_i32_0 : i32, i32
  }
  func.func @transform_7(%arg0: i32, %arg1: i32) -> (i32, i32) {
    %c0_i32 = arith.constant 0 : i32
    %c0_i32_0 = arith.constant 0 : i32
    %c0_i32_1 = arith.constant 0 : i32
    return %c0_i32, %c0_i32_0 : i32, i32
  }
  func.func @transform_8(%arg0: i32, %arg1: i32) -> (i32, i32) {
    %c0_i32 = arith.constant 0 : i32
    %c0_i32_0 = arith.constant 0 : i32
    %c0_i32_1 = arith.constant 0 : i32
    return %c0_i32, %c0_i32_0 : i32, i32
  }
  func.func @transform_9(%arg0: i32, %arg1: i32) -> (i32, i32) {
    %c0_i32 = arith.constant 0 : i32
    %c0_i32_0 = arith.constant 0 : i32
    %c0_i32_1 = arith.constant 0 : i32
    return %c0_i32, %c0_i32_0 : i32, i32
  }
}

module attributes {stable_mosaic.version = 11 : i64} {
  func.func @_final_kernel(%arg0: i32, %arg1: i32, %arg2: memref<1x16x512xf32, #tpu.memory_space<vmem>>, %arg3: memref<1x16x512xf32, #tpu.memory_space<vmem>>, %arg4: memref<1x16x512xf32, #tpu.memory_space<vmem>>, %arg5: memref<4x16xf32, #tpu.memory_space<vmem>>, %arg6: memref<4x3xf32, #tpu.memory_space<vmem>>, %arg7: memref<4x3xf32, #tpu.memory_space<vmem>>, %arg8: memref<16x4xf32, #tpu.memory_space<vmem>>, %arg9: memref<16x3xf32, #tpu.memory_space<vmem>>, %arg10: memref<16x3xf32, #tpu.memory_space<vmem>>, %arg11: memref<1x16x3xf32, #tpu.memory_space<vmem>>, %arg12: memref<1x16x512xf32, #tpu.memory_space<vmem>>) attributes {dimension_semantics = [#tpu.dimension_semantics<parallel>, #tpu.dimension_semantics<parallel>], iteration_bounds = array<i64: 2, 2>, scalar_prefetch = 0 : i64, scratch_operands = 0 : i64, tpu.core_type = #tpu.core_type<tc>, window_params = [{transform_indices = @transform_0, window_bounds = array<i64: 1, 16, 512>}, {transform_indices = @transform_1, window_bounds = array<i64: 1, 16, 512>}, {transform_indices = @transform_2, window_bounds = array<i64: 1, 16, 512>}, {pipeline_mode = #tpu.pipeline_mode<synchronous>, transform_indices = @transform_3, window_bounds = array<i64: 4, 16>}, {pipeline_mode = #tpu.pipeline_mode<synchronous>, transform_indices = @transform_4, window_bounds = array<i64: 4, 3>}, {pipeline_mode = #tpu.pipeline_mode<synchronous>, transform_indices = @transform_5, window_bounds = array<i64: 4, 3>}, {pipeline_mode = #tpu.pipeline_mode<synchronous>, transform_indices = @transform_6, window_bounds = array<i64: 16, 4>}, {pipeline_mode = #tpu.pipeline_mode<synchronous>, transform_indices = @transform_7, window_bounds = array<i64: 16, 3>}, {pipeline_mode = #tpu.pipeline_mode<synchronous>, transform_indices = @transform_8, window_bounds = array<i64: 16, 3>}, {transform_indices = @transform_9, window_bounds = array<i64: 1, 16, 3>}, {transform_indices = @transform_10, window_bounds = array<i64: 1, 16, 512>}]} {
    %c0 = arith.constant 0 : index
    %c0_0 = arith.constant 0 : index
    %c0_1 = arith.constant 0 : index
    %0 = vector.load %arg2[%c0, %c0_0, %c0_1] : memref<1x16x512xf32, #tpu.memory_space<vmem>>, vector<1x16x512xf32>
    %1 = vector.shape_cast %0 : vector<1x16x512xf32> to vector<16x512xf32>
    %c0_2 = arith.constant 0 : index
    %c0_3 = arith.constant 0 : index
    %c0_4 = arith.constant 0 : index
    %2 = vector.load %arg3[%c0_2, %c0_3, %c0_4] : memref<1x16x512xf32, #tpu.memory_space<vmem>>, vector<1x16x512xf32>
    %3 = vector.shape_cast %2 : vector<1x16x512xf32> to vector<16x512xf32>
    %c0_5 = arith.constant 0 : index
    %c0_6 = arith.constant 0 : index
    %c0_7 = arith.constant 0 : index
    %4 = vector.load %arg4[%c0_5, %c0_6, %c0_7] : memref<1x16x512xf32, #tpu.memory_space<vmem>>, vector<1x16x512xf32>
    %5 = vector.shape_cast %4 : vector<1x16x512xf32> to vector<16x512xf32>
    %6 = arith.addf %1, %3 : vector<16x512xf32>
    %7 = arith.addf %6, %5 : vector<16x512xf32>
    %c0_8 = arith.constant 0 : index
    %c0_9 = arith.constant 0 : index
    %8 = vector.load %arg5[%c0_8, %c0_9] : memref<4x16xf32, #tpu.memory_space<vmem>>, vector<4x16xf32>
    %c0_10 = arith.constant 0 : index
    %c0_11 = arith.constant 0 : index
    %9 = vector.load %arg8[%c0_10, %c0_11] : memref<16x4xf32, #tpu.memory_space<vmem>>, vector<16x4xf32>
    %10 = arith.subf %7, %5 : vector<16x512xf32>
    %cst = arith.constant dense<0.000000e+00> : vector<4x512xf32>
    %11 = tpu.matmul %8, %10, %cst {dimension_numbers = #tpu.dot_dimension_numbers<[1], [0], [0], [1], [0, 0, 1, 1], [], []>} : vector<4x16xf32>, vector<16x512xf32>, vector<4x512xf32> -> vector<4x512xf32>
    %c0_12 = arith.constant 0 : index
    %c0_13 = arith.constant 0 : index
    %12 = vector.load %arg6[%c0_12, %c0_13] : memref<4x3xf32, #tpu.memory_space<vmem>>, vector<4x1xf32>
    %13 = vector.broadcast %12 : vector<4x1xf32> to vector<4x512xf32>
    %14 = arith.mulf %11, %13 : vector<4x512xf32>
    %c0_14 = arith.constant 0 : index
    %c0_15 = arith.constant 0 : index
    %15 = vector.load %arg7[%c0_14, %c0_15] : memref<4x3xf32, #tpu.memory_space<vmem>>, vector<4x1xf32>
    %16 = vector.broadcast %15 : vector<4x1xf32> to vector<4x512xf32>
    %17 = arith.addf %14, %16 : vector<4x512xf32>
    %cst_16 = arith.constant 0.000000e+00 : f32
    %18 = vector.broadcast %cst_16 : f32 to vector<4x512xf32>
    %19 = arith.maximumf %17, %18 : vector<4x512xf32>
    %cst_17 = arith.constant dense<0.000000e+00> : vector<16x512xf32>
    %20 = tpu.matmul %9, %19, %cst_17 {dimension_numbers = #tpu.dot_dimension_numbers<[1], [0], [0], [1], [0, 0, 1, 1], [], []>} : vector<16x4xf32>, vector<4x512xf32>, vector<16x512xf32> -> vector<16x512xf32>
    %c0_18 = arith.constant 0 : index
    %c0_19 = arith.constant 0 : index
    %21 = vector.load %arg9[%c0_18, %c0_19] : memref<16x3xf32, #tpu.memory_space<vmem>>, vector<16x1xf32>
    %22 = vector.broadcast %21 : vector<16x1xf32> to vector<16x512xf32>
    %23 = arith.mulf %20, %22 : vector<16x512xf32>
    %c0_20 = arith.constant 0 : index
    %c0_21 = arith.constant 0 : index
    %24 = vector.load %arg10[%c0_20, %c0_21] : memref<16x3xf32, #tpu.memory_space<vmem>>, vector<16x1xf32>
    %25 = vector.broadcast %24 : vector<16x1xf32> to vector<16x512xf32>
    %26 = arith.addf %23, %25 : vector<16x512xf32>
    %c0_22 = arith.constant 0 : index
    %c0_23 = arith.constant 0 : index
    %c0_24 = arith.constant 0 : index
    %27 = vector.load %arg11[%c0_22, %c0_23, %c0_24] : memref<1x16x3xf32, #tpu.memory_space<vmem>>, vector<1x16x1xf32>
    %28 = vector.shape_cast %27 : vector<1x16x1xf32> to vector<16x1xf32>
    %29 = vector.broadcast %28 : vector<16x1xf32> to vector<16x512xf32>
    %30 = arith.addf %26, %29 : vector<16x512xf32>
    %31 = arith.negf %30 : vector<16x512xf32>
    %32 = math.exp %31 : vector<16x512xf32>
    %cst_25 = arith.constant 1.000000e+00 : f32
    %33 = vector.broadcast %cst_25 : f32 to vector<16x512xf32>
    %34 = arith.addf %33, %32 : vector<16x512xf32>
    %35 = arith.divf %33, %34 : vector<16x512xf32>
    %36 = arith.subf %1, %3 : vector<16x512xf32>
    %37 = arith.mulf %35, %36 : vector<16x512xf32>
    %38 = arith.addf %7, %37 : vector<16x512xf32>
    %39 = arith.subf %7, %3 : vector<16x512xf32>
    %cst_26 = arith.constant dense<0.000000e+00> : vector<4x512xf32>
    %40 = tpu.matmul %8, %39, %cst_26 {dimension_numbers = #tpu.dot_dimension_numbers<[1], [0], [0], [1], [0, 0, 1, 1], [], []>} : vector<4x16xf32>, vector<16x512xf32>, vector<4x512xf32> -> vector<4x512xf32>
    %c0_27 = arith.constant 0 : index
    %c1 = arith.constant 1 : index
    %41 = vector.load %arg6[%c0_27, %c1] : memref<4x3xf32, #tpu.memory_space<vmem>>, vector<4x1xf32>
    %42 = vector.broadcast %41 : vector<4x1xf32> to vector<4x512xf32>
    %43 = arith.mulf %40, %42 : vector<4x512xf32>
    %c0_28 = arith.constant 0 : index
    %c1_29 = arith.constant 1 : index
    %44 = vector.load %arg7[%c0_28, %c1_29] : memref<4x3xf32, #tpu.memory_space<vmem>>, vector<4x1xf32>
    %45 = vector.broadcast %44 : vector<4x1xf32> to vector<4x512xf32>
    %46 = arith.addf %43, %45 : vector<4x512xf32>
    %cst_30 = arith.constant 0.000000e+00 : f32
    %47 = vector.broadcast %cst_30 : f32 to vector<4x512xf32>
    %48 = arith.maximumf %46, %47 : vector<4x512xf32>
    %cst_31 = arith.constant dense<0.000000e+00> : vector<16x512xf32>
    %49 = tpu.matmul %9, %48, %cst_31 {dimension_numbers = #tpu.dot_dimension_numbers<[1], [0], [0], [1], [0, 0, 1, 1], [], []>} : vector<16x4xf32>, vector<4x512xf32>, vector<16x512xf32> -> vector<16x512xf32>
    %c0_32 = arith.constant 0 : index
    %c1_33 = arith.constant 1 : index
    %50 = vector.load %arg9[%c0_32, %c1_33] : memref<16x3xf32, #tpu.memory_space<vmem>>, vector<16x1xf32>
    %51 = vector.broadcast %50 : vector<16x1xf32> to vector<16x512xf32>
    %52 = arith.mulf %49, %51 : vector<16x512xf32>
    %c0_34 = arith.constant 0 : index
    %c1_35 = arith.constant 1 : index
    %53 = vector.load %arg10[%c0_34, %c1_35] : memref<16x3xf32, #tpu.memory_space<vmem>>, vector<16x1xf32>
    %54 = vector.broadcast %53 : vector<16x1xf32> to vector<16x512xf32>
    %55 = arith.addf %52, %54 : vector<16x512xf32>
    %c0_36 = arith.constant 0 : index
    %c0_37 = arith.constant 0 : index
    %c1_38 = arith.constant 1 : index
    %56 = vector.load %arg11[%c0_36, %c0_37, %c1_38] : memref<1x16x3xf32, #tpu.memory_space<vmem>>, vector<1x16x1xf32>
    %57 = vector.shape_cast %56 : vector<1x16x1xf32> to vector<16x1xf32>
    %58 = vector.broadcast %57 : vector<16x1xf32> to vector<16x512xf32>
    %59 = arith.addf %55, %58 : vector<16x512xf32>
    %60 = arith.negf %59 : vector<16x512xf32>
    %61 = math.exp %60 : vector<16x512xf32>
    %cst_39 = arith.constant 1.000000e+00 : f32
    %62 = vector.broadcast %cst_39 : f32 to vector<16x512xf32>
    %63 = arith.addf %62, %61 : vector<16x512xf32>
    %64 = arith.divf %62, %63 : vector<16x512xf32>
    %65 = arith.subf %5, %1 : vector<16x512xf32>
    %66 = arith.mulf %64, %65 : vector<16x512xf32>
    %67 = arith.addf %38, %66 : vector<16x512xf32>
    %68 = arith.subf %7, %1 : vector<16x512xf32>
    %cst_40 = arith.constant dense<0.000000e+00> : vector<4x512xf32>
    %69 = tpu.matmul %8, %68, %cst_40 {dimension_numbers = #tpu.dot_dimension_numbers<[1], [0], [0], [1], [0, 0, 1, 1], [], []>} : vector<4x16xf32>, vector<16x512xf32>, vector<4x512xf32> -> vector<4x512xf32>
    %c0_41 = arith.constant 0 : index
    %c2 = arith.constant 2 : index
    %70 = vector.load %arg6[%c0_41, %c2] : memref<4x3xf32, #tpu.memory_space<vmem>>, vector<4x1xf32>
    %71 = vector.broadcast %70 : vector<4x1xf32> to vector<4x512xf32>
    %72 = arith.mulf %69, %71 : vector<4x512xf32>
    %c0_42 = arith.constant 0 : index
    %c2_43 = arith.constant 2 : index
    %73 = vector.load %arg7[%c0_42, %c2_43] : memref<4x3xf32, #tpu.memory_space<vmem>>, vector<4x1xf32>
    %74 = vector.broadcast %73 : vector<4x1xf32> to vector<4x512xf32>
    %75 = arith.addf %72, %74 : vector<4x512xf32>
    %cst_44 = arith.constant 0.000000e+00 : f32
    %76 = vector.broadcast %cst_44 : f32 to vector<4x512xf32>
    %77 = arith.maximumf %75, %76 : vector<4x512xf32>
    %cst_45 = arith.constant dense<0.000000e+00> : vector<16x512xf32>
    %78 = tpu.matmul %9, %77, %cst_45 {dimension_numbers = #tpu.dot_dimension_numbers<[1], [0], [0], [1], [0, 0, 1, 1], [], []>} : vector<16x4xf32>, vector<4x512xf32>, vector<16x512xf32> -> vector<16x512xf32>
    %c0_46 = arith.constant 0 : index
    %c2_47 = arith.constant 2 : index
    %79 = vector.load %arg9[%c0_46, %c2_47] : memref<16x3xf32, #tpu.memory_space<vmem>>, vector<16x1xf32>
    %80 = vector.broadcast %79 : vector<16x1xf32> to vector<16x512xf32>
    %81 = arith.mulf %78, %80 : vector<16x512xf32>
    %c0_48 = arith.constant 0 : index
    %c2_49 = arith.constant 2 : index
    %82 = vector.load %arg10[%c0_48, %c2_49] : memref<16x3xf32, #tpu.memory_space<vmem>>, vector<16x1xf32>
    %83 = vector.broadcast %82 : vector<16x1xf32> to vector<16x512xf32>
    %84 = arith.addf %81, %83 : vector<16x512xf32>
    %c0_50 = arith.constant 0 : index
    %c0_51 = arith.constant 0 : index
    %c2_52 = arith.constant 2 : index
    %85 = vector.load %arg11[%c0_50, %c0_51, %c2_52] : memref<1x16x3xf32, #tpu.memory_space<vmem>>, vector<1x16x1xf32>
    %86 = vector.shape_cast %85 : vector<1x16x1xf32> to vector<16x1xf32>
    %87 = vector.broadcast %86 : vector<16x1xf32> to vector<16x512xf32>
    %88 = arith.addf %84, %87 : vector<16x512xf32>
    %89 = arith.negf %88 : vector<16x512xf32>
    %90 = math.exp %89 : vector<16x512xf32>
    %cst_53 = arith.constant 1.000000e+00 : f32
    %91 = vector.broadcast %cst_53 : f32 to vector<16x512xf32>
    %92 = arith.addf %91, %90 : vector<16x512xf32>
    %93 = arith.divf %91, %92 : vector<16x512xf32>
    %94 = arith.subf %3, %5 : vector<16x512xf32>
    %95 = arith.mulf %93, %94 : vector<16x512xf32>
    %96 = arith.addf %67, %95 : vector<16x512xf32>
    %c0_54 = arith.constant 0 : index
    %c0_55 = arith.constant 0 : index
    %c0_56 = arith.constant 0 : index
    %97 = vector.load %arg12[%c0_54, %c0_55, %c0_56] : memref<1x16x512xf32, #tpu.memory_space<vmem>>, vector<1x16x512xf32>
    %98 = vector.shape_cast %97 : vector<1x16x512xf32> to vector<16x512xf32>
    %99 = vector.shape_cast %96 : vector<16x512xf32> to vector<1x16x512xf32>
    tpu.vector_store %arg12[%c0_54, %c0_55, %c0_56], %99 {strides = array<i32>} : memref<1x16x512xf32, #tpu.memory_space<vmem>>, vector<1x16x512xf32>,
    return
  }
  func.func @transform_0(%arg0: i32, %arg1: i32) -> (i32, i32, i32) {
    %c0_i32 = arith.constant 0 : i32
    %c0_i32_0 = arith.constant 0 : i32
    return %arg0, %c0_i32, %arg1 : i32, i32, i32
  }
  func.func @transform_1(%arg0: i32, %arg1: i32) -> (i32, i32, i32) {
    %c0_i32 = arith.constant 0 : i32
    %c0_i32_0 = arith.constant 0 : i32
    return %arg0, %c0_i32, %arg1 : i32, i32, i32
  }
  func.func @transform_2(%arg0: i32, %arg1: i32) -> (i32, i32, i32) {
    %c0_i32 = arith.constant 0 : i32
    %c0_i32_0 = arith.constant 0 : i32
    return %arg0, %c0_i32, %arg1 : i32, i32, i32
  }
  func.func @transform_3(%arg0: i32, %arg1: i32) -> (i32, i32) {
    %c0_i32 = arith.constant 0 : i32
    %c0_i32_0 = arith.constant 0 : i32
    %c0_i32_1 = arith.constant 0 : i32
    return %c0_i32, %c0_i32_0 : i32, i32
  }
  func.func @transform_4(%arg0: i32, %arg1: i32) -> (i32, i32) {
    %c0_i32 = arith.constant 0 : i32
    %c0_i32_0 = arith.constant 0 : i32
    %c0_i32_1 = arith.constant 0 : i32
    return %c0_i32, %c0_i32_0 : i32, i32
  }
  func.func @transform_5(%arg0: i32, %arg1: i32) -> (i32, i32) {
    %c0_i32 = arith.constant 0 : i32
    %c0_i32_0 = arith.constant 0 : i32
    %c0_i32_1 = arith.constant 0 : i32
    return %c0_i32, %c0_i32_0 : i32, i32
  }
  func.func @transform_6(%arg0: i32, %arg1: i32) -> (i32, i32) {
    %c0_i32 = arith.constant 0 : i32
    %c0_i32_0 = arith.constant 0 : i32
    %c0_i32_1 = arith.constant 0 : i32
    return %c0_i32, %c0_i32_0 : i32, i32
  }
  func.func @transform_7(%arg0: i32, %arg1: i32) -> (i32, i32) {
    %c0_i32 = arith.constant 0 : i32
    %c0_i32_0 = arith.constant 0 : i32
    %c0_i32_1 = arith.constant 0 : i32
    return %c0_i32, %c0_i32_0 : i32, i32
  }
  func.func @transform_8(%arg0: i32, %arg1: i32) -> (i32, i32) {
    %c0_i32 = arith.constant 0 : i32
    %c0_i32_0 = arith.constant 0 : i32
    %c0_i32_1 = arith.constant 0 : i32
    return %c0_i32, %c0_i32_0 : i32, i32
  }
  func.func @transform_9(%arg0: i32, %arg1: i32) -> (i32, i32, i32) {
    %c0_i32 = arith.constant 0 : i32
    %c0_i32_0 = arith.constant 0 : i32
    %c0_i32_1 = arith.constant 0 : i32
    return %arg0, %c0_i32, %c0_i32_0 : i32, i32, i32
  }
  func.func @transform_10(%arg0: i32, %arg1: i32) -> (i32, i32, i32) {
    %c0_i32 = arith.constant 0 : i32
    %c0_i32_0 = arith.constant 0 : i32
    return %arg0, %c0_i32, %arg1 : i32, i32, i32
  }
}

</mosaic_0001>

<bundles_post_ra>
// kernel: aff_forward.3
= control target key start
LH: loop header
LB: loop body
LE: loop exit
PB: predicated region body
PF: predicated region fallthrough
CT: control target
= control target key end

     0   :  { %s1238_s24 = smov 0   ;;  %s1240_s25 = smov 0   ;;  %s1570_s0 = inlined_call_operand.vmem [shape: f32[2,16,1024], index: 0, kind: input, shape index: {}]   ;;  %s1571_s1 = inlined_call_operand.vmem [shape: f32[2,16,1024], index: 1, kind: input, shape index: {}]   ;;  %s1572_s2 = inlined_call_operand.vmem [shape: f32[2,16,1024], index: 2, kind: input, shape index: {}]   ;;  %s1573_s3 = inlined_call_operand.vmem [shape: f32[4,16], index: 3, kind: input, shape index: {}]   ;;  %s1574_s4 = inlined_call_operand.vmem [shape: f32[4,1], index: 4, kind: input, shape index: {}]   ;;  %s1575_s5 = inlined_call_operand.vmem [shape: f32[4,3], index: 5, kind: output, shape index: {0}]   ;;  %s1576_s6 = inlined_call_operand.vmem [shape: f32[4,3], index: 6, kind: output, shape index: {1}]   ;;  %s1577_s7 = inlined_call_operand.vmem [shape: f32[2,16,3], index: 7, kind: output, shape index: {2}]  }
   0x1   :  { %s1242_s26 = smov 0   ;;  %s1244_s27 = smov 0  }
   0x2   :  { %s1246_s28 = smov 0   ;;  %s1248_s29 = smov 0  }
   0x3   :  { %s1250_s30 = smov 0  }
   0x4 LB: > { %s27_s8 = sadd.s32 1, %s1185_s28  ;;  %s30_s9 = sadd.s32 1, %s1189_s29  ;;  %s1193_s30 = sphi %s1250_s30, %s18_s30   ;;  %s1189_s29 = sphi %s1248_s29, %s1584_s29   ;;  %s1185_s28 = sphi %s1246_s28, %s1583_s28   ;;  %s1181_s27 = sphi %s1244_s27, %s1582_s27   ;;  %s1177_s26 = sphi %s1242_s26, %s1581_s26   ;;  %s1173_s25 = sphi %s1240_s25, %s1580_s25   ;;  %s1169_s24 = sphi %s1238_s24, %s1579_s24  }
   0x5   : > { %p28_p0 = scmp.ge.s32.totalorder %s27_s8, 2  ;;  %p46_p1 = scmp.ne.s32.totalorder %s1173_s25, %s1169_s24 }
   0x6   : > { %p47_p2 = scmp.eq.s32.totalorder %s1193_s30, 0  ;;  %s39_s14 = sadd.s32 1, %s1173_s25 }
   0x7   : > { %s1586_s8 = smov (%p28_p0, %s27_s8), 0  ;;  %s1588_s9 = smov (!%p28_p0, %s30_s9), %s1189_s29 }
   0x8   : > { %p1281_p3 = por %p47_p2, %p46_p1  ;;  %p32_p4 = scmp.ge.s32.totalorder %s1588_s9, 2 }
   0x9   : > { %s35_s11 = ssub.s32 %s1185_s28, %s1586_s8  ;;  %p1044_p6 = scmp.ge.s32.totalorder %s1193_s30, 4 }
   0xa   : > { %s1590_s9 = smov (%p32_p4, %s1588_s9), 0 }
   0xb   : > { %s34_s12 = ssub.s32 %s1189_s29, %s1590_s9  ;;  %244 = sbr.rel (%p1044_p6) target bundleno = 61 (0x3d), region = 24 }
   0xc   : > { %s36_s13 = sor.u32 %s35_s11, %s34_s12 }
   0xd   : > { %p37_p5 = scmp.eq.s32.totalorder %s36_s13, 0 }
   0xf   : > { %s1293_s15 = scalar_select %p37_p5, %s1173_s25, %s39_s14  }
  0x10   : > { %247 = sbr.rel (!%p1281_p3) target bundleno = 31 (0x1f), region = 28  ;;  %s249_s16 = sand.u32 (%p1281_p3), 1, %s1173_s25  }
  0x11   : > { %s1046_s17 = sshll.u32 (%p1281_p3), %s1185_s28, 2  ;;  %s1045_s18 = sshll.u32 (%p1281_p3), %s249_s16, 6 }
  0x12   : > { %s1047_s19 = sshll.u32 (%p1281_p3), %s1189_s29, 4  ;;  %s251_s12 = scalar_lea.vmem (%p1281_p3), [#allocation2], %s1045_s18 }
  0x13   : > { %s254_s20 = sadd.s32 (%p1281_p3), %s1047_s19, %s1046_s17 }
  0x14   : > { %s1048_s21 = sshll.u32 (%p1281_p3), %s254_s20, 3 }
  0x15   : > { %s256_s11 = scalar_lea.vmem %s1570_s0, %s1048_s21 }
  0x16   : > { %v269_v0 = vld [vmem:[%s256_s11] sm:$0xff]  ;;  %v271_v1 = vld [vmem:[%s256_s11 + $0x8] sm:$0xff]  ;;  %v273_v2 = vld [vmem:[%s256_s11 + $0x10] sm:$0xff] }
  0x17   : > { %270 = vst [vmem:[%s251_s12] sm:$0xff] %v269_v0  ;;  %v275_v3 = vld [vmem:[%s256_s11 + $0x18] sm:$0xff]  ;;  %v277_v4 = vld [vmem:[%s256_s11 + $0x40] sm:$0xff]  ;;  %v279_v5 = vld [vmem:[%s256_s11 + $0x48] sm:$0xff] }
  0x18   : > { %272 = vst [vmem:[%s251_s12 + $0x8] sm:$0xff] %v271_v1  ;;  %v281_v6 = vld [vmem:[%s256_s11 + $0x50] sm:$0xff]  ;;  %v283_v7 = vld [vmem:[%s256_s11 + $0x58] sm:$0xff] }
  0x19   : > { %274 = vst [vmem:[%s251_s12 + $0x10] sm:$0xff] %v273_v2 }
  0x1a   : > { %276 = vst [vmem:[%s251_s12 + $0x18] sm:$0xff] %v275_v3 }
  0x1b   : > { %278 = vst [vmem:[%s251_s12 + $0x20] sm:$0xff] %v277_v4 }
  0x1c   : > { %280 = vst [vmem:[%s251_s12 + $0x28] sm:$0xff] %v279_v5 }
  0x1d   : > { %282 = vst [vmem:[%s251_s12 + $0x30] sm:$0xff] %v281_v6 }
  0x1e   : > { %284 = vst [vmem:[%s251_s12 + $0x38] sm:$0xff] %v283_v7 }
  0x1f PF: > { %290 = sbr.rel (!%p1281_p3) target bundleno = 46 (0x2e), region = 51  ;;  %s292_s13 = sand.u32 (%p1281_p3), 1, %s1173_s25  }
  0x20   : > { %s1050_s14 = sshll.u32 (%p1281_p3), %s1185_s28, 2  ;;  %s1049_s16 = sshll.u32 (%p1281_p3), %s292_s13, 6 }
  0x21   : > { %s1051_s17 = sshll.u32 (%p1281_p3), %s1189_s29, 4  ;;  %s294_s23 = scalar_lea.vmem (%p1281_p3), [#allocation3], %s1049_s16 }
  0x22   : > { %s297_s18 = sadd.s32 (%p1281_p3), %s1051_s17, %s1050_s14 }
  0x23   : > { %s1052_s19 = sshll.u32 (%p1281_p3), %s297_s18, 3 }
  0x24   : > { %s299_s22 = scalar_lea.vmem %s1571_s1, %s1052_s19 }
  0x25   : > { %v312_v8 = vld [vmem:[%s299_s22] sm:$0xff]  ;;  %v314_v9 = vld [vmem:[%s299_s22 + $0x8] sm:$0xff]  ;;  %v316_v10 = vld [vmem:[%s299_s22 + $0x10] sm:$0xff] }
  0x26   : > { %313 = vst [vmem:[%s294_s23] sm:$0xff] %v312_v8  ;;  %v318_v11 = vld [vmem:[%s299_s22 + $0x18] sm:$0xff]  ;;  %v320_v12 = vld [vmem:[%s299_s22 + $0x40] sm:$0xff]  ;;  %v322_v13 = vld [vmem:[%s299_s22 + $0x48] sm:$0xff] }
  0x27   : > { %315 = vst [vmem:[%s294_s23 + $0x8] sm:$0xff] %v314_v9  ;;  %v324_v14 = vld [vmem:[%s299_s22 + $0x50] sm:$0xff]  ;;  %v326_v15 = vld [vmem:[%s299_s22 + $0x58] sm:$0xff] }
  0x28   : > { %317 = vst [vmem:[%s294_s23 + $0x10] sm:$0xff] %v316_v10 }
  0x29   : > { %319 = vst [vmem:[%s294_s23 + $0x18] sm:$0xff] %v318_v11 }
  0x2a   : > { %321 = vst [vmem:[%s294_s23 + $0x20] sm:$0xff] %v320_v12 }
  0x2b   : > { %323 = vst [vmem:[%s294_s23 + $0x28] sm:$0xff] %v322_v13 }
  0x2c   : > { %325 = vst [vmem:[%s294_s23 + $0x30] sm:$0xff] %v324_v14 }
  0x2d   : > { %327 = vst [vmem:[%s294_s23 + $0x38] sm:$0xff] %v326_v15 }
  0x2e PF: > { %333 = sbr.rel (!%p1281_p3) target bundleno = 61 (0x3d), region = 74  ;;  %s335_s11 = sand.u32 (%p1281_p3), 1, %s1173_s25  }
  0x2f   : > { %s1054_s12 = sshll.u32 (%p1281_p3), %s1185_s28, 2  ;;  %s1053_s13 = sshll.u32 (%p1281_p3), %s335_s11, 6 }
  0x30   : > { %s1055_s14 = sshll.u32 (%p1281_p3), %s1189_s29, 4  ;;  %s337_s21 = scalar_lea.vmem (%p1281_p3), [#allocation4], %s1053_s13 }
  0x31   : > { %s340_s16 = sadd.s32 (%p1281_p3), %s1055_s14, %s1054_s12 }
  0x32   : > { %s1056_s17 = sshll.u32 (%p1281_p3), %s340_s16, 3 }
  0x33   : > { %s342_s20 = scalar_lea.vmem %s1572_s2, %s1056_s17 }
  0x34   : > { %v355_v16 = vld [vmem:[%s342_s20] sm:$0xff]  ;;  %v357_v17 = vld [vmem:[%s342_s20 + $0x8] sm:$0xff]  ;;  %v359_v18 = vld [vmem:[%s342_s20 + $0x10] sm:$0xff] }
  0x35   : > { %356 = vst [vmem:[%s337_s21] sm:$0xff] %v355_v16  ;;  %v361_v19 = vld [vmem:[%s342_s20 + $0x18] sm:$0xff]  ;;  %v363_v20 = vld [vmem:[%s342_s20 + $0x40] sm:$0xff]  ;;  %v365_v21 = vld [vmem:[%s342_s20 + $0x48] sm:$0xff] }
  0x36   : > { %358 = vst [vmem:[%s337_s21 + $0x8] sm:$0xff] %v357_v17  ;;  %v367_v22 = vld [vmem:[%s342_s20 + $0x50] sm:$0xff]  ;;  %v369_v23 = vld [vmem:[%s342_s20 + $0x58] sm:$0xff] }
  0x37   : > { %360 = vst [vmem:[%s337_s21 + $0x10] sm:$0xff] %v359_v18 }
  0x38   : > { %362 = vst [vmem:[%s337_s21 + $0x18] sm:$0xff] %v361_v19 }
  0x39   : > { %364 = vst [vmem:[%s337_s21 + $0x20] sm:$0xff] %v363_v20 }
  0x3a   : > { %366 = vst [vmem:[%s337_s21 + $0x28] sm:$0xff] %v365_v21 }
  0x3b   : > { %368 = vst [vmem:[%s337_s21 + $0x30] sm:$0xff] %v367_v22 }
  0x3c   : > { %370 = vst [vmem:[%s337_s21 + $0x38] sm:$0xff] %v369_v23 }
  0x3d PF: > { %p1057_p7 = scmp.ge.s32.totalorder %s1193_s30, 1  ;;  %p375_p8 = scmp.lt.s32.totalorder %s1193_s30, 5 }
  0x3f   : > { %p376_p9 = pnand %p1057_p7, %p375_p8 }
  0x40   : > { %s382_s10 = sand.u32 (!%p376_p9), 1, %s1169_s24   ;;  %p438_p10 = scmp.lt.s32.totalorder (!%p376_p9), %s1181_s27, 1 }
  0x41   : > { %379 = sbr.rel (%p376_p9) target bundleno = 388 (0x184), region = 97  ;;  %s1058_s22 = sshll.u32 (!%p376_p9), %s382_s10, 6 }
  0x42   : > { %p443_p11 = scmp.eq.s32.totalorder (!%p376_p9), %s1181_s27, 0  ;;  %p444_p12 = scmp.eq.s32.totalorder (!%p376_p9), %s1177_s26, 0 }
  0x43   : > { %s1332_s14 = scalar_lea.vmem (!%p376_p9), [#allocation2], %s1058_s22  ;;  %s1334_s16 = scalar_lea.vmem (!%p376_p9), [#allocation3], %s1058_s22 }
  0x44   : > { %p445_p13 = pnand (!%p376_p9), %p444_p12, %p443_p11  ;;  %s1336_s17 = scalar_lea.vmem (!%p376_p9), [#allocation4], %s1058_s22 }
  0x46   : > { %s1592_s27 = smov (!%p438_p10, %s1181_s27), 1  ;;  %448 = sbr.rel (%p445_p13) target bundleno = 78 (0x4e), region = 113 }
  0x47   : > { %s1078_s23 = sshll.u32 %s1592_s27, 4 }
  0x48   : > { %s1330_s13 = scalar_lea.vmem %s1577_s7, %s1078_s23 }
  0x4b   : > { %vm449_vm0 = vcmask 19456   ;;  %v1195_v24 = vmov 0.0  }
  0x4c   : > { %450 = vst.msk [vmem:[%s1575_s5] sm:$0xf] %vm449_vm0, %v1195_v24 }
  0x4d   : > { %451 = vst.msk [vmem:[%s1576_s6] sm:$0xf] %vm449_vm0, %v1195_v24 }
  0x4e PF: > { %p1063_p0 = scmp.ne.s32.totalorder %s1177_s26, 0 }
  0x50   : > { %454 = sbr.rel (%p1063_p0) target bundleno = 88 (0x58), region = 117 }
  0x55   : > { %vm455_vm1 = vcmask 23552   ;;  %v1196_v25 = vmov 0.0  }
  0x56   : > { %456 = vst.msk [vmem:[%s1330_s13] sm:$0xff] %vm455_vm1, %v1196_v25 }
  0x57   : > { %457 = vst.msk [vmem:[%s1330_s13 + $0x8] sm:$0xff] %vm455_vm1, %v1196_v25 }
  0x58 PF: > { %v1348_v26 = vld [vmem:[%s1332_s14 + $0x20] sm:$0xff]  ;;  %v1354_v30 = vld [vmem:[%s1332_s14 + $0x28] sm:$0xff]  ;;  %v1197_v33 = vmov 0   ;;  %v1360_v35 = vld [vmem:[%s1332_s14 + $0x30] sm:$0xff]  ;;  %vm530_vm2 = vcmask 130048   ;;  %vm615_vm3 = vcmask 1043456  }
  0x59   : > { %v470_v27 = vld [vmem:[%s1334_s16 + $0x20] sm:$0xff]  ;;  %v471_v31 = vld [vmem:[%s1334_s16 + $0x28] sm:$0xff]  ;;  %1138 = vset.pattern.permute.xlu0 %v1197_v33  ;;  %v472_v36 = vld [vmem:[%s1334_s16 + $0x30] sm:$0xff]  ;;  %vm522_vm4 = vcmask 7168   ;;  %vm666_vm5 = vcmask 15368   ;;  %vm626_vm6 = vcmask 3072  }
  0x5a   : > { %v478_v28 = vld [vmem:[%s1336_s17 + $0x20] sm:$0xff]  ;;  %v486_v29 = vadd.f32 %v470_v27, %v1348_v26  ;;  %v479_v32 = vld [vmem:[%s1336_s17 + $0x28] sm:$0xff]  ;;  %v487_v34 = vadd.f32 %v471_v31, %v1354_v30  ;;  %v480_v37 = vld [vmem:[%s1336_s17 + $0x30] sm:$0xff]  ;;  %v488_v39 = vadd.f32 %v472_v36, %v1360_v35  ;;  %vm760_vm7 = vcmask 11272  }
  0x5b   : > { %v1368_v40 = vld [vmem:[%s1332_s14 + $0x38] sm:$0xff]  ;;  %v1374_v45 = vld [vmem:[%s1332_s14] sm:$0xff]  ;;  %v1381_v51 = vld [vmem:[%s1332_s14 + $0x8] sm:$0xff]  ;;  %vm800_vm8 = vcmask 23568   ;;  %vm894_vm9 = vcmask 19472  }
  0x5c   : > { %v1364_v38 = vadd.f32 %v486_v29, %v478_v28  ;;  %v473_v41 = vld [vmem:[%s1334_s16 + $0x38] sm:$0xff]  ;;  %v495_v43 = vadd.f32 %v487_v34, %v479_v32  ;;  %v466_v46 = vld [vmem:[%s1334_s16] sm:$0xff]  ;;  %v496_v49 = vadd.f32 %v488_v39, %v480_v37  ;;  %v467_v52 = vld [vmem:[%s1334_s16 + $0x8] sm:$0xff] }
  0x5d   : > { %v481_v42 = vld [vmem:[%s1336_s17 + $0x38] sm:$0xff]  ;;  %v489_v44 = vadd.f32 %v473_v41, %v1368_v40  ;;  %v474_v47 = vld [vmem:[%s1336_s17] sm:$0xff]  ;;  %v482_v50 = vadd.f32 %v466_v46, %v1374_v45  ;;  %v475_v53 = vld [vmem:[%s1336_s17 + $0x8] sm:$0xff]  ;;  %v483_v56 = vadd.f32 %v467_v52, %v1381_v51 }
  0x5e   : > { %v504_v48 = vsub.f32 %v1364_v38, %v478_v28  ;;  %v505_v54 = vsub.f32 %v495_v43, %v479_v32  ;;  %v1387_v57 = vld [vmem:[%s1332_s14 + $0x10] sm:$0xff]  ;;  %v648_v60 = vsub.f32 %v1364_v38, %v470_v27  ;;  %v506_v61 = vsub.f32 %v496_v49, %v480_v37  ;;  %v461_v0 = vld [vmem:[%s1332_s14 + $0x18] sm:$0xff]  ;;  %v498_v9 = vld [vmem:[%s1573_s3] sm:$0xf] }
  0x5f   : > { %v497_v55 = vadd.f32 %v489_v44, %v481_v42  ;;  %v468_v58 = vld [vmem:[%s1334_s16 + $0x10] sm:$0xff]  ;;  %v490_v62 = vadd.f32 %v482_v50, %v474_v47  ;;  %v469_v1 = vld [vmem:[%s1334_s16 + $0x18] sm:$0xff]  ;;  %v649_v3 = vsub.f32 %v495_v43, %v471_v31  ;;  %v491_v5 = vadd.f32 %v483_v56, %v475_v53 }
  0x60   : > { %v476_v59 = vld [vmem:[%s1336_s17 + $0x10] sm:$0xff]  ;;  %548 = vmatpush.msra.mxu0 %v504_v48  ;;  %v484_v63 = vadd.f32 %v468_v58, %v1387_v57  ;;  %v477_v2 = vld [vmem:[%s1336_s17 + $0x18] sm:$0xff]  ;;  %568 = vmatpush.msra.mxu1 %v505_v54  ;;  %v485_v6 = vadd.f32 %v469_v1, %v461_v0  ;;  %v650_v14 = vsub.f32 %v496_v49, %v472_v36 }
  0x61   : > { %v507_v4 = vsub.f32 %v497_v55, %v481_v42  ;;  %588 = vmatpush.msra.mxu2 %v506_v61  ;;  %v1396_v7 = vsub.f32 %v490_v62, %v474_v47  ;;  %v1401_v10 = vadd.f32 %v649_v3, %v648_v60  ;;  %v501_v11 = vsub.f32 %v491_v5, %v475_v53 }
  0x62   : > { %v492_v8 = vadd.f32 %v484_v63, %v476_v59  ;;  %v493_v12 = vadd.f32 %v485_v6, %v477_v2  ;;  %v644_v15 = vsub.f32 %v490_v62, %v466_v46  ;;  %v645_v16 = vsub.f32 %v491_v5, %v467_v52 }
  0x63   : > { %608 = vmatpush.msra.mxu3 %v507_v4  ;;  %549 = vmatpush.msra.mxu0 %v1396_v7  ;;  %v651_v18 = vsub.f32 %v497_v55, %v473_v41  ;;  %v515_v21 = vadd.f32 %v505_v54, %v504_v48  ;;  %v1410_v23 = vsub.f32 %v1364_v38, %v1348_v26  ;;  %v499_v26 = vld [vmem:[%s1574_s4] sm:$0xf] }
  0x64   : > { %v502_v13 = vsub.f32 %v492_v8, %v476_v59  ;;  %569 = vmatpush.msra.mxu1 %v501_v11  ;;  %v503_v17 = vsub.f32 %v493_v12, %v477_v2  ;;  %1064 = vmatmul.msk.f32.vlgmr.msra.gmra.mxu0 %vm530_vm2, %v498_v9  ;;  %v646_v19 = vsub.f32 %v492_v8, %v468_v58  ;;  %v509_v2 = vld [vmem:[%s1330_s13 + $0x8] sm:$0xff] }
  0x65   : > { %1065 = vmatmul.msk.f32.vlgmr.msra.gmra.mxu1 %vm530_vm2, %v498_v9  ;;  %v654_v20 = vadd.f32 %v645_v16, %v644_v15  ;;  %v647_v22 = vsub.f32 %v493_v12, %v469_v1  ;;  %683 = vmatpush.msrb.mxu0 %v648_v60  ;;  %v1413_v24 = vsub.f32 %v495_v43, %v1354_v30 }
  0x66   : > { %589 = vmatpush.msra.mxu2 %v502_v13  ;;  %609 = vmatpush.msra.mxu3 %v503_v17  ;;  %v1416_v25 = vsub.f32 %v496_v49, %v1360_v35  ;;  %v1419_v27 = vsub.f32 %v497_v55, %v1368_v40  ;;  %v516_v28 = vadd.f32 %v515_v21, %v506_v61 }
  0x67   : > { %1066 = vmatmul.msk.f32.vlgmr.msra.gmra.mxu2 %vm530_vm2, %v498_v9  ;;  %1067 = vmatmul.msk.f32.vlgmr.msra.gmra.mxu3 %vm530_vm2, %v498_v9  ;;  %v1428_v29 = vsub.f32 %v490_v62, %v1374_v45  ;;  %v1431_v30 = vsub.f32 %v491_v5, %v1381_v51  ;;  %v1436_v31 = vsub.f32 %v492_v8, %v1387_v57 }
  0x68   : > { %723 = vmatpush.msrb.mxu2 %v650_v14  ;;  %743 = vmatpush.msrb.mxu3 %v651_v18  ;;  %v1438_v32 = vsub.f32 %v493_v12, %v461_v0  ;;  %v517_v33 = vadd.f32 %v516_v28, %v507_v4  ;;  %v510_v34 = vadd.f32 %v501_v11, %v1396_v7 }
  0x69   : > { %703 = vmatpush.msrb.mxu1 %v649_v3  ;;  %684 = vmatpush.msrb.mxu0 %v644_v15  ;;  %v660_v37 = vadd.f32 %v1401_v10, %v650_v14  ;;  %v655_v39 = vadd.f32 %v654_v20, %v646_v19 }
  0x6a   : > { %724 = vmatpush.msrb.mxu2 %v646_v19  ;;  %744 = vmatpush.msrb.mxu3 %v647_v22  ;;  %v511_v35 = vadd.f32 %v510_v34, %v502_v13 }
  0x6b   : > { %704 = vmatpush.msrb.mxu1 %v645_v16  ;;  %817 = vmatpush.msra.mxu0 %v1410_v23  ;;  %v661_v38 = vadd.f32 %v660_v37, %v651_v18  ;;  %v656_v40 = vadd.f32 %v655_v39, %v647_v22  ;;  %v788_v39 = vadd.f32 %v1431_v30, %v1428_v29 }
  0x6c   : > { %1068 = vmatmul.msk.f32.vlgmr.msrb.gmra.mxu0 %vm530_vm2, %v498_v9  ;;  %857 = vmatpush.msra.mxu2 %v1416_v25  ;;  %v512_v36 = vadd.f32 %v511_v35, %v503_v17 }
  0x6d   : > { %837 = vmatpush.msra.mxu1 %v1413_v24  ;;  %877 = vmatpush.msra.mxu3 %v1419_v27 }
  0x6e   : > { %1069 = vmatmul.msk.f32.vlgmr.msrb.gmra.mxu1 %vm530_vm2, %v498_v9  ;;  %527 = vperm.xlu0 %1138, %v499_v26  }
  0x6f   : > { %1070 = vmatmul.msk.f32.vlgmr.msrb.gmra.mxu2 %vm530_vm2, %v498_v9  ;;  %1071 = vmatmul.msk.f32.vlgmr.msrb.gmra.mxu3 %vm530_vm2, %v498_v9 }
  0x70   : > { %818 = vmatpush.msra.mxu0 %v1428_v29  ;;  %838 = vmatpush.msra.mxu1 %v1431_v30  ;;  %v789_v29 = vadd.f32 %v788_v39, %v1436_v31 }
  0x71   : > { %858 = vmatpush.msra.mxu2 %v1436_v31  ;;  %878 = vmatpush.msra.mxu3 %v1438_v32 }
  0x72   : > { %518 = vadd.xlane.f32.xlu1 %v517_v33  ;;  %657 = vadd.xlane.f32.xlu2 %v656_v40  ;;  %v793_v40 = vadd.f32 %v1413_v24, %v1410_v23 }
  0x74   : > { %1072 = vmatmul.msk.f32.vlgmr.msra.gmra.mxu0 %vm530_vm2, %v498_v9  ;;  %v794_v30 = vadd.f32 %v793_v40, %v1416_v25 }
  0x76   : > { %1073 = vmatmul.msk.f32.vlgmr.msra.gmra.mxu1 %vm530_vm2, %v498_v9 }
  0x77   : > { %1074 = vmatmul.msk.f32.vlgmr.msra.gmra.mxu2 %vm530_vm2, %v498_v9  ;;  %1075 = vmatmul.msk.f32.vlgmr.msra.gmra.mxu3 %vm530_vm2, %v498_v9 }
  0x7a   : > { %662 = vadd.xlane.f32.xlu1 %v661_v38 }
  0x98   : > { %513 = vadd.xlane.f32.xlu0 %v512_v36 }
  0xe0   : > { %v1453_v42 = vpop.permute.xlu0 %527 }
  0xe1   : > { %v551_v41 = vpop.f32.mrf.mxu0 }
  0xe2   : > { %v571_v43 = vpop.f32.mrf.mxu1  ;;  %v552_v44 = vadd.f32 %v551_v41, %v1453_v42 }
  0xe3   : > { %v572_v45 = vadd.f32 %v571_v43, %v1453_v42 }
  0xe4   : > { %v629_v46 = vmul.f32 %v552_v44, %v552_v44  ;;  %v616_v48 = vsel %vm615_vm3, %v552_v44, 0.0 }
  0xe5   : > { %v630_v47 = vmul.f32 %v572_v45, %v572_v45  ;;  %v617_v49 = vsel %vm615_vm3, %v572_v45, 0.0  ;;  %v519_v3 = vpop.xlane.xlu1 %518 }
  0xe6   : > { %v633_v50 = vsel %vm615_vm3, %v629_v46, 0.0  ;;  %v618_v54 = vadd.f32 %v617_v49, %v616_v48  ;;  %v521_v13 = vadd.f32 %v519_v3, %v509_v2 }
  0xe7   : > { %v634_v51 = vsel %vm615_vm3, %v630_v47, 0.0 }
  0xe8   : > { %v635_v61 = vadd.f32 %v634_v51, %v633_v50  ;;  %524 = vst.msk [vmem:[%s1330_s13 + $0x8] sm:$0xff] %vm522_vm4, %v521_v13 }
  0xe9   : > { %v686_v53 = vpop.f32.mrf.mxu0 }
  0xea   : > { %v591_v52 = vpop.f32.mrf.mxu2  ;;  %v611_v56 = vpop.f32.mrf.mxu3  ;;  %v687_v58 = vadd.f32 %v686_v53, %v1453_v42  ;;  %v790_v53 = vadd.f32 %v789_v29, %v1438_v32 }
  0xeb   : > { %v592_v55 = vadd.f32 %v591_v52, %v1453_v42  ;;  %v706_v57 = vpop.f32.mrf.mxu1  ;;  %v612_v59 = vadd.f32 %v611_v56, %v1453_v42 }
  0xec   : > { %v707_v60 = vadd.f32 %v706_v57, %v1453_v42  ;;  %v763_v5 = vmul.f32 %v687_v58, %v687_v58  ;;  %v750_v11 = vsel %vm615_vm3, %v687_v58, 0.0 }
  0xed   : > { %v619_v62 = vsel %vm615_vm3, %v592_v55, 0.0  ;;  %v631_v63 = vmul.f32 %v592_v55, %v592_v55  ;;  %v632_v0 = vmul.f32 %v612_v59, %v612_v59  ;;  %v621_v6 = vsel %vm615_vm3, %v612_v59, 0.0 }
  0xee   : > { %v620_v1 = vadd.f32 %v619_v62, %v618_v54  ;;  %v764_v4 = vmul.f32 %v707_v60, %v707_v60  ;;  %v751_v10 = vsel %vm615_vm3, %v707_v60, 0.0  ;;  %v767_v17 = vsel %vm615_vm3, %v763_v5, 0.0  ;;  %v663_v5 = vpop.xlane.xlu1 %662 }
  0xef   : > { %v636_v7 = vsel %vm615_vm3, %v631_v63, 0.0  ;;  %v638_v12 = vsel %vm615_vm3, %v632_v0, 0.0  ;;  %v752_v20 = vadd.f32 %v751_v10, %v750_v11  ;;  %v795_v54 = vadd.f32 %v794_v30, %v1419_v27  ;;  %v614_v10 = vld [vmem:[%s1575_s5] sm:$0xf] }
  0xf0   : > { %v622_v8 = vadd.f32 %v621_v6, %v620_v1  ;;  %v637_v9 = vadd.f32 %v636_v7, %v635_v61  ;;  %v768_v16 = vsel %vm615_vm3, %v764_v4, 0.0  ;;  %v508_v1 = vld [vmem:[%s1330_s13] sm:$0xff]  ;;  %v653_v4 = vld [vmem:[%s1330_s13 + $0x8] sm:$0xff] }
  0xf1   : > { %v820_v33 = vpop.f32.mrf.mxu0  ;;  %v769_v36 = vadd.f32 %v768_v16, %v767_v17  ;;  %v665_v6 = vadd.f32 %v663_v5, %v653_v4 }
  0xf2   : > { %v726_v14 = vpop.f32.mrf.mxu2  ;;  %623 = vadd.xlane.f32.xlu1 %v622_v8  ;;  %v639_v15 = vadd.f32 %v638_v12, %v637_v9  ;;  %v746_v19 = vpop.f32.mrf.mxu3  ;;  %v821_v41 = vadd.f32 %v820_v33, %v1453_v42  ;;  %v628_v12 = vld [vmem:[%s1576_s6] sm:$0xf] }
  0xf3   : > { %v727_v18 = vadd.f32 %v726_v14, %v1453_v42  ;;  %v747_v21 = vadd.f32 %v746_v19, %v1453_v42  ;;  %v840_v34 = vpop.f32.mrf.mxu1  ;;  %668 = vst.msk [vmem:[%s1330_s13 + $0x8] sm:$0xff] %vm666_vm5, %v665_v6  ;;  %v658_v8 = vpop.xlane.xlu2 %657 }
  0xf4   : > { %640 = vadd.xlane.f32.xlu2 %v639_v15  ;;  %v841_v43 = vadd.f32 %v840_v34, %v1453_v42  ;;  %v897_v23 = vmul.f32 %v821_v41, %v821_v41  ;;  %v884_v52 = vsel %vm615_vm3, %v821_v41, 0.0 }
  0xf5   : > { %v753_v22 = vsel %vm615_vm3, %v727_v18, 0.0  ;;  %v765_v28 = vmul.f32 %v727_v18, %v727_v18  ;;  %v766_v26 = vmul.f32 %v747_v21, %v747_v21  ;;  %v755_v44 = vsel %vm615_vm3, %v747_v21, 0.0 }
  0xf6   : > { %v754_v35 = vadd.f32 %v753_v22, %v752_v20  ;;  %v898_v24 = vmul.f32 %v841_v43, %v841_v43  ;;  %v901_v55 = vsel %vm615_vm3, %v897_v23, 0.0  ;;  %v885_v56 = vsel %vm615_vm3, %v841_v43, 0.0 }
  0xf7   : > { %v770_v37 = vsel %vm615_vm3, %v765_v28, 0.0  ;;  %v772_v45 = vsel %vm615_vm3, %v766_v26, 0.0  ;;  %v886_v59 = vadd.f32 %v885_v56, %v884_v52 }
  0xf8   : > { %v771_v38 = vadd.f32 %v770_v37, %v769_v36  ;;  %v756_v47 = vadd.f32 %v755_v44, %v754_v35  ;;  %v902_v57 = vsel %vm615_vm3, %v898_v24, 0.0 }
  0xf9   : > { %v903_v32 = vadd.f32 %v902_v57, %v901_v55 }
  0xfa   : > { %v860_v46 = vpop.f32.mrf.mxu2  ;;  %v773_v48 = vadd.f32 %v772_v45, %v771_v38  ;;  %v880_v50 = vpop.f32.mrf.mxu3  ;;  %v787_v26 = vld [vmem:[%s1330_s13 + $0x8] sm:$0xff] }
  0xfb   : > { %v861_v49 = vadd.f32 %v860_v46, %v1453_v42  ;;  %v881_v31 = vadd.f32 %v880_v50, %v1453_v42 }
  0xfc   : > { %757 = vadd.xlane.f32.xlu2 %v756_v47  ;;  %774 = vadd.xlane.f32.xlu1 %v773_v48 }
  0xfd   : > { %v899_v51 = vmul.f32 %v861_v49, %v861_v49  ;;  %v887_v25 = vsel %vm615_vm3, %v861_v49, 0.0  ;;  %v900_v27 = vmul.f32 %v881_v31, %v881_v31  ;;  %v889_v62 = vsel %vm615_vm3, %v881_v31, 0.0 }
  0xfe   : > { %v888_v60 = vadd.f32 %v887_v25, %v886_v59 }
  0xff   : > { %v904_v58 = vsel %vm615_vm3, %v899_v51, 0.0  ;;  %v906_v63 = vsel %vm615_vm3, %v900_v27, 0.0 }
 0x100   : > { %v905_v61 = vadd.f32 %v904_v58, %v903_v32  ;;  %v890_v42 = vadd.f32 %v889_v62, %v888_v60 }
 0x102   : > { %v907_v0 = vadd.f32 %v906_v63, %v905_v61 }
 0x104   : > { %791 = vadd.xlane.f32.xlu2 %v790_v53  ;;  %796 = vadd.xlane.f32.xlu1 %v795_v54 }
 0x10b   : > { %v514_v2 = vpop.xlane.xlu0 %513 }
 0x10c   : > { %891 = vadd.xlane.f32.xlu2 %v890_v42  ;;  %908 = vadd.xlane.f32.xlu1 %v907_v0  ;;  %v520_v3 = vadd.f32 %v514_v2, %v508_v1 }
 0x10e   : > { %523 = vst.msk [vmem:[%s1330_s13] sm:$0xff] %vm522_vm4, %v520_v3 }
 0x115   : > { %v652_v7 = vld [vmem:[%s1330_s13] sm:$0xff] }
 0x116   : > { %v664_v9 = vadd.f32 %v658_v8, %v652_v7 }
 0x118   : > { %667 = vst.msk [vmem:[%s1330_s13] sm:$0xff] %vm666_vm5, %v664_v9 }
 0x11f   : > { %v786_v28 = vld [vmem:[%s1330_s13] sm:$0xff] }
 0x165   : > { %v624_v11 = vpop.xlane.xlu1 %623 }
 0x166   : > { %v625_v13 = vadd.f32 %v624_v11, %v614_v10 }
 0x167   : > { %v641_v14 = vpop.xlane.xlu2 %640 }
 0x168   : > { %627 = vst.msk [vmem:[%s1575_s5] sm:$0xf] %vm626_vm6, %v625_v13  ;;  %v642_v15 = vadd.f32 %v641_v14, %v628_v12 }
 0x16a   : > { %643 = vst.msk [vmem:[%s1576_s6] sm:$0xf] %vm626_vm6, %v642_v15 }
 0x16f   : > { %v758_v16 = vpop.xlane.xlu2 %757  ;;  %v749_v17 = vld [vmem:[%s1575_s5] sm:$0xf]  ;;  %v775_v18 = vpop.xlane.xlu1 %774 }
 0x170   : > { %v759_v19 = vadd.f32 %v758_v16, %v749_v17 }
 0x171   : > { %v762_v20 = vld [vmem:[%s1576_s6] sm:$0xf] }
 0x172   : > { %761 = vst.msk [vmem:[%s1575_s5] sm:$0xf] %vm760_vm7, %v759_v19  ;;  %v776_v21 = vadd.f32 %v775_v18, %v762_v20 }
 0x174   : > { %777 = vst.msk [vmem:[%s1576_s6] sm:$0xf] %vm760_vm7, %v776_v21 }
 0x177   : > { %v792_v22 = vpop.xlane.xlu2 %791  ;;  %v797_v33 = vpop.xlane.xlu1 %796 }
 0x178   : > { %v798_v34 = vadd.f32 %v792_v22, %v786_v28  ;;  %v799_v35 = vadd.f32 %v797_v33, %v787_v26 }
 0x179   : > { %v883_v37 = vld [vmem:[%s1575_s5] sm:$0xf] }
 0x17a   : > { %801 = vst.msk [vmem:[%s1330_s13] sm:$0xff] %vm800_vm8, %v798_v34 }
 0x17b   : > { %802 = vst.msk [vmem:[%s1330_s13 + $0x8] sm:$0xff] %vm800_vm8, %v799_v35  ;;  %v896_v38 = vld [vmem:[%s1576_s6] sm:$0xf] }
 0x17f   : > { %v892_v36 = vpop.xlane.xlu2 %891  ;;  %v909_v39 = vpop.xlane.xlu1 %908 }
 0x180   : > { %v893_v40 = vadd.f32 %v892_v36, %v883_v37  ;;  %v910_v41 = vadd.f32 %v909_v39, %v896_v38 }
 0x182   : > { %895 = vst.msk [vmem:[%s1575_s5] sm:$0xf] %vm894_vm9, %v893_v40 }
 0x183   : > { %911 = vst.msk [vmem:[%s1576_s6] sm:$0xf] %vm894_vm9, %v910_v41 }
 0x184 PF: > { %s18_s30 = sadd.s32 1, %s1193_s30   ;;  %s1579_s24 = smov %s1173_s25 }
 0x185   : > { %p15_p1 = scmp.ge.s32.totalorder %s18_s30, 6   ;;  %s1580_s25 = smov %s1293_s15 }
 0x186   : > { %s1581_s26 = smov %s1185_s28  ;;  %s1582_s27 = smov %s1189_s29 }
 0x187   : > { %s1583_s28 = smov %s1586_s8  ;;  %s1584_s29 = smov %s1590_s9 }
 0x188   :  { %17 = sbr.rel (!%p15_p1) target bundleno = 4 (0x4), region = 184 }

// kernel: aff_forward.4
= control target key start
LH: loop header
LB: loop body
LE: loop exit
PB: predicated region body
PF: predicated region fallthrough
CT: control target
= control target key end

     0   :  { %s1674_s30 = smov 0   ;;  %s1676_s10 = smov 0   ;;  %s2205_s0 = inlined_call_operand.vmem [shape: f32[2,16,1024], index: 0, kind: input, shape index: {}]   ;;  %s2206_s1 = inlined_call_operand.vmem [shape: f32[2,16,1024], index: 1, kind: input, shape index: {}]   ;;  %s2207_s2 = inlined_call_operand.vmem [shape: f32[2,16,1024], index: 2, kind: input, shape index: {}]   ;;  %s2208_s3 = inlined_call_operand.vmem [shape: f32[4,16], index: 3, kind: input, shape index: {}]   ;;  %s2209_s4 = inlined_call_operand.vmem [shape: f32[4,3], index: 4, kind: input, shape index: {}]   ;;  %s2210_s5 = inlined_call_operand.vmem [shape: f32[4,3], index: 5, kind: input, shape index: {}]   ;;  %s2211_s6 = inlined_call_operand.vmem [shape: f32[16,4], index: 6, kind: input, shape index: {}]   ;;  %s2212_s7 = inlined_call_operand.vmem [shape: f32[16,1], index: 7, kind: input, shape index: {}]   ;;  %s2213_s8 = inlined_call_operand.vmem [shape: f32[16,3], index: 8, kind: output, shape index: {0}]   ;;  %s2214_s9 = inlined_call_operand.vmem [shape: f32[16,3], index: 9, kind: output, shape index: {1}]  }
   0x1   :  { %s1678_s11 = smov 0   ;;  %s1680_s12 = smov 0  }
   0x2   :  { %s1682_s13 = smov 0   ;;  %s1684_s14 = smov 0  }
   0x3   :  { %s1686_s15 = smov 0  }
   0x4 LB: > { %s29_s16 = sadd.s32 1, %s1610_s13  ;;  %s32_s17 = sadd.s32 1, %s1614_s14  ;;  %s1618_s15 = sphi %s1686_s15, %s20_s15   ;;  %s1614_s14 = sphi %s1684_s14, %s2221_s14   ;;  %s1610_s13 = sphi %s1682_s13, %s2220_s13   ;;  %s1606_s12 = sphi %s1680_s12, %s2219_s12   ;;  %s1602_s11 = sphi %s1678_s11, %s2218_s11   ;;  %s1598_s10 = sphi %s1676_s10, %s2217_s10   ;;  %s1594_s30 = sphi %s1674_s30, %s2216_s30  }
   0x5   : > { %p30_p0 = scmp.ge.s32.totalorder %s29_s16, 2  ;;  %p48_p1 = scmp.ne.s32.totalorder %s1598_s10, %s1594_s30 }
   0x6   : > { %p49_p2 = scmp.eq.s32.totalorder %s1618_s15, 0  ;;  %s41_s22 = sadd.s32 1, %s1598_s10 }
   0x7   : > { %s2223_s16 = smov (%p30_p0, %s29_s16), 0  ;;  %s2225_s17 = smov (!%p30_p0, %s32_s17), %s1614_s14 }
   0x8   : > { %p1717_p3 = por %p49_p2, %p48_p1  ;;  %p34_p4 = scmp.ge.s32.totalorder %s2225_s17, 2 }
   0x9   : > { %s37_s19 = ssub.s32 %s1610_s13, %s2223_s16  ;;  %p1432_p6 = scmp.ge.s32.totalorder %s1618_s15, 4 }
   0xa   : > { %s2227_s17 = smov (%p34_p4, %s2225_s17), 0 }
   0xb   : > { %s36_s20 = ssub.s32 %s1614_s14, %s2227_s17  ;;  %292 = sbr.rel (%p1432_p6) target bundleno = 61 (0x3d), region = 36 }
   0xc   : > { %s38_s21 = sor.u32 %s37_s19, %s36_s20 }
   0xd   : > { %p39_p5 = scmp.eq.s32.totalorder %s38_s21, 0 }
   0xf   : > { %s1729_s23 = scalar_select %p39_p5, %s1598_s10, %s41_s22  }
  0x10   : > { %295 = sbr.rel (!%p1717_p3) target bundleno = 31 (0x1f), region = 40  ;;  %s297_s24 = sand.u32 (%p1717_p3), 1, %s1598_s10  }
  0x11   : > { %s1434_s25 = sshll.u32 (%p1717_p3), %s1610_s13, 2  ;;  %s1433_s26 = sshll.u32 (%p1717_p3), %s297_s24, 6 }
  0x12   : > { %s1435_s27 = sshll.u32 (%p1717_p3), %s1614_s14, 4  ;;  %s299_s22 = scalar_lea.vmem (%p1717_p3), [#allocation2], %s1433_s26 }
  0x13   : > { %s302_s28 = sadd.s32 (%p1717_p3), %s1435_s27, %s1434_s25 }
  0x14   : > { %s1436_s29 = sshll.u32 (%p1717_p3), %s302_s28, 3 }
  0x15   : > { %s304_s21 = scalar_lea.vmem %s2205_s0, %s1436_s29 }
  0x16   : > { %v317_v0 = vld [vmem:[%s304_s21] sm:$0xff]  ;;  %v319_v1 = vld [vmem:[%s304_s21 + $0x8] sm:$0xff]  ;;  %v321_v2 = vld [vmem:[%s304_s21 + $0x10] sm:$0xff] }
  0x17   : > { %318 = vst [vmem:[%s299_s22] sm:$0xff] %v317_v0  ;;  %v323_v3 = vld [vmem:[%s304_s21 + $0x18] sm:$0xff]  ;;  %v325_v4 = vld [vmem:[%s304_s21 + $0x40] sm:$0xff]  ;;  %v327_v5 = vld [vmem:[%s304_s21 + $0x48] sm:$0xff] }
  0x18   : > { %320 = vst [vmem:[%s299_s22 + $0x8] sm:$0xff] %v319_v1  ;;  %v329_v6 = vld [vmem:[%s304_s21 + $0x50] sm:$0xff]  ;;  %v331_v7 = vld [vmem:[%s304_s21 + $0x58] sm:$0xff] }
  0x19   : > { %322 = vst [vmem:[%s299_s22 + $0x10] sm:$0xff] %v321_v2 }
  0x1a   : > { %324 = vst [vmem:[%s299_s22 + $0x18] sm:$0xff] %v323_v3 }
  0x1b   : > { %326 = vst [vmem:[%s299_s22 + $0x20] sm:$0xff] %v325_v4 }
  0x1c   : > { %328 = vst [vmem:[%s299_s22 + $0x28] sm:$0xff] %v327_v5 }
  0x1d   : > { %330 = vst [vmem:[%s299_s22 + $0x30] sm:$0xff] %v329_v6 }
  0x1e   : > { %332 = vst [vmem:[%s299_s22 + $0x38] sm:$0xff] %v331_v7 }
  0x1f PF: > { %338 = sbr.rel (!%p1717_p3) target bundleno = 46 (0x2e), region = 63  ;;  %s340_s24 = sand.u32 (%p1717_p3), 1, %s1598_s10  }
  0x20   : > { %s1438_s25 = sshll.u32 (%p1717_p3), %s1610_s13, 2  ;;  %s1437_s26 = sshll.u32 (%p1717_p3), %s340_s24, 6 }
  0x21   : > { %s1439_s27 = sshll.u32 (%p1717_p3), %s1614_s14, 4  ;;  %s342_s22 = scalar_lea.vmem (%p1717_p3), [#allocation3], %s1437_s26 }
  0x22   : > { %s345_s28 = sadd.s32 (%p1717_p3), %s1439_s27, %s1438_s25 }
  0x23   : > { %s1440_s29 = sshll.u32 (%p1717_p3), %s345_s28, 3 }
  0x24   : > { %s347_s21 = scalar_lea.vmem %s2206_s1, %s1440_s29 }
  0x25   : > { %v360_v8 = vld [vmem:[%s347_s21] sm:$0xff]  ;;  %v362_v9 = vld [vmem:[%s347_s21 + $0x8] sm:$0xff]  ;;  %v364_v10 = vld [vmem:[%s347_s21 + $0x10] sm:$0xff] }
  0x26   : > { %361 = vst [vmem:[%s342_s22] sm:$0xff] %v360_v8  ;;  %v366_v11 = vld [vmem:[%s347_s21 + $0x18] sm:$0xff]  ;;  %v368_v12 = vld [vmem:[%s347_s21 + $0x40] sm:$0xff]  ;;  %v370_v13 = vld [vmem:[%s347_s21 + $0x48] sm:$0xff] }
  0x27   : > { %363 = vst [vmem:[%s342_s22 + $0x8] sm:$0xff] %v362_v9  ;;  %v372_v14 = vld [vmem:[%s347_s21 + $0x50] sm:$0xff]  ;;  %v374_v15 = vld [vmem:[%s347_s21 + $0x58] sm:$0xff] }
  0x28   : > { %365 = vst [vmem:[%s342_s22 + $0x10] sm:$0xff] %v364_v10 }
  0x29   : > { %367 = vst [vmem:[%s342_s22 + $0x18] sm:$0xff] %v366_v11 }
  0x2a   : > { %369 = vst [vmem:[%s342_s22 + $0x20] sm:$0xff] %v368_v12 }
  0x2b   : > { %371 = vst [vmem:[%s342_s22 + $0x28] sm:$0xff] %v370_v13 }
  0x2c   : > { %373 = vst [vmem:[%s342_s22 + $0x30] sm:$0xff] %v372_v14 }
  0x2d   : > { %375 = vst [vmem:[%s342_s22 + $0x38] sm:$0xff] %v374_v15 }
  0x2e PF: > { %381 = sbr.rel (!%p1717_p3) target bundleno = 61 (0x3d), region = 86  ;;  %s383_s24 = sand.u32 (%p1717_p3), 1, %s1598_s10  }
  0x2f   : > { %s1442_s25 = sshll.u32 (%p1717_p3), %s1610_s13, 2  ;;  %s1441_s26 = sshll.u32 (%p1717_p3), %s383_s24, 6 }
  0x30   : > { %s1443_s27 = sshll.u32 (%p1717_p3), %s1614_s14, 4  ;;  %s385_s22 = scalar_lea.vmem (%p1717_p3), [#allocation4], %s1441_s26 }
  0x31   : > { %s388_s28 = sadd.s32 (%p1717_p3), %s1443_s27, %s1442_s25 }
  0x32   : > { %s1444_s29 = sshll.u32 (%p1717_p3), %s388_s28, 3 }
  0x33   : > { %s390_s21 = scalar_lea.vmem %s2207_s2, %s1444_s29 }
  0x34   : > { %v403_v16 = vld [vmem:[%s390_s21] sm:$0xff]  ;;  %v405_v17 = vld [vmem:[%s390_s21 + $0x8] sm:$0xff]  ;;  %v407_v18 = vld [vmem:[%s390_s21 + $0x10] sm:$0xff] }
  0x35   : > { %404 = vst [vmem:[%s385_s22] sm:$0xff] %v403_v16  ;;  %v409_v19 = vld [vmem:[%s390_s21 + $0x18] sm:$0xff]  ;;  %v411_v20 = vld [vmem:[%s390_s21 + $0x40] sm:$0xff]  ;;  %v413_v21 = vld [vmem:[%s390_s21 + $0x48] sm:$0xff] }
  0x36   : > { %406 = vst [vmem:[%s385_s22 + $0x8] sm:$0xff] %v405_v17  ;;  %v415_v22 = vld [vmem:[%s390_s21 + $0x50] sm:$0xff]  ;;  %v417_v23 = vld [vmem:[%s390_s21 + $0x58] sm:$0xff] }
  0x37   : > { %408 = vst [vmem:[%s385_s22 + $0x10] sm:$0xff] %v407_v18 }
  0x38   : > { %410 = vst [vmem:[%s385_s22 + $0x18] sm:$0xff] %v409_v19 }
  0x39   : > { %412 = vst [vmem:[%s385_s22 + $0x20] sm:$0xff] %v411_v20 }
  0x3a   : > { %414 = vst [vmem:[%s385_s22 + $0x28] sm:$0xff] %v413_v21 }
  0x3b   : > { %416 = vst [vmem:[%s385_s22 + $0x30] sm:$0xff] %v415_v22 }
  0x3c   : > { %418 = vst [vmem:[%s385_s22 + $0x38] sm:$0xff] %v417_v23 }
  0x3d PF: > { %p1445_p7 = scmp.ge.s32.totalorder %s1618_s15, 1  ;;  %p423_p8 = scmp.lt.s32.totalorder %s1618_s15, 5 }
  0x3f   : > { %p424_p9 = pnand %p1445_p7, %p423_p8 }
  0x40   : > { %s430_s18 = sand.u32 (!%p424_p9), 1, %s1594_s30   ;;  %p485_p10 = scmp.eq.s32.totalorder (!%p424_p9), %s1606_s12, 0 }
  0x41   : > { %427 = sbr.rel (%p424_p9) target bundleno = 813 (0x32d), region = 109  ;;  %s1446_s24 = sshll.u32 (!%p424_p9), %s430_s18, 6 }
  0x42   : > { %p486_p11 = scmp.eq.s32.totalorder (!%p424_p9), %s1602_s11, 0  ;;  %s1761_s25 = scalar_lea.vmem (!%p424_p9), [#allocation2], %s1446_s24 }
  0x43   : > { %s1763_s26 = scalar_lea.vmem (!%p424_p9), [#allocation3], %s1446_s24  ;;  %s1765_s27 = scalar_lea.vmem (!%p424_p9), [#allocation4], %s1446_s24 }
  0x44   : > { %p487_p12 = pnand (!%p424_p9), %p486_p11, %p485_p10 }
  0x46   : > { %490 = sbr.rel (%p487_p12) target bundleno = 80 (0x50), region = 125 }
  0x4b   : > { %vm491_vm0 = vcmask 23552   ;;  %v1620_v24 = vmov 0.0  }
  0x4c   : > { %492 = vst.msk [vmem:[%s2213_s8] sm:$0xff] %vm491_vm0, %v1620_v24 }
  0x4d   : > { %493 = vst.msk [vmem:[%s2213_s8 + $0x8] sm:$0xff] %vm491_vm0, %v1620_v24 }
  0x4e   : > { %494 = vst.msk [vmem:[%s2214_s9] sm:$0xff] %vm491_vm0, %v1620_v24 }
  0x4f   : > { %495 = vst.msk [vmem:[%s2214_s9 + $0x8] sm:$0xff] %vm491_vm0, %v1620_v24 }
  0x50 PF: > { %v633_v25 = vld [vmem:[%s2209_s4] sm:$0xf]  ;;  %v1621_v28 = vmov 0   ;;  %v1793_v31 = vld [vmem:[%s1761_s25 + $0x28] sm:$0xff]  ;;  %v1802_v35 = vld [vmem:[%s1761_s25 + $0x30] sm:$0xff]  ;;  %vm549_vm1 = vcmask 130048  }
  0x51   : > { %v1783_v26 = vld [vmem:[%s1761_s25 + $0x20] sm:$0xff]  ;;  %1559 = vset.pattern.permute.xlu0 %v1621_v28  ;;  %v1796_v32 = vld [vmem:[%s1763_s26 + $0x28] sm:$0xff]  ;;  %v1805_v36 = vld [vmem:[%s1763_s26 + $0x30] sm:$0xff]  ;;  %v1622_v23 = vmov 1   ;;  %vm674_vm2 = vcmask 1043456   ;;  %vm667_vm3 = vcmask 31744  }
  0x52   : > { %v1786_v27 = vld [vmem:[%s1763_s26 + $0x20] sm:$0xff]  ;;  %636 = vperm.xlu0 %1559, %v633_v25   ;;  %v517_v33 = vld [vmem:[%s1765_s27 + $0x28] sm:$0xff]  ;;  %v525_v34 = vadd.f32 %v1796_v32, %v1793_v31  ;;  %v518_v38 = vld [vmem:[%s1765_s27 + $0x30] sm:$0xff]  ;;  %v526_v39 = vadd.f32 %v1805_v36, %v1802_v35  ;;  %1560 = vset.pattern.permute.xlu1 %v1622_v23  ;;  %vm793_vm4 = vcmask 7168   ;;  %vm1050_vm5 = vcmask 15368  }
  0x53   : > { %v516_v29 = vld [vmem:[%s1765_s27 + $0x20] sm:$0xff]  ;;  %v524_v30 = vadd.f32 %v1786_v27, %v1783_v26  ;;  %v1813_v40 = vld [vmem:[%s1761_s25 + $0x38] sm:$0xff]  ;;  %v1837_v51 = vld [vmem:[%s1761_s25 + $0x8] sm:$0xff]  ;;  %vm1307_vm6 = vcmask 23568  }
  0x54   : > { %v1816_v41 = vld [vmem:[%s1763_s26 + $0x38] sm:$0xff]  ;;  %v1818_v42 = vadd.f32 %v525_v34, %v517_v33  ;;  %v1824_v45 = vld [vmem:[%s1761_s25] sm:$0xff]  ;;  %v1834_v50 = vadd.f32 %v526_v39, %v518_v38  ;;  %v1840_v52 = vld [vmem:[%s1763_s26 + $0x8] sm:$0xff] }
  0x55   : > { %v1807_v37 = vadd.f32 %v524_v30, %v516_v29  ;;  %v519_v43 = vld [vmem:[%s1765_s27 + $0x38] sm:$0xff]  ;;  %v527_v44 = vadd.f32 %v1816_v41, %v1813_v40  ;;  %v1827_v46 = vld [vmem:[%s1763_s26] sm:$0xff]  ;;  %v1851_v58 = vld [vmem:[%s1761_s25 + $0x10] sm:$0xff]  ;;  %v521_v6 = vadd.f32 %v1840_v52, %v1837_v51 }
  0x56   : > { %v546_v53 = vsub.f32 %v1818_v42, %v517_v33  ;;  %v825_v54 = vsub.f32 %v1818_v42, %v1796_v32  ;;  %v1082_v55 = vsub.f32 %v1818_v42, %v1793_v31  ;;  %v512_v57 = vld [vmem:[%s1765_s27] sm:$0xff]  ;;  %v1854_v59 = vld [vmem:[%s1763_s26 + $0x10] sm:$0xff]  ;;  %v547_v60 = vsub.f32 %v1834_v50, %v518_v38  ;;  %v513_v0 = vld [vmem:[%s1765_s27 + $0x8] sm:$0xff] }
  0x57   : > { %v545_v47 = vsub.f32 %v1807_v37, %v516_v29  ;;  %v824_v48 = vsub.f32 %v1807_v37, %v1786_v27  ;;  %v1081_v49 = vsub.f32 %v1807_v37, %v1783_v26  ;;  %v1847_v56 = vadd.f32 %v527_v44, %v519_v43  ;;  %v1865_v1 = vld [vmem:[%s1761_s25 + $0x18] sm:$0xff]  ;;  %v514_v7 = vld [vmem:[%s1765_s27 + $0x10] sm:$0xff]  ;;  %v643_v9 = vld [vmem:[%s2210_s5] sm:$0xf] }
  0x58   : > { %v826_v61 = vsub.f32 %v1834_v50, %v1805_v36  ;;  %v1083_v62 = vsub.f32 %v1834_v50, %v1802_v35  ;;  %v520_v63 = vadd.f32 %v1827_v46, %v1824_v45  ;;  %v1868_v2 = vld [vmem:[%s1763_s26 + $0x18] sm:$0xff]  ;;  %587 = vmatpush.msra.mxu1 %v546_v53  ;;  %607 = vmatpush.msra.mxu2 %v547_v60  ;;  %v1898_v17 = vld [vmem:[%s2208_s3] sm:$0xf]  ;;  %v540_v39 = vld [vmem:[%s2212_s7 + $0x8] sm:$0xff] }
  0x59   : > { %567 = vmatpush.msra.mxu0 %v545_v47  ;;  %v548_v3 = vsub.f32 %v1847_v56, %v519_v43  ;;  %v827_v4 = vsub.f32 %v1847_v56, %v1816_v41  ;;  %v1084_v5 = vsub.f32 %v1847_v56, %v1813_v40  ;;  %v515_v8 = vld [vmem:[%s1765_s27 + $0x18] sm:$0xff]  ;;  %v522_v11 = vadd.f32 %v1854_v59, %v1851_v58  ;;  %v539_v21 = vld [vmem:[%s2212_s7] sm:$0xff] }
  0x5a   : > { %v1882_v10 = vadd.f32 %v520_v63, %v512_v57  ;;  %v523_v12 = vadd.f32 %v1868_v2, %v1865_v1  ;;  %v1888_v13 = vadd.f32 %v521_v6, %v513_v0  ;;  %646 = vperm.xlu0 %1559, %v643_v9   ;;  %v908_v22 = vld [vmem:[%s2209_s4] sm:$0xf]  ;;  %v1623_v43 = vmov 2  }
  0x5b   : > { %627 = vmatpush.msra.mxu3 %v548_v3  ;;  %v1891_v15 = vadd.f32 %v522_v11, %v514_v7  ;;  %911 = vperm.xlu1 %1560, %v908_v22   ;;  %v918_v25 = vld [vmem:[%s2210_s5] sm:$0xf] }
  0x5c   : > { %v541_v14 = vsub.f32 %v1882_v10, %v512_v57  ;;  %v1893_v16 = vadd.f32 %v523_v12, %v515_v8  ;;  %v542_v18 = vsub.f32 %v1888_v13, %v513_v0  ;;  %v1165_v33 = vld [vmem:[%s2209_s4] sm:$0xf]  ;;  %1561 = vset.pattern.permute.xlu2 %v1623_v43  ;;  %v820_v0 = vsub.f32 %v1882_v10, %v1827_v46 }
  0x5d   : > { %v543_v19 = vsub.f32 %v1891_v15, %v514_v7  ;;  %1168 = vperm.xlu2 %1561, %v1165_v33   ;;  %v1930_v60 = vld [vmem:[%s2211_s6] sm:$0xff]  ;;  %v821_v7 = vsub.f32 %v1888_v13, %v1840_v52  ;;  %v1954_v52 = vld [vmem:[%s2211_s6 + $0x8] sm:$0xff]  ;;  %v822_v32 = vsub.f32 %v1891_v15, %v1854_v59 }
  0x5e   : > { %568 = vmatpush.msra.mxu0 %v541_v14  ;;  %v544_v20 = vsub.f32 %v1893_v16, %v515_v8  ;;  %588 = vmatpush.msra.mxu1 %v542_v18  ;;  %v1175_v8 = vld [vmem:[%s2210_s5] sm:$0xf] }
  0x5f   : > { %1449 = vmatmul.msk.f32.vlgmr.msra.gmra.mxu0 %vm549_vm1, %v1898_v17  ;;  %608 = vmatpush.msra.mxu2 %v543_v19  ;;  %v779_v50 = vld [vmem:[%s2213_s8] sm:$0xff] }
  0x60   : > { %628 = vmatpush.msra.mxu3 %v544_v20  ;;  %1450 = vmatmul.msk.f32.vlgmr.msra.gmra.mxu1 %vm549_vm1, %v1898_v17 }
  0x61   : > { %1451 = vmatmul.msk.f32.vlgmr.msra.gmra.mxu2 %vm549_vm1, %v1898_v17  ;;  %1452 = vmatmul.msk.f32.vlgmr.msra.gmra.mxu3 %vm549_vm1, %v1898_v17 }
  0x62   : > { %659 = vperm.xlu0 %1559, %v539_v21  }
  0x63   : > { %921 = vperm.xlu1 %1560, %v918_v25  }
  0x65   : > { %1178 = vperm.xlu2 %1561, %v1175_v8  }
  0x6a   : > { %1563 = vset.pattern.permute.xlu0 %v1623_v43 }
  0x6b   : > { %1562 = vset.pattern.permute.xlu1 %v1621_v28 }
  0x6c   : > { %664 = vperm.xlu1 %1562, %v540_v39  }
  0xb7   : > { %v2060_v35 = vpop.permute.xlu2 %1168 }
  0xbf   : > { %v2062_v40 = vpop.permute.xlu2 %1178 }
  0xc4   : > { %v637_v24 = vpop.permute.xlu0 %636 }
  0xcc   : > { %v647_v34 = vpop.permute.xlu0 %646 }
  0xcd   : > { %v1988_v36 = vpop.permute.xlu1 %911 }
  0xd5   : > { %v1990_v59 = vpop.permute.xlu1 %921 }
  0xdc   : > { %v570_v29 = vpop.f32.mrf.mxu0 }
  0xdd   : > { %v639_v30 = vmul.f32 %v637_v24, %v570_v29  ;;  %v590_v38 = vpop.f32.mrf.mxu1 }
  0xde   : > { %v640_v47 = vmul.f32 %v637_v24, %v590_v38  ;;  %v1996_v19 = vpop.permute.xlu1 %664 }
  0xdf   : > { %v649_v44 = vadd.f32 %v647_v34, %v639_v30 }
  0xe0   : > { %v650_v57 = vadd.f32 %v647_v34, %v640_v47 }
  0xe1   : > { %v653_v53 = vmax.f32 %v649_v44, 0.0 }
  0xe2   : > { %v654_v63 = vmax.f32 %v650_v57, 0.0 }
  0xe3   : > { %1453 = vmatpush.msk.msrb.mxu0 %vm674_vm2, %v653_v53 }
  0xe4   : > { %v610_v3 = vpop.f32.mrf.mxu2  ;;  %1454 = vmatmul.msk.f32.vlgmr.msrb.gmra.mxu0 %vm667_vm3, %v1930_v60  ;;  %v630_v6 = vpop.f32.mrf.mxu3  ;;  %1456 = vmatpush.msk.msrb.mxu1 %vm674_vm2, %v654_v63 }
  0xe5   : > { %v641_v28 = vmul.f32 %v637_v24, %v610_v3  ;;  %842 = vmatpush.msra.mxu0 %v824_v48  ;;  %v642_v46 = vmul.f32 %v637_v24, %v630_v6  ;;  %1457 = vmatmul.msk.f32.vlgmr.msrb.gmra.mxu1 %vm667_vm3, %v1930_v60 }
  0xe6   : > { %862 = vmatpush.msra.mxu1 %v825_v54  ;;  %v823_v54 = vsub.f32 %v1893_v16, %v1868_v2  ;;  %v1992_v2 = vpop.permute.xlu0 %659 }
  0xe7   : > { %v651_v9 = vadd.f32 %v647_v34, %v641_v28  ;;  %843 = vmatpush.msra.mxu0 %v820_v0  ;;  %v652_v11 = vadd.f32 %v647_v34, %v642_v46 }
  0xe8   : > { %863 = vmatpush.msra.mxu1 %v821_v7 }
  0xe9   : > { %v655_v27 = vmax.f32 %v651_v9, 0.0  ;;  %v656_v48 = vmax.f32 %v652_v11, 0.0 }
  0xeb   : > { %1459 = vmatpush.msk.msrb.mxu2 %vm674_vm2, %v655_v27  ;;  %1462 = vmatpush.msk.msrb.mxu3 %vm674_vm2, %v656_v48 }
  0xec   : > { %1460 = vmatmul.msk.f32.vlgmr.msrb.gmra.mxu2 %vm667_vm3, %v1930_v60  ;;  %1463 = vmatmul.msk.f32.vlgmr.msrb.gmra.mxu3 %vm667_vm3, %v1930_v60 }
  0xed   : > { %1455 = vmatmul.msk.f32.gmra.mxu0 %vm667_vm3, %v1954_v52  ;;  %1458 = vmatmul.msk.f32.gmra.mxu1 %vm667_vm3, %v1954_v52 }
  0xee   : > { %882 = vmatpush.msra.mxu2 %v826_v61  ;;  %902 = vmatpush.msra.mxu3 %v827_v4 }
  0xf0   : > { %883 = vmatpush.msra.mxu2 %v822_v32  ;;  %903 = vmatpush.msra.mxu3 %v823_v54 }
  0xf4   : > { %1461 = vmatmul.msk.f32.gmra.mxu2 %vm667_vm3, %v1954_v52  ;;  %1464 = vmatmul.msk.f32.gmra.mxu3 %vm667_vm3, %v1954_v52 }
  0xf5   : > { %1465 = vmatmul.msk.f32.vlgmr.msra.gmra.mxu0 %vm549_vm1, %v1898_v17  ;;  %1466 = vmatmul.msk.f32.vlgmr.msra.gmra.mxu1 %vm549_vm1, %v1898_v17 }
  0xfc   : > { %1467 = vmatmul.msk.f32.vlgmr.msra.gmra.mxu2 %vm549_vm1, %v1898_v17  ;;  %1468 = vmatmul.msk.f32.vlgmr.msra.gmra.mxu3 %vm549_vm1, %v1898_v17 }
 0x161   : > { %v704_v41 = vpop.f32.mrf.mxu0 }
 0x162   : > { %v727_v61 = vpop.f32.mrf.mxu1  ;;  %v705_v4 = vadd.f32 %v704_v41, %v1992_v2 }
 0x163   : > { %v728_v12 = vadd.f32 %v727_v61, %v1992_v2  ;;  %v1077_v61 = vsub.f32 %v1882_v10, %v1824_v45 }
 0x164   : > { %v798_v20 = vmul.f32 %v705_v4, %v705_v4 }
 0x165   : > { %v799_v21 = vmul.f32 %v728_v12, %v728_v12  ;;  %v781_v25 = vadd.f32 %v728_v12, %v705_v4 }
 0x167   : > { %v806_v34 = vadd.f32 %v799_v21, %v798_v20 }
 0x16a   : > { %v707_v14 = vpop.f32.mrf.mxu0  ;;  %v730_v18 = vpop.f32.mrf.mxu1 }
 0x16b   : > { %v708_v23 = vadd.f32 %v707_v14, %v1996_v19  ;;  %v731_v24 = vadd.f32 %v730_v18, %v1996_v19  ;;  %v1078_v14 = vsub.f32 %v1888_v13, %v1837_v51 }
 0x16d   : > { %v802_v53 = vmul.f32 %v708_v23, %v708_v23  ;;  %v803_v57 = vmul.f32 %v731_v24, %v731_v24  ;;  %v786_v8 = vadd.f32 %v731_v24, %v708_v23 }
 0x16f   : > { %v750_v22 = vpop.f32.mrf.mxu2  ;;  %v773_v30 = vpop.f32.mrf.mxu3  ;;  %v811_v54 = vadd.f32 %v803_v57, %v802_v53 }
 0x170   : > { %v751_v29 = vadd.f32 %v750_v22, %v1992_v2  ;;  %v774_v33 = vadd.f32 %v773_v30, %v1992_v2 }
 0x172   : > { %v782_v38 = vadd.f32 %v781_v25, %v751_v29  ;;  %v800_v39 = vmul.f32 %v751_v29, %v751_v29  ;;  %v845_v43 = vpop.f32.mrf.mxu0  ;;  %v865_v47 = vpop.f32.mrf.mxu1  ;;  %v801_v63 = vmul.f32 %v774_v33, %v774_v33 }
 0x173   : > { %v914_v44 = vmul.f32 %v1988_v36, %v845_v43  ;;  %v915_v0 = vmul.f32 %v1988_v36, %v865_v47 }
 0x174   : > { %v783_v3 = vadd.f32 %v782_v38, %v774_v33  ;;  %v807_v28 = vadd.f32 %v806_v34, %v800_v39 }
 0x175   : > { %v924_v6 = vadd.f32 %v1990_v59, %v914_v44  ;;  %v925_v7 = vadd.f32 %v1990_v59, %v915_v0 }
 0x176   : > { %784 = vadd.xlane.f32.xlu2 %v783_v3  ;;  %v808_v46 = vadd.f32 %v807_v28, %v801_v63 }
 0x177   : > { %v928_v9 = vmax.f32 %v924_v6, 0.0  ;;  %v753_v11 = vpop.f32.mrf.mxu2  ;;  %v929_v27 = vmax.f32 %v925_v7, 0.0  ;;  %v776_v32 = vpop.f32.mrf.mxu3 }
 0x178   : > { %v754_v48 = vadd.f32 %v753_v11, %v1996_v19  ;;  %809 = vadd.xlane.f32.xlu1 %v808_v46  ;;  %v777_v41 = vadd.f32 %v776_v32, %v1996_v19 }
 0x179   : > { %1469 = vmatpush.msk.msrb.mxu0 %vm674_vm2, %v928_v9  ;;  %1472 = vmatpush.msk.msrb.mxu1 %vm674_vm2, %v929_v27 }
 0x17a   : > { %v787_v4 = vadd.f32 %v786_v8, %v754_v48  ;;  %v804_v12 = vmul.f32 %v754_v48, %v754_v48  ;;  %1470 = vmatmul.msk.f32.vlgmr.msrb.gmra.mxu0 %vm667_vm3, %v1930_v60  ;;  %v805_v18 = vmul.f32 %v777_v41, %v777_v41  ;;  %1473 = vmatmul.msk.f32.vlgmr.msrb.gmra.mxu1 %vm667_vm3, %v1930_v60 }
 0x17b   : > { %1099 = vmatpush.msra.mxu0 %v1081_v49  ;;  %1119 = vmatpush.msra.mxu1 %v1082_v55  ;;  %v1079_v49 = vsub.f32 %v1891_v15, %v1851_v58  ;;  %v1080_v55 = vsub.f32 %v1893_v16, %v1865_v1  ;;  %v796_v58 = vld [vmem:[%s2214_s9] sm:$0xff]  ;;  %v780_v15 = vld [vmem:[%s2213_s8 + $0x8] sm:$0xff] }
 0x17c   : > { %v788_v20 = vadd.f32 %v787_v4, %v777_v41  ;;  %v812_v45 = vadd.f32 %v811_v54, %v804_v12 }
 0x17d   : > { %1100 = vmatpush.msra.mxu0 %v1077_v61  ;;  %1120 = vmatpush.msra.mxu1 %v1078_v14 }
 0x17e   : > { %789 = vadd.xlane.f32.xlu0 %v788_v20  ;;  %v813_v10 = vadd.f32 %v812_v45, %v805_v18 }
 0x17f   : > { %v885_v21 = vpop.f32.mrf.mxu2  ;;  %v905_v13 = vpop.f32.mrf.mxu3 }
 0x180   : > { %v916_v51 = vmul.f32 %v1988_v36, %v885_v21  ;;  %814 = vadd.xlane.f32.xlu2 %v813_v10  ;;  %v917_v22 = vmul.f32 %v1988_v36, %v905_v13 }
 0x182   : > { %v926_v26 = vadd.f32 %v1990_v59, %v916_v51  ;;  %1471 = vmatmul.msk.f32.gmra.mxu0 %vm667_vm3, %v1954_v52  ;;  %v927_v37 = vadd.f32 %v1990_v59, %v917_v22  ;;  %1474 = vmatmul.msk.f32.gmra.mxu1 %vm667_vm3, %v1954_v52 }
 0x184   : > { %v930_v31 = vmax.f32 %v926_v26, 0.0  ;;  %v931_v42 = vmax.f32 %v927_v37, 0.0 }
 0x186   : > { %1475 = vmatpush.msk.msrb.mxu2 %vm674_vm2, %v930_v31  ;;  %1478 = vmatpush.msk.msrb.mxu3 %vm674_vm2, %v931_v42 }
 0x187   : > { %1476 = vmatmul.msk.f32.vlgmr.msrb.gmra.mxu2 %vm667_vm3, %v1930_v60  ;;  %1479 = vmatmul.msk.f32.vlgmr.msrb.gmra.mxu3 %vm667_vm3, %v1930_v60 }
 0x188   : > { %1139 = vmatpush.msra.mxu2 %v1083_v62  ;;  %1159 = vmatpush.msra.mxu3 %v1084_v5 }
 0x18a   : > { %1481 = vmatmul.msk.f32.vlgmr.msra.gmra.mxu0 %vm549_vm1, %v1898_v17  ;;  %1140 = vmatpush.msra.mxu2 %v1079_v49 }
 0x18b   : > { %1482 = vmatmul.msk.f32.vlgmr.msra.gmra.mxu1 %vm549_vm1, %v1898_v17  ;;  %1160 = vmatpush.msra.mxu3 %v1080_v55 }
 0x18f   : > { %1477 = vmatmul.msk.f32.gmra.mxu2 %vm667_vm3, %v1954_v52  ;;  %1480 = vmatmul.msk.f32.gmra.mxu3 %vm667_vm3, %v1954_v52 }
 0x197   : > { %1483 = vmatmul.msk.f32.vlgmr.msra.gmra.mxu2 %vm549_vm1, %v1898_v17  ;;  %1484 = vmatmul.msk.f32.vlgmr.msra.gmra.mxu3 %vm549_vm1, %v1898_v17  ;;  %v797_v17 = vld [vmem:[%s2214_s9 + $0x8] sm:$0xff] }
 0x1e9   : > { %v785_v56 = vpop.xlane.xlu2 %784 }
 0x1ea   : > { %v791_v62 = vadd.f32 %v785_v56, %v779_v50 }
 0x1eb   : > { %v810_v1 = vpop.xlane.xlu1 %809 }
 0x1ec   : > { %794 = vst.msk [vmem:[%s2213_s8] sm:$0xff] %vm793_vm4, %v791_v62  ;;  %v816_v5 = vadd.f32 %v810_v1, %v796_v58 }
 0x1ee   : > { %818 = vst.msk [vmem:[%s2214_s9] sm:$0xff] %vm793_vm4, %v816_v5 }
 0x1f1   : > { %v790_v16 = vpop.xlane.xlu0 %789 }
 0x1f2   : > { %v792_v36 = vadd.f32 %v790_v16, %v780_v15 }
 0x1f3   : > { %v815_v59 = vpop.xlane.xlu2 %814 }
 0x1f4   : > { %795 = vst.msk [vmem:[%s2213_s8 + $0x8] sm:$0xff] %vm793_vm4, %v792_v36  ;;  %v817_v23 = vadd.f32 %v815_v59, %v797_v17 }
 0x1f5   : > { %v1053_v16 = vld [vmem:[%s2214_s9] sm:$0xff] }
 0x1f6   : > { %819 = vst.msk [vmem:[%s2214_s9 + $0x8] sm:$0xff] %vm793_vm4, %v817_v23 }
 0x1f7   : > { %v961_v24 = vpop.f32.mrf.mxu0  ;;  %v984_v25 = vpop.f32.mrf.mxu1 }
 0x1f8   : > { %v962_v33 = vadd.f32 %v961_v24, %v1992_v2  ;;  %v985_v34 = vadd.f32 %v984_v25, %v1992_v2 }
 0x1fa   : > { %v1055_v44 = vmul.f32 %v962_v33, %v962_v33  ;;  %v1056_v47 = vmul.f32 %v985_v34, %v985_v34  ;;  %v1038_v28 = vadd.f32 %v985_v34, %v962_v33 }
 0x1fc   : > { %v1063_v11 = vadd.f32 %v1056_v47, %v1055_v44 }
 0x1fd   : > { %v1054_v23 = vld [vmem:[%s2214_s9 + $0x8] sm:$0xff] }
 0x1ff   : > { %v964_v29 = vpop.f32.mrf.mxu0  ;;  %v987_v30 = vpop.f32.mrf.mxu1 }
 0x200   : > { %v965_v57 = vadd.f32 %v964_v29, %v1996_v19  ;;  %v988_v63 = vadd.f32 %v987_v30, %v1996_v19 }
 0x202   : > { %v1059_v54 = vmul.f32 %v965_v57, %v965_v57  ;;  %v1060_v41 = vmul.f32 %v988_v63, %v988_v63  ;;  %v1043_v14 = vadd.f32 %v988_v63, %v965_v57 }
 0x204   : > { %v1068_v45 = vadd.f32 %v1060_v41, %v1059_v54 }
 0x207   : > { %v1102_v38 = vpop.f32.mrf.mxu0 }
 0x208   : > { %v1171_v39 = vmul.f32 %v2060_v35, %v1102_v38  ;;  %v1122_v43 = vpop.f32.mrf.mxu1 }
 0x209   : > { %v1172_v53 = vmul.f32 %v2060_v35, %v1122_v43 }
 0x20a   : > { %v1181_v0 = vadd.f32 %v2062_v40, %v1171_v39  ;;  %v1007_v3 = vpop.f32.mrf.mxu2  ;;  %v1030_v8 = vpop.f32.mrf.mxu3 }
 0x20b   : > { %v1182_v6 = vadd.f32 %v2062_v40, %v1172_v53  ;;  %v1008_v7 = vadd.f32 %v1007_v3, %v1992_v2  ;;  %v1031_v9 = vadd.f32 %v1030_v8, %v1992_v2 }
 0x20c   : > { %v1185_v46 = vmax.f32 %v1181_v0, 0.0 }
 0x20d   : > { %v1186_v27 = vmax.f32 %v1182_v6, 0.0  ;;  %v1039_v48 = vadd.f32 %v1038_v28, %v1008_v7  ;;  %v1057_v32 = vmul.f32 %v1008_v7, %v1008_v7  ;;  %v1058_v61 = vmul.f32 %v1031_v9, %v1031_v9 }
 0x20e   : > { %1485 = vmatpush.msk.msrb.mxu0 %vm674_vm2, %v1185_v46 }
 0x20f   : > { %1488 = vmatpush.msk.msrb.mxu1 %vm674_vm2, %v1186_v27  ;;  %1486 = vmatmul.msk.f32.vlgmr.msrb.gmra.mxu0 %vm667_vm3, %v1930_v60  ;;  %v1040_v4 = vadd.f32 %v1039_v48, %v1031_v9  ;;  %v1064_v12 = vadd.f32 %v1063_v11, %v1057_v32 }
 0x210   : > { %1489 = vmatmul.msk.f32.vlgmr.msrb.gmra.mxu1 %vm667_vm3, %v1930_v60 }
 0x211   : > { %1041 = vadd.xlane.f32.xlu2 %v1040_v4  ;;  %v1065_v18 = vadd.f32 %v1064_v12, %v1058_v61 }
 0x212   : > { %v1010_v20 = vpop.f32.mrf.mxu2  ;;  %v1033_v21 = vpop.f32.mrf.mxu3 }
 0x213   : > { %v1011_v10 = vadd.f32 %v1010_v20, %v1996_v19  ;;  %1066 = vadd.xlane.f32.xlu1 %v1065_v18  ;;  %v1034_v51 = vadd.f32 %v1033_v21, %v1996_v19 }
 0x215   : > { %v1044_v13 = vadd.f32 %v1043_v14, %v1011_v10  ;;  %v1061_v22 = vmul.f32 %v1011_v10, %v1011_v10  ;;  %v1062_v26 = vmul.f32 %v1034_v51, %v1034_v51 }
 0x217   : > { %v1045_v37 = vadd.f32 %v1044_v13, %v1034_v51  ;;  %1487 = vmatmul.msk.f32.gmra.mxu0 %vm667_vm3, %v1954_v52  ;;  %v1069_v31 = vadd.f32 %v1068_v45, %v1061_v22 }
 0x218   : > { %1490 = vmatmul.msk.f32.gmra.mxu1 %vm667_vm3, %v1954_v52 }
 0x219   : > { %1046 = vadd.xlane.f32.xlu0 %v1045_v37  ;;  %v1070_v42 = vadd.f32 %v1069_v31, %v1062_v26 }
 0x21a   : > { %v1142_v49 = vpop.f32.mrf.mxu2  ;;  %v1162_v50 = vpop.f32.mrf.mxu3 }
 0x21b   : > { %v1173_v55 = vmul.f32 %v2060_v35, %v1142_v49  ;;  %1071 = vadd.xlane.f32.xlu2 %v1070_v42  ;;  %v1174_v56 = vmul.f32 %v2060_v35, %v1162_v50  ;;  %v1036_v35 = vld [vmem:[%s2213_s8] sm:$0xff] }
 0x21d   : > { %v1183_v58 = vadd.f32 %v2062_v40, %v1173_v55  ;;  %v1184_v62 = vadd.f32 %v2062_v40, %v1174_v56 }
 0x21f   : > { %v1187_v1 = vmax.f32 %v1183_v58, 0.0  ;;  %v1188_v5 = vmax.f32 %v1184_v62, 0.0 }
 0x221   : > { %1491 = vmatpush.msk.msrb.mxu2 %vm674_vm2, %v1187_v1  ;;  %1494 = vmatpush.msk.msrb.mxu3 %vm674_vm2, %v1188_v5 }
 0x222   : > { %1492 = vmatmul.msk.f32.vlgmr.msrb.gmra.mxu2 %vm667_vm3, %v1930_v60  ;;  %1495 = vmatmul.msk.f32.vlgmr.msrb.gmra.mxu3 %vm667_vm3, %v1930_v60 }
 0x22a   : > { %1493 = vmatmul.msk.f32.gmra.mxu2 %vm667_vm3, %v1954_v52  ;;  %1496 = vmatmul.msk.f32.gmra.mxu3 %vm667_vm3, %v1954_v52  ;;  %v1037_v52 = vld [vmem:[%s2213_s8 + $0x8] sm:$0xff] }
 0x284   : > { %v1042_v40 = vpop.xlane.xlu2 %1041 }
 0x285   : > { %v1048_v15 = vadd.f32 %v1042_v40, %v1036_v35 }
 0x286   : > { %v1067_v17 = vpop.xlane.xlu1 %1066 }
 0x287   : > { %1051 = vst.msk [vmem:[%s2213_s8] sm:$0xff] %vm1050_vm5, %v1048_v15  ;;  %v1073_v60 = vadd.f32 %v1067_v17, %v1053_v16 }
 0x289   : > { %1075 = vst.msk [vmem:[%s2214_s9] sm:$0xff] %vm1050_vm5, %v1073_v60 }
 0x28c   : > { %v1047_v36 = vpop.xlane.xlu0 %1046  ;;  %v1218_v29 = vpop.f32.mrf.mxu0 }
 0x28d   : > { %v1049_v59 = vadd.f32 %v1047_v36, %v1037_v52  ;;  %v1241_v30 = vpop.f32.mrf.mxu1  ;;  %v1219_v33 = vadd.f32 %v1218_v29, %v1992_v2 }
 0x28e   : > { %v1072_v24 = vpop.xlane.xlu2 %1071  ;;  %v1242_v34 = vadd.f32 %v1241_v30, %v1992_v2  ;;  %v1293_v13 = vld [vmem:[%s2213_s8] sm:$0xff] }
 0x28f   : > { %1052 = vst.msk [vmem:[%s2213_s8 + $0x8] sm:$0xff] %vm1050_vm5, %v1049_v59  ;;  %v1074_v25 = vadd.f32 %v1072_v24, %v1054_v23  ;;  %v1312_v38 = vmul.f32 %v1219_v33, %v1219_v33 }
 0x290   : > { %v1313_v39 = vmul.f32 %v1242_v34, %v1242_v34  ;;  %v1295_v53 = vadd.f32 %v1242_v34, %v1219_v33 }
 0x291   : > { %1076 = vst.msk [vmem:[%s2214_s9 + $0x8] sm:$0xff] %vm1050_vm5, %v1074_v25 }
 0x292   : > { %v1320_v0 = vadd.f32 %v1313_v39, %v1312_v38 }
 0x294   : > { %v1221_v43 = vpop.f32.mrf.mxu0 }
 0x295   : > { %v1244_v44 = vpop.f32.mrf.mxu1  ;;  %v1222_v28 = vadd.f32 %v1221_v43, %v1996_v19 }
 0x296   : > { %v1245_v6 = vadd.f32 %v1244_v44, %v1996_v19  ;;  %v1294_v31 = vld [vmem:[%s2213_s8 + $0x8] sm:$0xff] }
 0x297   : > { %v1316_v27 = vmul.f32 %v1222_v28, %v1222_v28 }
 0x298   : > { %v1317_v48 = vmul.f32 %v1245_v6, %v1245_v6  ;;  %v1300_v41 = vadd.f32 %v1245_v6, %v1222_v28  ;;  %v1311_v50 = vld [vmem:[%s2214_s9 + $0x8] sm:$0xff] }
 0x29a   : > { %v1325_v12 = vadd.f32 %v1317_v48, %v1316_v27 }
 0x2a5   : > { %v1264_v47 = vpop.f32.mrf.mxu2  ;;  %v1287_v63 = vpop.f32.mrf.mxu3 }
 0x2a6   : > { %v1265_v57 = vadd.f32 %v1264_v47, %v1992_v2  ;;  %v1288_v3 = vadd.f32 %v1287_v63, %v1992_v2 }
 0x2a8   : > { %v1296_v7 = vadd.f32 %v1295_v53, %v1265_v57  ;;  %v1314_v8 = vmul.f32 %v1265_v57, %v1265_v57  ;;  %v1315_v46 = vmul.f32 %v1288_v3, %v1288_v3 }
 0x2aa   : > { %v1297_v9 = vadd.f32 %v1296_v7, %v1288_v3  ;;  %v1321_v11 = vadd.f32 %v1320_v0, %v1314_v8 }
 0x2ac   : > { %1298 = vadd.xlane.f32.xlu0 %v1297_v9  ;;  %v1322_v32 = vadd.f32 %v1321_v11, %v1315_v46 }
 0x2ad   : > { %v1267_v54 = vpop.f32.mrf.mxu2  ;;  %v1290_v4 = vpop.f32.mrf.mxu3 }
 0x2ae   : > { %v1268_v61 = vadd.f32 %v1267_v54, %v1996_v19  ;;  %1323 = vadd.xlane.f32.xlu2 %v1322_v32  ;;  %v1291_v2 = vadd.f32 %v1290_v4, %v1996_v19  ;;  %v1310_v19 = vld [vmem:[%s2214_s9] sm:$0xff] }
 0x2b0   : > { %v1301_v14 = vadd.f32 %v1300_v41, %v1268_v61  ;;  %v1318_v18 = vmul.f32 %v1268_v61, %v1268_v61  ;;  %v1319_v20 = vmul.f32 %v1291_v2, %v1291_v2 }
 0x2b2   : > { %v1302_v45 = vadd.f32 %v1301_v14, %v1291_v2  ;;  %v1326_v10 = vadd.f32 %v1325_v12, %v1318_v18 }
 0x2b4   : > { %1303 = vadd.xlane.f32.xlu1 %v1302_v45  ;;  %v1327_v21 = vadd.f32 %v1326_v10, %v1319_v20 }
 0x2b6   : > { %1328 = vadd.xlane.f32.xlu0 %v1327_v21 }
 0x31f   : > { %v1299_v51 = vpop.xlane.xlu0 %1298 }
 0x320   : > { %v1305_v22 = vadd.f32 %v1299_v51, %v1293_v13 }
 0x321   : > { %v1324_v26 = vpop.xlane.xlu2 %1323 }
 0x322   : > { %1308 = vst.msk [vmem:[%s2213_s8] sm:$0xff] %vm1307_vm6, %v1305_v22  ;;  %v1330_v37 = vadd.f32 %v1324_v26, %v1310_v19 }
 0x324   : > { %1332 = vst.msk [vmem:[%s2214_s9] sm:$0xff] %vm1307_vm6, %v1330_v37 }
 0x327   : > { %v1304_v42 = vpop.xlane.xlu1 %1303 }
 0x328   : > { %v1306_v49 = vadd.f32 %v1304_v42, %v1294_v31 }
 0x329   : > { %v1329_v55 = vpop.xlane.xlu0 %1328 }
 0x32a   : > { %1309 = vst.msk [vmem:[%s2213_s8 + $0x8] sm:$0xff] %vm1307_vm6, %v1306_v49  ;;  %v1331_v56 = vadd.f32 %v1329_v55, %v1311_v50 }
 0x32c   : > { %1333 = vst.msk [vmem:[%s2214_s9 + $0x8] sm:$0xff] %vm1307_vm6, %v1331_v56 }
 0x32d PF: > { %s20_s15 = sadd.s32 1, %s1618_s15   ;;  %s2216_s30 = smov %s1598_s10 }
 0x32e   : > { %p17_p13 = scmp.ge.s32.totalorder %s20_s15, 6   ;;  %s2217_s10 = smov %s1729_s23 }
 0x32f   : > { %s2218_s11 = smov %s1610_s13  ;;  %s2219_s12 = smov %s1614_s14 }
 0x330   : > { %s2220_s13 = smov %s2223_s16  ;;  %s2221_s14 = smov %s2227_s17 }
 0x331   :  { %19 = sbr.rel (!%p17_p13) target bundleno = 4 (0x4), region = 180 }

// kernel: aff_forward.5
= control target key start
LH: loop header
LB: loop body
LE: loop exit
PB: predicated region body
PF: predicated region fallthrough
CT: control target
= control target key end

     0   :  { %s2507_s13 = smov 0   ;;  %s2509_s14 = smov 0   ;;  %s3668_s0 = inlined_call_operand.vmem [shape: f32[2,16,1024], index: 0, kind: input, shape index: {}]   ;;  %s3669_s1 = inlined_call_operand.vmem [shape: f32[2,16,1024], index: 1, kind: input, shape index: {}]   ;;  %s3670_s2 = inlined_call_operand.vmem [shape: f32[2,16,1024], index: 2, kind: input, shape index: {}]   ;;  %s3671_s3 = inlined_call_operand.vmem [shape: f32[4,16], index: 3, kind: input, shape index: {}]   ;;  %s3672_s4 = inlined_call_operand.vmem [shape: f32[4,3], index: 4, kind: input, shape index: {}]   ;;  %s3673_s5 = inlined_call_operand.vmem [shape: f32[4,3], index: 5, kind: input, shape index: {}]   ;;  %s3674_s6 = inlined_call_operand.vmem [shape: f32[16,4], index: 6, kind: input, shape index: {}]   ;;  %s3675_s7 = inlined_call_operand.vmem [shape: f32[16,3], index: 7, kind: input, shape index: {}]   ;;  %s3676_s8 = inlined_call_operand.vmem [shape: f32[16,3], index: 8, kind: input, shape index: {}]   ;;  %s3677_s9 = inlined_call_operand.vmem [shape: f32[2,16,3], index: 9, kind: input, shape index: {}]   ;;  %s3678_s10 = inlined_call_operand.vmem [shape: f32[2,16,1024], index: 10, kind: output, shape index: {}]  }
   0x1   :  { %s2511_s15 = smov 0   ;;  %s2513_s16 = smov 0  }
   0x2   :  { %s2515_s17 = smov 0   ;;  %s2517_s18 = smov 0  }
   0x3   :  { %s2519_s19 = smov 0  }
   0x4 LB: > { %s29_s20 = sadd.s32 1, %s2439_s17  ;;  %s32_s21 = sadd.s32 1, %s2443_s18  ;;  %s2447_s19 = sphi %s2519_s19, %s20_s19   ;;  %s2443_s18 = sphi %s2517_s18, %s3796_s18   ;;  %s2439_s17 = sphi %s2515_s17, %s3795_s17   ;;  %s2435_s16 = sphi %s2513_s16, %s3794_s16   ;;  %s2431_s15 = sphi %s2511_s15, %s3793_s15   ;;  %s2427_s14 = sphi %s2509_s14, %s3792_s14   ;;  %s2423_s13 = sphi %s2507_s13, %s3791_s13  }
   0x5   : > { %p30_p0 = scmp.ge.s32.totalorder %s29_s20, 2  ;;  %s2104_s22 = sadd.s32 4294967295, %s2447_s19  }
   0x6   : > { %p48_p1 = scmp.ne.s32.totalorder %s2427_s14, %s2423_s13  ;;  %p49_p2 = scmp.eq.s32.totalorder %s2447_s19, 0 }
   0x7   : > { %s3798_s20 = smov (%p30_p0, %s29_s20), 0  ;;  %s3800_s21 = smov (!%p30_p0, %s32_s21), %s2443_s18 }
   0x8   : > { %3691 = sst [smem:[#allocation6_spill]] %s3798_s20  ;;  %p34_p3 = scmp.ge.s32.totalorder %s3800_s21, 2 }
   0x9   : > { %p288_p4 = scmp.eq.s32.totalorder %s2104_s22, 3  ;;  %s37_s23 = ssub.s32 %s2439_s17, %s3798_s20 }
   0xa   : > { %p2553_p5 = por %p49_p2, %p48_p1  ;;  %s3802_s21 = smov (%p34_p3, %s3800_s21), 0 }
   0xb   : > { %3693 = sst [smem:[#allocation7_spill]] %s3802_s21  ;;  %p2559_p6 = por %p288_p4, %p48_p1 }
   0xc   : > { %s36_s26 = ssub.s32 %s2443_s18, %s3802_s21  ;;  %s41_s28 = sadd.s32 1, %s2427_s14 }
   0xd   : > { %s38_s27 = sor.u32 %s37_s23, %s36_s26  ;;  %p2107_p8 = scmp.ge.s32.totalorder %s2447_s19, 4 }
   0xe   : > { %p39_p7 = scmp.eq.s32.totalorder %s38_s27, 0 }
   0xf   : > { %328 = sbr.rel (%p2107_p8) target bundleno = 65 (0x41), region = 40 }
  0x10   : > { %s2567_s29 = scalar_select %p39_p7, %s2427_s14, %s41_s28  }
  0x14   : > { %331 = sbr.rel (!%p2553_p5) target bundleno = 35 (0x23), region = 44  ;;  %s333_s30 = sand.u32 (%p2553_p5), 1, %s2427_s14  }
  0x15   : > { %s2109_s11 = sshll.u32 (%p2553_p5), %s2439_s17, 2  ;;  %s2108_s12 = sshll.u32 (%p2553_p5), %s333_s30, 6 }
  0x16   : > { %s2110_s22 = sshll.u32 (%p2553_p5), %s2443_s18, 4  ;;  %s335_s28 = scalar_lea.vmem (%p2553_p5), [#allocation2], %s2108_s12 }
  0x17   : > { %s338_s20 = sadd.s32 (%p2553_p5), %s2110_s22, %s2109_s11 }
  0x18   : > { %s2111_s21 = sshll.u32 (%p2553_p5), %s338_s20, 3 }
  0x19   : > { %s340_s27 = scalar_lea.vmem %s3668_s0, %s2111_s21 }
  0x1a   : > { %v353_v0 = vld [vmem:[%s340_s27] sm:$0xff]  ;;  %v355_v1 = vld [vmem:[%s340_s27 + $0x8] sm:$0xff]  ;;  %v357_v2 = vld [vmem:[%s340_s27 + $0x10] sm:$0xff] }
  0x1b   : > { %354 = vst [vmem:[%s335_s28] sm:$0xff] %v353_v0  ;;  %v359_v3 = vld [vmem:[%s340_s27 + $0x18] sm:$0xff]  ;;  %v361_v4 = vld [vmem:[%s340_s27 + $0x40] sm:$0xff]  ;;  %v363_v5 = vld [vmem:[%s340_s27 + $0x48] sm:$0xff] }
  0x1c   : > { %356 = vst [vmem:[%s335_s28 + $0x8] sm:$0xff] %v355_v1  ;;  %v365_v6 = vld [vmem:[%s340_s27 + $0x50] sm:$0xff]  ;;  %v367_v7 = vld [vmem:[%s340_s27 + $0x58] sm:$0xff] }
  0x1d   : > { %358 = vst [vmem:[%s335_s28 + $0x10] sm:$0xff] %v357_v2 }
  0x1e   : > { %360 = vst [vmem:[%s335_s28 + $0x18] sm:$0xff] %v359_v3 }
  0x1f   : > { %362 = vst [vmem:[%s335_s28 + $0x20] sm:$0xff] %v361_v4 }
  0x20   : > { %364 = vst [vmem:[%s335_s28 + $0x28] sm:$0xff] %v363_v5 }
  0x21   : > { %366 = vst [vmem:[%s335_s28 + $0x30] sm:$0xff] %v365_v6 }
  0x22   : > { %368 = vst [vmem:[%s335_s28 + $0x38] sm:$0xff] %v367_v7 }
  0x23 PF: > { %374 = sbr.rel (!%p2553_p5) target bundleno = 50 (0x32), region = 67  ;;  %s376_s20 = sand.u32 (%p2553_p5), 1, %s2427_s14  }
  0x24   : > { %s2113_s21 = sshll.u32 (%p2553_p5), %s2439_s17, 2  ;;  %s2112_s30 = sshll.u32 (%p2553_p5), %s376_s20, 6 }
  0x25   : > { %s2114_s11 = sshll.u32 (%p2553_p5), %s2443_s18, 4  ;;  %s378_s28 = scalar_lea.vmem (%p2553_p5), [#allocation3], %s2112_s30 }
  0x26   : > { %s381_s12 = sadd.s32 (%p2553_p5), %s2114_s11, %s2113_s21 }
  0x27   : > { %s2115_s22 = sshll.u32 (%p2553_p5), %s381_s12, 3 }
  0x28   : > { %s383_s27 = scalar_lea.vmem %s3669_s1, %s2115_s22 }
  0x29   : > { %v396_v8 = vld [vmem:[%s383_s27] sm:$0xff]  ;;  %v398_v9 = vld [vmem:[%s383_s27 + $0x8] sm:$0xff]  ;;  %v400_v10 = vld [vmem:[%s383_s27 + $0x10] sm:$0xff] }
  0x2a   : > { %397 = vst [vmem:[%s378_s28] sm:$0xff] %v396_v8  ;;  %v402_v11 = vld [vmem:[%s383_s27 + $0x18] sm:$0xff]  ;;  %v404_v12 = vld [vmem:[%s383_s27 + $0x40] sm:$0xff]  ;;  %v406_v13 = vld [vmem:[%s383_s27 + $0x48] sm:$0xff] }
  0x2b   : > { %399 = vst [vmem:[%s378_s28 + $0x8] sm:$0xff] %v398_v9  ;;  %v408_v14 = vld [vmem:[%s383_s27 + $0x50] sm:$0xff]  ;;  %v410_v15 = vld [vmem:[%s383_s27 + $0x58] sm:$0xff] }
  0x2c   : > { %401 = vst [vmem:[%s378_s28 + $0x10] sm:$0xff] %v400_v10 }
  0x2d   : > { %403 = vst [vmem:[%s378_s28 + $0x18] sm:$0xff] %v402_v11 }
  0x2e   : > { %405 = vst [vmem:[%s378_s28 + $0x20] sm:$0xff] %v404_v12 }
  0x2f   : > { %407 = vst [vmem:[%s378_s28 + $0x28] sm:$0xff] %v406_v13 }
  0x30   : > { %409 = vst [vmem:[%s378_s28 + $0x30] sm:$0xff] %v408_v14 }
  0x31   : > { %411 = vst [vmem:[%s378_s28 + $0x38] sm:$0xff] %v410_v15 }
  0x32 PF: > { %417 = sbr.rel (!%p2553_p5) target bundleno = 65 (0x41), region = 90  ;;  %s419_s20 = sand.u32 (%p2553_p5), 1, %s2427_s14  }
  0x33   : > { %s2117_s21 = sshll.u32 (%p2553_p5), %s2439_s17, 2  ;;  %s2116_s30 = sshll.u32 (%p2553_p5), %s419_s20, 6 }
  0x34   : > { %s2118_s11 = sshll.u32 (%p2553_p5), %s2443_s18, 4  ;;  %s421_s28 = scalar_lea.vmem (%p2553_p5), [#allocation4], %s2116_s30 }
  0x35   : > { %s424_s12 = sadd.s32 (%p2553_p5), %s2118_s11, %s2117_s21 }
  0x36   : > { %s2119_s22 = sshll.u32 (%p2553_p5), %s424_s12, 3 }
  0x37   : > { %s426_s27 = scalar_lea.vmem %s3670_s2, %s2119_s22 }
  0x38   : > { %v439_v16 = vld [vmem:[%s426_s27] sm:$0xff]  ;;  %v441_v17 = vld [vmem:[%s426_s27 + $0x8] sm:$0xff]  ;;  %v443_v18 = vld [vmem:[%s426_s27 + $0x10] sm:$0xff] }
  0x39   : > { %440 = vst [vmem:[%s421_s28] sm:$0xff] %v439_v16  ;;  %v445_v19 = vld [vmem:[%s426_s27 + $0x18] sm:$0xff]  ;;  %v447_v20 = vld [vmem:[%s426_s27 + $0x40] sm:$0xff]  ;;  %v449_v21 = vld [vmem:[%s426_s27 + $0x48] sm:$0xff] }
  0x3a   : > { %442 = vst [vmem:[%s421_s28 + $0x8] sm:$0xff] %v441_v17  ;;  %v451_v22 = vld [vmem:[%s426_s27 + $0x50] sm:$0xff]  ;;  %v453_v23 = vld [vmem:[%s426_s27 + $0x58] sm:$0xff] }
  0x3b   : > { %444 = vst [vmem:[%s421_s28 + $0x10] sm:$0xff] %v443_v18 }
  0x3c   : > { %446 = vst [vmem:[%s421_s28 + $0x18] sm:$0xff] %v445_v19 }
  0x3d   : > { %448 = vst [vmem:[%s421_s28 + $0x20] sm:$0xff] %v447_v20 }
  0x3e   : > { %450 = vst [vmem:[%s421_s28 + $0x28] sm:$0xff] %v449_v21 }
  0x3f   : > { %452 = vst [vmem:[%s421_s28 + $0x30] sm:$0xff] %v451_v22 }
  0x40   : > { %454 = vst [vmem:[%s421_s28 + $0x38] sm:$0xff] %v453_v23 }
  0x41 PF: > { %p2120_p9 = scmp.ge.s32.totalorder %s2447_s19, 1  ;;  %p467_p10 = scmp.lt.s32.totalorder %s2447_s19, 5 }
  0x43   : > { %p468_p11 = pnand %p2120_p9, %p467_p10 }
  0x45   : > { %471 = sbr.rel (%p468_p11) target bundleno = 741 (0x2e5), region = 117 }
  0x4a   : > { %v2599_v24 = vld [vmem:[%s3672_s4] sm:$0xf]  ;;  %s474_s21 = sand.u32 1, %s2423_s13   ;;  %v2449_v25 = vmov 0   ;;  %vm597_vm0 = vcmask 130048   ;;  %v2763_v13 = vld [vmem:[%s3676_s8 + $0x8] sm:$0xff] }
  0x4b   : > { %2265 = vset.pattern.permute.xlu0 %v2449_v25  ;;  %s2603_s30 = sshll.u32 %s474_s21, 6  ;;  %v2649_v37 = vld [vmem:[%s3673_s5] sm:$0xf]  ;;  %v2450_v14 = vmov 1   ;;  %p540_p12 = scmp.lt.s32.totalorder %s2435_s16, 1  ;;  %v818_v15 = vld [vmem:[%s3675_s7 + $0x8] sm:$0xff] }
  0x4c   : > { %684 = vperm.xlu0 %2265, %v2599_v24   ;;  %s2607_s11 = scalar_lea.vmem [#allocation2], %s2603_s30  ;;  %s2613_s12 = scalar_lea.vmem [#allocation3], %s2603_s30  ;;  %v2732_v5 = vld [vmem:[%s3671_s3] sm:$0xf]  ;;  %2266 = vset.pattern.permute.xlu1 %v2450_v14  ;;  %v2451_v18 = vmov 2   ;;  %vm712_vm1 = vcmask 1043456  }
  0x4d   : > { %v2610_v26 = vld [vmem:[%s2607_s11 + $0x20] sm:$0xff]  ;;  %v2619_v28 = vld [vmem:[%s2607_s11 + $0x28] sm:$0xff]  ;;  %s2622_s13 = scalar_lea.vmem [#allocation4], %s2603_s30  ;;  %v2638_v34 = vld [vmem:[%s2607_s11 + $0x30] sm:$0xff]  ;;  %1142 = vperm.xlu1 %2266, %v2599_v24   ;;  %2267 = vset.pattern.permute.xlu2 %v2451_v18  ;;  %vm705_vm2 = vcmask 31744  }
  0x4e   : > { %v2616_v27 = vld [vmem:[%s2613_s12 + $0x20] sm:$0xff]  ;;  %v2630_v31 = vld [vmem:[%s2613_s12 + $0x28] sm:$0xff]  ;;  %3695 = vst [vmem:[#allocation8_spill] sm:$0xff] %v2638_v34  ;;  %v2641_v35 = vld [vmem:[%s2613_s12 + $0x30] sm:$0xff]  ;;  %s541_s22 = scalar_select %p540_p12, %s2435_s16, 1  ;;  %1578 = vperm.xlu2 %2267, %v2599_v24  }
  0x4f   : > { %v2625_v29 = vld [vmem:[%s2622_s13 + $0x20] sm:$0xff]  ;;  %v574_v30 = vadd.f32 %v2616_v27, %v2610_v26  ;;  %v2633_v32 = vld [vmem:[%s2622_s13 + $0x28] sm:$0xff]  ;;  %v575_v33 = vadd.f32 %v2630_v31, %v2619_v28  ;;  %3696 = vst [vmem:[#allocation9_spill] sm:$0xff] %v2641_v35  ;;  %v2644_v36 = vld [vmem:[%s2622_s13 + $0x30] sm:$0xff]  ;;  %v576_v39 = vadd.f32 %v2641_v35, %v2638_v34 }
  0x50   : > { %3697 = vst [vmem:[#allocation10_spill] sm:$0xff] %v2644_v36  ;;  %v2657_v40 = vld [vmem:[%s2607_s11 + $0x38] sm:$0xff]  ;;  %v2667_v44 = vld [vmem:[%s2607_s11] sm:$0xff]  ;;  %v2683_v50 = vld [vmem:[%s2607_s11 + $0x8] sm:$0xff]  ;;  %s2205_s27 = sshll.u32 %s541_s22, 4 }
  0x51   : > { %v2652_v38 = vadd.f32 %v574_v30, %v2625_v29  ;;  %3698 = vst [vmem:[#allocation11_spill] sm:$0xff] %v2657_v40  ;;  %v2660_v41 = vld [vmem:[%s2613_s12 + $0x38] sm:$0xff]  ;;  %v2663_v42 = vadd.f32 %v575_v33, %v2633_v32  ;;  %v2670_v45 = vld [vmem:[%s2613_s12] sm:$0xff]  ;;  %v2675_v47 = vadd.f32 %v576_v39, %v2644_v36  ;;  %v2686_v51 = vld [vmem:[%s2613_s12 + $0x8] sm:$0xff]  ;;  %s544_s20 = scalar_lea.vmem %s3677_s9, %s2205_s27 }
  0x52   : > { %3699 = vst [vmem:[#allocation12_spill] sm:$0xff] %v2660_v41  ;;  %v569_v43 = vld [vmem:[%s2622_s13 + $0x38] sm:$0xff]  ;;  %v577_v48 = vadd.f32 %v2660_v41, %v2657_v40  ;;  %v2680_v49 = vld [vmem:[%s2622_s13] sm:$0xff]  ;;  %v570_v53 = vadd.f32 %v2670_v45, %v2667_v44  ;;  %v2698_v56 = vld [vmem:[%s2622_s13 + $0x8] sm:$0xff]  ;;  %v571_v60 = vadd.f32 %v2686_v51, %v2683_v50 }
  0x53   : > { %v593_v46 = vsub.f32 %v2652_v38, %v2625_v29  ;;  %3700 = vst [vmem:[#allocation13_spill] sm:$0xff] %v2675_v47  ;;  %v594_v52 = vsub.f32 %v2663_v42, %v2633_v32  ;;  %v595_v54 = vsub.f32 %v2675_v47, %v2644_v36  ;;  %v2701_v57 = vld [vmem:[%s2607_s11 + $0x10] sm:$0xff]  ;;  %v2712_v61 = vld [vmem:[%s2607_s11 + $0x18] sm:$0xff]  ;;  %v2744_v9 = vld [vmem:[%s3675_s7] sm:$0xff] }
  0x54   : > { %694 = vperm.xlu0 %2265, %v2649_v37   ;;  %v2695_v55 = vadd.f32 %v577_v48, %v569_v43  ;;  %v2704_v58 = vld [vmem:[%s2613_s12 + $0x10] sm:$0xff]  ;;  %v2707_v59 = vadd.f32 %v570_v53, %v2680_v49  ;;  %v2715_v62 = vld [vmem:[%s2613_s12 + $0x18] sm:$0xff]  ;;  %v2724_v2 = vadd.f32 %v571_v60, %v2698_v56  ;;  %v857_v17 = vld [vmem:[%s544_s20] sm:$0xff] }
  0x55   : > { %615 = vmatpush.msra.mxu0 %v593_v46  ;;  %635 = vmatpush.msra.mxu1 %v594_v52  ;;  %v2719_v0 = vld [vmem:[%s2622_s13 + $0x10] sm:$0xff]  ;;  %v572_v3 = vadd.f32 %v2704_v58, %v2701_v57  ;;  %v565_v4 = vld [vmem:[%s2622_s13 + $0x18] sm:$0xff]  ;;  %v573_v6 = vadd.f32 %v2715_v62, %v2712_v61  ;;  %v2782_v33 = vld [vmem:[%s544_s20 + $0x8] sm:$0xff]  ;;  %v1057_v46 = vsub.f32 %v2652_v38, %v2616_v27 }
  0x56   : > { %3701 = vst [vmem:[#allocation14_spill] sm:$0xff] %v2695_v55  ;;  %655 = vmatpush.msra.mxu2 %v595_v54  ;;  %v596_v63 = vsub.f32 %v2695_v55, %v569_v43  ;;  %v589_v1 = vsub.f32 %v2707_v59, %v2680_v49  ;;  %v590_v7 = vsub.f32 %v2724_v2, %v2698_v56  ;;  %v2788_v24 = vld [vmem:[%s3674_s6] sm:$0xff] }
  0x57   : > { %v2739_v8 = vadd.f32 %v572_v3, %v2719_v0  ;;  %v2746_v10 = vadd.f32 %v573_v6, %v565_v4  ;;  %1150 = vperm.xlu1 %2266, %v2649_v37   ;;  %1586 = vperm.xlu2 %2267, %v2649_v37   ;;  %v1058_v52 = vsub.f32 %v2663_v42, %v2630_v31  ;;  %v2812_v6 = vld [vmem:[%s3674_s6 + $0x8] sm:$0xff] }
  0x58   : > { %675 = vmatpush.msra.mxu3 %v596_v63  ;;  %616 = vmatpush.msra.mxu0 %v589_v1  ;;  %v1053_v53 = vsub.f32 %v2707_v59, %v2670_v45  ;;  %v1054_v54 = vsub.f32 %v2724_v2, %v2686_v51  ;;  %v837_v1 = vld [vmem:[%s3676_s8] sm:$0xff] }
  0x59   : > { %3702 = vst [vmem:[#allocation15_spill] sm:$0xff] %v2746_v10  ;;  %2127 = vmatmul.msk.f32.vlgmr.msra.gmra.mxu0 %vm597_vm0, %v2732_v5  ;;  %636 = vmatpush.msra.mxu1 %v590_v7  ;;  %v591_v11 = vsub.f32 %v2739_v8, %v2719_v0  ;;  %v592_v12 = vsub.f32 %v2746_v10, %v565_v4 }
  0x5a   : > { %2128 = vmatmul.msk.f32.vlgmr.msra.gmra.mxu1 %vm597_vm0, %v2732_v5 }
  0x5b   : > { %656 = vmatpush.msra.mxu2 %v591_v11  ;;  %676 = vmatpush.msra.mxu3 %v592_v12 }
  0x5c   : > { %821 = vperm.xlu0 %2265, %v2744_v9   ;;  %2129 = vmatmul.msk.f32.vlgmr.msra.gmra.mxu2 %vm597_vm0, %v2732_v5 }
  0x5d   : > { %2130 = vmatmul.msk.f32.vlgmr.msra.gmra.mxu3 %vm597_vm0, %v2732_v5 }
  0x5f   : > { %2268 = vset.pattern.permute.xlu1 %v2449_v25  ;;  %2269 = vset.pattern.permute.xlu2 %v2449_v25  ;;  %v1055_v25 = vsub.f32 %v2739_v8, %v2704_v58 }
  0x60   : > { %826 = vperm.xlu1 %2268, %v818_v15   ;;  %841 = vperm.xlu2 %2269, %v837_v1  }
  0x64   : > { %846 = vperm.xlu0 %2265, %v2763_v13  }
  0x68   : > { %861 = vperm.xlu1 %2268, %v857_v17   ;;  %2270 = vset.pattern.permute.xlu2 %v2450_v14 }
  0x69   : > { %1266 = vperm.xlu2 %2270, %v2744_v9  }
  0x6c   : > { %2271 = vset.pattern.permute.xlu0 %v2450_v14 }
  0x6d   : > { %1270 = vperm.xlu0 %2271, %v818_v15  }
  0x70   : > { %866 = vperm.xlu1 %2268, %v2782_v33  }
  0x71   : > { %1282 = vperm.xlu2 %2270, %v837_v1  }
  0x75   : > { %2274 = vset.pattern.permute.xlu0 %v2451_v18 }
  0x76   : > { %1706 = vperm.xlu0 %2274, %v818_v15   ;;  %v1059_v15 = vsub.f32 %v2675_v47, %v2641_v35 }
  0x78   : > { %2272 = vset.pattern.permute.xlu1 %v2450_v14 }
  0x79   : > { %1286 = vperm.xlu1 %2272, %v2763_v13   ;;  %2273 = vset.pattern.permute.xlu2 %v2451_v18 }
  0x7a   : > { %1702 = vperm.xlu2 %2273, %v2744_v9  }
  0x7e   : > { %1734 = vperm.xlu0 %2274, %v857_v17  }
  0x81   : > { %1298 = vperm.xlu1 %2272, %v857_v17  }
  0x82   : > { %2275 = vset.pattern.permute.xlu2 %v2450_v14 }
  0x83   : > { %1302 = vperm.xlu2 %2275, %v2782_v33  }
  0x89   : > { %2276 = vset.pattern.permute.xlu1 %v2451_v18 }
  0x8a   : > { %1718 = vperm.xlu1 %2276, %v837_v1  }
  0x8b   : > { %2277 = vset.pattern.permute.xlu2 %v2451_v18 }
  0x8c   : > { %1722 = vperm.xlu2 %2277, %v2763_v13  }
  0x92   : > { %1738 = vperm.xlu1 %2276, %v2782_v33  }
  0xa8   : > { %v2856_v17 = vpop.permute.xlu2 %1578 }
  0xbe   : > { %v685_v16 = vpop.permute.xlu0 %684 }
  0xc6   : > { %v695_v21 = vpop.permute.xlu0 %694 }
  0xce   : > { %v2870_v33 = vpop.permute.xlu0 %821 }
  0xd6   : > { %v618_v19 = vpop.f32.mrf.mxu0 }
  0xd7   : > { %v687_v20 = vmul.f32 %v685_v16, %v618_v19  ;;  %v638_v22 = vpop.f32.mrf.mxu1  ;;  %v1056_v19 = vsub.f32 %v2746_v10, %v2715_v62  ;;  %v1143_v62 = vpop.permute.xlu1 %1142 }
  0xd8   : > { %v688_v30 = vmul.f32 %v685_v16, %v638_v22 }
  0xd9   : > { %v697_v23 = vadd.f32 %v695_v21, %v687_v20 }
  0xda   : > { %v698_v43 = vadd.f32 %v695_v21, %v688_v30 }
  0xdb   : > { %v701_v39 = vmax.f32 %v697_v23, 0.0  ;;  %v2862_v23 = vpop.permute.xlu2 %1586 }
  0xdc   : > { %v702_v48 = vmax.f32 %v698_v43, 0.0 }
  0xdd   : > { %2131 = vmatpush.msk.msrb.mxu0 %vm712_vm1, %v701_v39 }
  0xde   : > { %2132 = vmatmul.msk.f32.vlgmr.msrb.gmra.mxu0 %vm705_vm2, %v2788_v24  ;;  %2134 = vmatpush.msk.msrb.mxu1 %vm712_vm1, %v702_v48 }
  0xdf   : > { %1075 = vmatpush.msra.mxu0 %v1057_v46  ;;  %v658_v37 = vpop.f32.mrf.mxu2  ;;  %2135 = vmatmul.msk.f32.vlgmr.msrb.gmra.mxu1 %vm705_vm2, %v2788_v24  ;;  %v1151_v20 = vpop.permute.xlu1 %1150 }
  0xe0   : > { %v689_v60 = vmul.f32 %v685_v16, %v658_v37  ;;  %v678_v63 = vpop.f32.mrf.mxu3  ;;  %1095 = vmatpush.msra.mxu1 %v1058_v52 }
  0xe1   : > { %1076 = vmatpush.msra.mxu0 %v1053_v53  ;;  %v690_v3 = vmul.f32 %v685_v16, %v678_v63  ;;  %v1060_v16 = vsub.f32 %v2695_v55, %v2660_v41 }
  0xe2   : > { %v699_v4 = vadd.f32 %v695_v21, %v689_v60  ;;  %1096 = vmatpush.msra.mxu1 %v1054_v54 }
  0xe3   : > { %v700_v7 = vadd.f32 %v695_v21, %v690_v3  ;;  %v2873_v46 = vpop.permute.xlu2 %841 }
  0xe4   : > { %v703_v11 = vmax.f32 %v699_v4, 0.0 }
  0xe5   : > { %v704_v12 = vmax.f32 %v700_v7, 0.0 }
  0xe6   : > { %2133 = vmatmul.msk.f32.gmra.mxu0 %vm705_vm2, %v2812_v6  ;;  %2137 = vmatpush.msk.msrb.mxu2 %vm712_vm1, %v703_v11 }
  0xe7   : > { %2140 = vmatpush.msk.msrb.mxu3 %vm712_vm1, %v704_v12  ;;  %2138 = vmatmul.msk.f32.vlgmr.msrb.gmra.mxu2 %vm705_vm2, %v2788_v24  ;;  %v2866_v9 = vpop.permute.xlu1 %826 }
  0xe8   : > { %2141 = vmatmul.msk.f32.vlgmr.msrb.gmra.mxu3 %vm705_vm2, %v2788_v24  ;;  %2136 = vmatmul.msk.f32.gmra.mxu1 %vm705_vm2, %v2812_v6 }
  0xe9   : > { %1115 = vmatpush.msra.mxu2 %v1059_v15  ;;  %1135 = vmatpush.msra.mxu3 %v1060_v16  ;;  %v1493_v15 = vsub.f32 %v2652_v38, %v2610_v26 }
  0xeb   : > { %1116 = vmatpush.msra.mxu2 %v1055_v25  ;;  %1136 = vmatpush.msra.mxu3 %v1056_v19  ;;  %v847_v25 = vpop.permute.xlu0 %846 }
  0xee   : > { %2151 = vmatmul.msk.f32.vlgmr.msra.gmra.mxu0 %vm597_vm0, %v2732_v5 }
  0xef   : > { %2139 = vmatmul.msk.f32.gmra.mxu2 %vm705_vm2, %v2812_v6  ;;  %v2877_v37 = vpop.permute.xlu1 %861 }
  0xf0   : > { %2142 = vmatmul.msk.f32.gmra.mxu3 %vm705_vm2, %v2812_v6  ;;  %2152 = vmatmul.msk.f32.vlgmr.msra.gmra.mxu1 %vm597_vm0, %v2732_v5 }
  0xf7   : > { %2153 = vmatmul.msk.f32.vlgmr.msra.gmra.mxu2 %vm597_vm0, %v2732_v5 }
  0xf8   : > { %2154 = vmatmul.msk.f32.vlgmr.msra.gmra.mxu3 %vm597_vm0, %v2732_v5 }
 0x15b   : > { %v2858_v21 = vpop.f32.mrf.mxu0 }
 0x15c   : > { %v2860_v22 = vpop.f32.mrf.mxu1 }
 0x163   : > { %v2864_v30 = vpop.f32.mrf.mxu0 }
 0x165   : > { %v2868_v14 = vpop.f32.mrf.mxu1 }
 0x16a   : > { %v788_v18 = vpop.f32.mrf.mxu2 }
 0x16b   : > { %v1078_v13 = vpop.f32.mrf.mxu0  ;;  %v831_v39 = vmul.f32 %v2870_v33, %v788_v18  ;;  %v811_v43 = vpop.f32.mrf.mxu3 }
 0x16c   : > { %v1145_v48 = vmul.f32 %v1143_v62, %v1078_v13  ;;  %v832_v53 = vmul.f32 %v2870_v33, %v811_v43  ;;  %v1494_v13 = vsub.f32 %v2663_v42, %v2619_v28  ;;  %v867_v43 = vpop.permute.xlu1 %866 }
 0x16d   : > { %v851_v52 = vadd.f32 %v2873_v46, %v831_v39  ;;  %v1098_v54 = vpop.f32.mrf.mxu1 }
 0x16e   : > { %v852_v63 = vadd.f32 %v2873_v46, %v832_v53  ;;  %v1153_v1 = vadd.f32 %v1151_v20, %v1145_v48  ;;  %v1146_v3 = vmul.f32 %v1143_v62, %v1098_v54  ;;  %v1489_v53 = vsub.f32 %v2707_v59, %v2667_v44 }
 0x16f   : > { %v2880_v60 = vadd.f32 %v2877_v37, %v851_v52 }
 0x170   : > { %v2884_v4 = vadd.f32 %v2877_v37, %v852_v63  ;;  %v1157_v7 = vmax.f32 %v1153_v1, 0.0  ;;  %v1154_v11 = vadd.f32 %v1151_v20, %v1146_v3 }
 0x172   : > { %v791_v12 = vpop.f32.mrf.mxu2  ;;  %2155 = vmatpush.msk.msrb.mxu0 %vm712_vm1, %v1157_v7  ;;  %v1158_v19 = vmax.f32 %v1154_v11, 0.0 }
 0x173   : > { %v835_v16 = vmul.f32 %v2866_v9, %v791_v12  ;;  %2156 = vmatmul.msk.f32.vlgmr.msrb.gmra.mxu0 %vm705_vm2, %v2788_v24  ;;  %v814_v18 = vpop.f32.mrf.mxu3 }
 0x174   : > { %1511 = vmatpush.msra.mxu0 %v1493_v15  ;;  %2158 = vmatpush.msk.msrb.mxu1 %vm712_vm1, %v1158_v19  ;;  %v836_v52 = vmul.f32 %v2866_v9, %v814_v18  ;;  %v1490_v15 = vsub.f32 %v2724_v2, %v2683_v50  ;;  %v1495_v19 = vsub.f32 %v2675_v47, %v2638_v34 }
 0x175   : > { %v855_v39 = vadd.f32 %v847_v25, %v835_v16  ;;  %2159 = vmatmul.msk.f32.vlgmr.msrb.gmra.mxu1 %vm705_vm2, %v2788_v24 }
 0x176   : > { %1531 = vmatpush.msra.mxu1 %v1494_v13  ;;  %1512 = vmatpush.msra.mxu0 %v1489_v53  ;;  %v856_v63 = vadd.f32 %v847_v25, %v836_v52  ;;  %v1491_v13 = vsub.f32 %v2739_v8, %v2701_v57  ;;  %v1492_v52 = vsub.f32 %v2746_v10, %v2712_v61 }
 0x177   : > { %v2895_v48 = vadd.f32 %v867_v43, %v855_v39  ;;  %v1496_v39 = vsub.f32 %v2695_v55, %v2657_v40  ;;  %v829_v61 = vmul.f32 %v2870_v33, %v2858_v21 }
 0x178   : > { %v2906_v7 = vadd.f32 %v867_v43, %v856_v63  ;;  %1532 = vmatpush.msra.mxu1 %v1490_v15 }
 0x179   : > { %v849_v53 = vadd.f32 %v2873_v46, %v829_v61  ;;  %v2966_v61 = vpop.permute.xlu1 %1286  ;;  %v2149_v40 = vmul.f32 -1.442695, %v2895_v48 }
 0x17a   : > { %v1118_v54 = vpop.f32.mrf.mxu2 }
 0x17b   : > { %2157 = vmatmul.msk.f32.gmra.mxu0 %vm705_vm2, %v2812_v6  ;;  %v1147_v1 = vmul.f32 %v1143_v62, %v1118_v54  ;;  %v1138_v3 = vpop.f32.mrf.mxu3  ;;  %v833_v54 = vmul.f32 %v2866_v9, %v2864_v30 }
 0x17c   : > { %v1148_v12 = vmul.f32 %v1143_v62, %v1138_v3 }
 0x17d   : > { %2160 = vmatmul.msk.f32.gmra.mxu1 %vm705_vm2, %v2812_v6  ;;  %v1155_v11 = vadd.f32 %v1151_v20, %v1147_v1  ;;  %v869_v1 = vadd.f32 %v2877_v37, %v849_v53  ;;  %v853_v3 = vadd.f32 %v847_v25, %v833_v54  ;;  %v2146_v54 = vmul.f32 -1.442695, %v2884_v4 }
 0x17e   : > { %v1156_v18 = vadd.f32 %v1151_v20, %v1148_v12  ;;  %v830_v20 = vmul.f32 %v2870_v33, %v2860_v22 }
 0x17f   : > { %v1159_v16 = vmax.f32 %v1155_v11, 0.0  ;;  %v834_v11 = vmul.f32 %v2866_v9, %v2868_v14  ;;  %v2143_v12 = vmul.f32 -1.442695, %v869_v1  ;;  %v873_v21 = vadd.f32 %v867_v43, %v853_v3 }
 0x180   : > { %v1160_v62 = vmax.f32 %v1156_v18, 0.0  ;;  %v850_v63 = vadd.f32 %v2873_v46, %v830_v20  ;;  %v2948_v46 = vpop.permute.xlu2 %1266 }
 0x181   : > { %2161 = vmatpush.msk.msrb.mxu2 %vm712_vm1, %v1159_v16  ;;  %v854_v15 = vadd.f32 %v847_v25, %v834_v11  ;;  %2278 = vpow2.f32 %v2143_v12  ;;  %v2147_v22 = vmul.f32 -1.442695, %v873_v21 }
 0x182   : > { %2162 = vmatmul.msk.f32.vlgmr.msrb.gmra.mxu2 %vm705_vm2, %v2788_v24  ;;  %2164 = vmatpush.msk.msrb.mxu3 %vm712_vm1, %v1160_v62 }
 0x183   : > { %2175 = vmatmul.msk.f32.vlgmr.msra.gmra.mxu0 %vm597_vm0, %v2732_v5  ;;  %1551 = vmatpush.msra.mxu2 %v1495_v19  ;;  %v874_v33 = vadd.f32 %v867_v43, %v854_v15  ;;  %v2145_v43 = vmul.f32 -1.442695, %v2880_v60  ;;  %v3017_v60 = vpop.permute.xlu1 %1298 }
 0x184   : > { %2165 = vmatmul.msk.f32.vlgmr.msrb.gmra.mxu3 %vm705_vm2, %v2788_v24 }
 0x185   : > { %2176 = vmatmul.msk.f32.vlgmr.msra.gmra.mxu1 %vm597_vm0, %v2732_v5  ;;  %1552 = vmatpush.msra.mxu2 %v1491_v13  ;;  %v2148_v30 = vmul.f32 -1.442695, %v874_v33 }
 0x186   : > { %1571 = vmatpush.msra.mxu3 %v1496_v39 }
 0x187   : > { %v2279_v19 = vpop.eup %2278 }
 0x188   : > { %1572 = vmatpush.msra.mxu3 %v1492_v52  ;;  %v2950_v13 = vadd.f32 1.0, %v2279_v19  ;;  %v2962_v39 = vpop.permute.xlu2 %1282 }
 0x18a   : > { %2163 = vmatmul.msk.f32.gmra.mxu2 %vm705_vm2, %v2812_v6  ;;  %vm914_vm3 = vweird.f32 %v2950_v13 }
 0x18c   : > { %2166 = vmatmul.msk.f32.gmra.mxu3 %vm705_vm2, %v2812_v6 }
 0x192   : > { %2177 = vmatmul.msk.f32.vlgmr.msra.gmra.mxu2 %vm597_vm0, %v2732_v5 }
 0x194   : > { %2178 = vmatmul.msk.f32.vlgmr.msra.gmra.mxu3 %vm597_vm0, %v2732_v5  ;;  %v870_v5 = vadd.f32 %v2877_v37, %v850_v63 }
 0x196   : > { %v2144_v16 = vmul.f32 -1.442695, %v870_v5 }
 0x198   : > { %2280 = vpow2.f32 %v2144_v16 }
 0x199   : > { %2282 = vpow2.f32 %v2147_v22  ;;  %v918_v22 = vand.u32 2147483647, %v2950_v13 }
 0x19a   : > { %2284 = vpow2.f32 %v2148_v30 }
 0x19b   : > { %2286 = vrcp.f32 %v2950_v13  ;;  %vm3027_vm6 = vcmp.eq.f32.partialorder %v918_v22, 8.507059e+37 }
 0x19e   : > { %v2281_v18 = vpop.eup %2280 }
 0x19f   : > { %v2283_v9 = vpop.eup %2282  ;;  %v2952_v14 = vadd.f32 1.0, %v2281_v18 }
 0x1a0   : > { %v2955_v37 = vadd.f32 1.0, %v2283_v9  ;;  %v2285_v25 = vpop.eup %2284 }
 0x1a1   : > { %2288 = vrcp.f32 %v2952_v14  ;;  %v2960_v62 = vadd.f32 1.0, %v2285_v25  ;;  %v2964_v52 = vpop.eup %2286  ;;  %v920_v25 = vand.u32 2147483648, %v2950_v13  ;;  %v933_v18 = vand.u32 2147483647, %v2952_v14 }
 0x1a2   : > { %2290 = vrcp.f32 %v2955_v37  ;;  %v910_v53 = vmul.f32 %v2964_v52, %v2950_v13  ;;  %vm929_vm4 = vweird.f32 %v2952_v14  ;;  %vm915_vm5 = vweird.f32 %v2964_v52 }
 0x1a3   : > { %2292 = vpow2.f32 %v2145_v43  ;;  %v935_v43 = vand.u32 2147483648, %v2952_v14  ;;  %v921_v33 = vor.u32 1.1754944e-38, %v920_v25  ;;  %vm974_vm7 = vweird.f32 %v2955_v37  ;;  %vm3058_vm11 = vmor %vm914_vm3, %vm915_vm5 }
 0x1a4   : > { %2294 = vrcp.f32 %v2960_v62  ;;  %v911_v12 = vsub.f32 1.0, %v910_v53  ;;  %vm3040_vm8 = vcmp.eq.f32.partialorder %v933_v18, 8.507059e+37  ;;  %v2150_v13 = vmul.f32 -1.442695, %v2906_v7 }
 0x1a5   : > { %2296 = vpow2.f32 %v2146_v54  ;;  %v3006_v54 = vpop.permute.xlu2 %1702  ;;  %v936_v1 = vor.u32 1.1754944e-38, %v935_v43  ;;  %v3038_v43 = vpop.permute.xlu0 %1270  ;;  %vm989_vm14 = vweird.f32 %v2960_v62 }
 0x1a6   : > { %3703 = vst [vmem:[#allocation16_spill] sm:$0xff] %v3006_v54  ;;  %v912_v9 = vmul.f32 %v2964_v52, %v911_v12  ;;  %v978_v12 = vand.u32 2147483647, %v2955_v37 }
 0x1a7   : > { %v2968_v20 = vpop.eup %2288 }
 0x1a8   : > { %v2974_v63 = vpop.eup %2290  ;;  %v925_v5 = vmul.f32 %v2968_v20, %v2952_v14  ;;  %v913_v25 = vadd.f32 %v2964_v52, %v912_v9  ;;  %vm930_vm9 = vweird.f32 %v2968_v20  ;;  %vm3048_vm10 = vcmp.eq.f32.partialorder %v978_v12, 8.507059e+37 }
 0x1a9   : > { %v970_v21 = vmul.f32 %v2974_v63, %v2955_v37  ;;  %v2293_v15 = vpop.eup %2292  ;;  %v980_v9 = vand.u32 2147483648, %v2955_v37  ;;  %vm975_vm12 = vweird.f32 %v2974_v63  ;;  %vm3082_vm13 = vmor %vm929_vm4, %vm930_vm9 }
 0x1aa   : > { %v2998_v19 = vpop.eup %2294  ;;  %v926_v4 = vsub.f32 1.0, %v925_v5  ;;  %v3015_v3 = vadd.f32 1.0, %v2293_v15  ;;  %v917_v48 = vsel %vm3058_vm11, %v2964_v52, %v913_v25  ;;  %vm3095_vm15 = vmor %vm974_vm7, %vm975_vm12 }
 0x1ab   : > { %v971_v30 = vsub.f32 1.0, %v970_v21  ;;  %v985_v16 = vmul.f32 %v2998_v19, %v2960_v62  ;;  %v981_v7 = vor.u32 1.1754944e-38, %v980_v9  ;;  %vm990_vm0 = vweird.f32 %v2998_v19 }
 0x1ac   : > { %v927_v54 = vmul.f32 %v2968_v20, %v926_v4  ;;  %2298 = vrcp.f32 %v3015_v3  ;;  %vm3133_vm4 = vmor %vm989_vm14, %vm990_vm0 }
 0x1ad   : > { %v972_v36 = vmul.f32 %v2974_v63, %v971_v30  ;;  %v986_v41 = vsub.f32 1.0, %v985_v16  ;;  %v3071_v47 = vpop.permute.xlu2 %1302  ;;  %v995_v16 = vand.u32 2147483648, %v2960_v62 }
 0x1af   : > { %v987_v35 = vmul.f32 %v2998_v19, %v986_v41  ;;  %v993_v41 = vand.u32 2147483647, %v2960_v62  ;;  %v996_v30 = vor.u32 1.1754944e-38, %v995_v16 }
 0x1b1   : > { %vm3112_vm3 = vcmp.eq.f32.partialorder %v993_v41, 8.507059e+37 }
 0x1f0   : > { %v1190_v53 = vpop.f32.mrf.mxu0 }
 0x1f1   : > { %v1273_v11 = vmul.f32 %v2948_v46, %v1190_v53  ;;  %v2297_v53 = vpop.eup %2296 }
 0x1f2   : > { %v1213_v21 = vpop.f32.mrf.mxu1  ;;  %v3044_v4 = vadd.f32 1.0, %v2297_v53 }
 0x1f3   : > { %v1289_v5 = vadd.f32 %v2962_v39, %v1273_v11  ;;  %v1274_v55 = vmul.f32 %v2948_v46, %v1213_v21 }
 0x1f5   : > { %v1305_v11 = vadd.f32 %v3017_v60, %v1289_v5  ;;  %v1290_v21 = vadd.f32 %v2962_v39, %v1274_v55  ;;  %v928_v55 = vadd.f32 %v2968_v20, %v927_v54 }
 0x1f7   : > { %v2167_v5 = vmul.f32 -1.442695, %v1305_v11  ;;  %v1306_v53 = vadd.f32 %v3017_v60, %v1290_v21  ;;  %v973_v11 = vadd.f32 %v2974_v63, %v972_v36  ;;  %v932_v25 = vsel %vm3082_vm13, %v2968_v20, %v928_v55 }
 0x1f8   : > { %v1193_v18 = vpop.f32.mrf.mxu0  ;;  %v988_v55 = vadd.f32 %v2998_v19, %v987_v35 }
 0x1f9   : > { %2300 = vpow2.f32 %v2167_v5  ;;  %v1277_v12 = vmul.f32 %v3038_v43, %v1193_v18  ;;  %v2168_v54 = vmul.f32 -1.442695, %v1306_v53  ;;  %v3076_v5 = vpop.eup %2298  ;;  %v977_v20 = vsel %vm3095_vm15, %v2974_v63, %v973_v11 }
 0x1fa   : > { %2302 = vrcp.f32 %v3044_v4  ;;  %v1216_v52 = vpop.f32.mrf.mxu1  ;;  %v940_v63 = vmul.f32 %v3076_v5, %v3015_v3  ;;  %v982_v35 = vsel %vm3048_vm10, %v981_v7, %v977_v20  ;;  %v950_v7 = vand.u32 2147483648, %v3015_v3 }
 0x1fb   : > { %v1293_v21 = vadd.f32 %v2966_v61, %v1277_v12  ;;  %2304 = vpow2.f32 %v2149_v40  ;;  %v1278_v9 = vmul.f32 %v3038_v43, %v1216_v52  ;;  %v922_v40 = vsel %vm3027_vm6, %v921_v33, %v917_v48 }
 0x1fc   : > { %2306 = vpow2.f32 %v2168_v54  ;;  %v937_v54 = vsel %vm3040_vm8, %v936_v1, %v932_v25  ;;  %v3721_v25 = vsub.f32 %v2683_v50, %v2686_v51  ;;  %v941_v16 = vsub.f32 1.0, %v940_v63 }
 0x1fd   : > { %v1309_v18 = vadd.f32 %v3071_v47, %v1293_v21  ;;  %2308 = vpow2.f32 %v2150_v13  ;;  %v1294_v53 = vadd.f32 %v2966_v61, %v1278_v9  ;;  %v3718_v21 = vsub.f32 %v2667_v44, %v2670_v45 }
 0x1fe   : > { %v1038_v14 = vmul.f32 %v3721_v25, %v937_v54  ;;  %v992_v45 = vsel %vm3133_vm4, %v2998_v19, %v988_v55  ;;  %vm945_vm11 = vweird.f32 %v3076_v5  ;;  %vm944_vm15 = vweird.f32 %v3015_v3 }
 0x1ff   : > { %v2301_v37 = vpop.eup %2300  ;;  %v2171_v12 = vmul.f32 -1.442695, %v1309_v18  ;;  %v1310_v13 = vadd.f32 %v3071_v47, %v1294_v53  ;;  %v1037_v36 = vmul.f32 %v3718_v21, %v922_v40  ;;  %v3722_v40 = vsub.f32 %v2610_v26, %v2616_v27 }
 0x200   : > { %v3118_v15 = vadd.f32 1.0, %v2301_v37  ;;  %v1514_v48 = vpop.f32.mrf.mxu0  ;;  %v3120_v11 = vpop.eup %2302  ;;  %v3178_v21 = vmul.f32 %v3076_v5, %v941_v16 }
 0x201   : > { %2310 = vpow2.f32 %v2171_v12  ;;  %v1581_v1 = vmul.f32 %v2856_v17, %v1514_v48  ;;  %v2305_v22 = vpop.eup %2304  ;;  %v2172_v9 = vmul.f32 -1.442695, %v1310_v13  ;;  %v1041_v20 = vmul.f32 %v3722_v40, %v982_v35 }
 0x202   : > { %2312 = vrcp.f32 %v3118_v15  ;;  %v2307_v52 = vpop.eup %2306  ;;  %v1534_v12 = vpop.f32.mrf.mxu1  ;;  %v3152_v51 = vadd.f32 1.0, %v2305_v22  ;;  %v3156_v55 = vadd.f32 %v1037_v36, %v2707_v59  ;;  %v997_v48 = vsel %vm3112_vm3, %v996_v30, %v992_v45 }
 0x203   : > { %v1589_v62 = vadd.f32 %v2862_v23, %v1581_v1  ;;  %v2309_v18 = vpop.eup %2308  ;;  %v3150_v53 = vadd.f32 1.0, %v2307_v52  ;;  %2314 = vpow2.f32 %v2172_v9  ;;  %v1582_v19 = vmul.f32 %v2856_v17, %v1534_v12 }
 0x204   : > { %v3162_v27 = vmul.f32 %v3120_v11, %v3044_v4  ;;  %v3166_v35 = vadd.f32 %v1038_v14, %v2724_v2  ;;  %v3168_v13 = vor.u32 1.1754944e-38, %v950_v7  ;;  %v3170_v1 = vadd.f32 1.0, %v2309_v18 }
 0x205   : > { %v1593_v54 = vmax.f32 %v1589_v62, 0.0  ;;  %2316 = vrcp.f32 %v3150_v53  ;;  %v1590_v59 = vadd.f32 %v2862_v23, %v1582_v19  ;;  %v3175_v22 = vadd.f32 %v1041_v20, %v2652_v38  ;;  %v1236_v16 = vpop.f32.mrf.mxu2 }
 0x206   : > { %v3723_v2 = vsub.f32 %v2619_v28, %v2630_v31  ;;  %2318 = vrcp.f32 %v3152_v51  ;;  %v1354_v25 = vand.u32 2147483647, %v3118_v15  ;;  %v1356_v14 = vand.u32 2147483648, %v3118_v15 }
 0x207   : > { %v2311_v63 = vpop.eup %2310  ;;  %2179 = vmatpush.msk.msrb.mxu0 %vm712_vm1, %v1593_v54  ;;  %v1594_v7 = vmax.f32 %v1590_v59, 0.0  ;;  %vm1350_vm5 = vweird.f32 %v3118_v15  ;;  %v1369_v62 = vand.u32 2147483647, %v3150_v53  ;;  %v1371_v18 = vand.u32 2147483648, %v3150_v53  ;;  %v1259_v52 = vpop.f32.mrf.mxu3 }
 0x208   : > { %v2313_v33 = vpop.eup %2312  ;;  %v3181_v41 = vadd.f32 1.0, %v2311_v63  ;;  %2180 = vmatmul.msk.f32.vlgmr.msrb.gmra.mxu0 %vm705_vm2, %v2788_v24  ;;  %v3188_v30 = vmul.f32 %v3723_v2, %v997_v48  ;;  %v1275_v19 = vmul.f32 %v2948_v46, %v1236_v16  ;;  %vm3213_vm8 = vcmp.eq.f32.partialorder %v1354_v25, 8.507059e+37 }
 0x209   : > { %v1346_v38 = vmul.f32 %v2313_v33, %v3118_v15  ;;  %v2315_v45 = vpop.eup %2314  ;;  %vm1351_vm6 = vweird.f32 %v2313_v33  ;;  %2182 = vmatpush.msk.msrb.mxu1 %vm712_vm1, %v1594_v7  ;;  %v1357_v59 = vor.u32 1.1754944e-38, %v1356_v14  ;;  %vm1365_vm9 = vweird.f32 %v3150_v53 }
 0x20a   : > { %2320 = vrcp.f32 %v3181_v41  ;;  %v3201_v40 = vadd.f32 1.0, %v2315_v45  ;;  %v1414_v20 = vand.u32 2147483647, %v3181_v41  ;;  %2183 = vmatmul.msk.f32.vlgmr.msrb.gmra.mxu1 %vm705_vm2, %v2788_v24  ;;  %v1416_v15 = vand.u32 2147483648, %v3181_v41  ;;  %vm3209_vm7 = vmor %vm1350_vm5, %vm1351_vm6 }
 0x20b   : > { %2322 = vrcp.f32 %v3170_v1  ;;  %v1347_v9 = vsub.f32 1.0, %v1346_v38  ;;  %v2317_v31 = vpop.eup %2316  ;;  %v1291_v45 = vadd.f32 %v2962_v39, %v1275_v19  ;;  %vm3223_vm12 = vcmp.eq.f32.partialorder %v1369_v62, 8.507059e+37 }
 0x20c   : > { %v1361_v54 = vmul.f32 %v2317_v31, %v3150_v53  ;;  %2324 = vrcp.f32 %v3201_v40  ;;  %v3219_v2 = vpop.eup %2318  ;;  %vm1366_vm10 = vweird.f32 %v2317_v31  ;;  %v1372_v16 = vor.u32 1.1754944e-38, %v1371_v18 }
 0x20d   : > { %v1348_v12 = vmul.f32 %v2313_v33, %v1347_v9  ;;  %vm1410_vm13 = vweird.f32 %v3181_v41  ;;  %vm3228_vm14 = vcmp.eq.f32.partialorder %v1414_v20, 8.507059e+37  ;;  %v1417_v36 = vor.u32 1.1754944e-38, %v1416_v15  ;;  %vm3245_vm0 = vmor %vm1365_vm9, %vm1366_vm10  ;;  %v1239_v10 = vpop.f32.mrf.mxu2 }
 0x20e   : > { %v1362_v7 = vsub.f32 1.0, %v1361_v54  ;;  %vm1425_vm3 = vweird.f32 %v3201_v40  ;;  %v1276_v48 = vmul.f32 %v2948_v46, %v1259_v52  ;;  %v1429_v53 = vand.u32 2147483647, %v3201_v40 }
 0x20f   : > { %v1349_v38 = vadd.f32 %v2313_v33, %v1348_v12  ;;  %vm960_vm6 = vweird.f32 %v3120_v11  ;;  %v3740_v25 = vsub.f32 %v2698_v56, %v2683_v50  ;;  %vm959_vm9 = vweird.f32 %v3044_v4 }
 0x210   : > { %v2321_v9 = vpop.eup %2320  ;;  %2181 = vmatmul.msk.f32.gmra.mxu0 %vm705_vm2, %v2812_v6  ;;  %v1363_v19 = vmul.f32 %v2317_v31, %v1362_v7  ;;  %v1292_v34 = vadd.f32 %v2962_v39, %v1276_v48  ;;  %v3746_v14 = vsub.f32 %v2625_v29, %v2610_v26 }
 0x211   : > { %v3234_v12 = vpop.eup %2322  ;;  %v1353_v54 = vsel %vm3209_vm7, %v2313_v33, %v1349_v38  ;;  %v1406_v62 = vmul.f32 %v2321_v9, %v3181_v41  ;;  %v1307_v33 = vadd.f32 %v3017_v60, %v1291_v45  ;;  %v3734_v38 = vsub.f32 %v2680_v49, %v2667_v44 }
 0x212   : > { %v1358_v18 = vsel %vm3213_vm8, %v1357_v59, %v1353_v54  ;;  %v1364_v15 = vadd.f32 %v2317_v31, %v1363_v19  ;;  %vm1411_vm4 = vweird.f32 %v2321_v9  ;;  %v2325_v59 = vpop.eup %2324  ;;  %v1431_v54 = vand.u32 2147483648, %v3201_v40  ;;  %2184 = vmatmul.msk.f32.gmra.mxu1 %vm705_vm2, %v2812_v6 }
 0x213   : > { %v1473_v7 = vmul.f32 %v3734_v38, %v1358_v18  ;;  %v1407_v63 = vsub.f32 1.0, %v1406_v62  ;;  %v2169_v37 = vmul.f32 -1.442695, %v1307_v33  ;;  %v1421_v44 = vmul.f32 %v2325_v59, %v3201_v40  ;;  %vm3268_vm7 = vmor %vm1410_vm13, %vm1411_vm4 }
 0x214   : > { %v1368_v46 = vsel %vm3245_vm0, %v2317_v31, %v1364_v15  ;;  %vm1426_vm5 = vweird.f32 %v2325_v59  ;;  %v1308_v45 = vadd.f32 %v3017_v60, %v1292_v34  ;;  %v1279_v31 = vmul.f32 %v3038_v43, %v1239_v10  ;;  %v1262_v15 = vpop.f32.mrf.mxu3 }
 0x215   : > { %v1408_v52 = vmul.f32 %v2321_v9, %v1407_v63  ;;  %v1373_v49 = vsel %vm3223_vm12, %v1372_v16, %v1368_v46  ;;  %2326 = vpow2.f32 %v2169_v37  ;;  %v3737_v19 = vand.u32 2147483647, %v3015_v3  ;;  %vm3303_vm10 = vmor %vm1425_vm3, %vm1426_vm5 }
 0x216   : > { %v1474_v16 = vmul.f32 %v3740_v25, %v1373_v49  ;;  %v1422_v18 = vsub.f32 1.0, %v1421_v44  ;;  %v3284_v20 = vadd.f32 %v1473_v7, %v3156_v55  ;;  %v943_v34 = vadd.f32 %v3076_v5, %v3178_v21  ;;  %vm3313_vm12 = vmor %vm944_vm15, %vm945_vm11 }
 0x217   : > { %vm3276_vm8 = vcmp.eq.f32.partialorder %v3737_v19, 8.507059e+37  ;;  %v1409_v41 = vadd.f32 %v2321_v9, %v1408_v52  ;;  %v3741_v10 = vsub.f32 1.0, %v3162_v27  ;;  %v2170_v37 = vmul.f32 -1.442695, %v1308_v45  ;;  %v1554_v52 = vpop.f32.mrf.mxu2  ;;  %vm3353_vm11 = vmor %vm959_vm9, %vm960_vm6  ;;  %v3385_v27 = vld [vmem:[%s2622_s13 + $0x18] sm:$0xff] }
 0x218   : > { %v1295_v33 = vadd.f32 %v2966_v61, %v1279_v31  ;;  %v1423_v56 = vmul.f32 %v2325_v59, %v1422_v18  ;;  %v1432_v48 = vor.u32 1.1754944e-38, %v1431_v54  ;;  %v3296_v55 = vadd.f32 %v1474_v16, %v3166_v35 }
 0x219   : > { %v957_v60 = vmul.f32 %v3120_v11, %v3741_v10  ;;  %v1413_v50 = vsel %vm3268_vm7, %v2321_v9, %v1409_v41  ;;  %2328 = vpow2.f32 %v2170_v37  ;;  %v1280_v9 = vmul.f32 %v3038_v43, %v1262_v15 }
 0x21a   : > { %v1418_v21 = vsel %vm3228_vm14, %v1417_v36, %v1413_v50  ;;  %v1311_v38 = vadd.f32 %v3071_v47, %v1295_v33  ;;  %v1000_v36 = vmul.f32 %v3219_v2, %v3152_v51  ;;  %v1424_v40 = vadd.f32 %v2325_v59, %v1423_v56  ;;  %v3372_v56 = vld [vmem:[%s2607_s11 + $0x18] sm:$0xff] }
 0x21b   : > { %vm1430_vm13 = vcmp.eq.f32.partialorder %v1429_v53, 8.507059e+37  ;;  %v1477_v7 = vmul.f32 %v3746_v14, %v1418_v21  ;;  %v2327_v63 = vpop.eup %2326  ;;  %v1050_v43 = vadd.f32 %v3188_v30, %v2663_v42  ;;  %v947_v3 = vsel %vm3313_vm12, %v3076_v5, %v943_v34 }
 0x21c   : > { %v2173_v54 = vmul.f32 -1.442695, %v1311_v38  ;;  %v1296_v46 = vadd.f32 %v2966_v61, %v1280_v9  ;;  %v1428_v44 = vsel %vm3303_vm10, %v2325_v59, %v1424_v40  ;;  %v3330_v53 = vadd.f32 1.0, %v2327_v63  ;;  %v1574_v25 = vpop.f32.mrf.mxu3 }
 0x21d   : > { %v1583_v26 = vmul.f32 %v2856_v17, %v1554_v52  ;;  %v3334_v29 = vadd.f32 %v1477_v7, %v3175_v22  ;;  %v958_v42 = vadd.f32 %v3120_v11, %v957_v60  ;;  %v1433_v30 = vsel %vm1430_vm13, %v1432_v48, %v1428_v44  ;;  %v3375_v48 = vld [vmem:[%s2613_s12 + $0x18] sm:$0xff] }
 0x21e   : > { %2330 = vpow2.f32 %v2173_v54  ;;  %v1312_v5 = vadd.f32 %v3071_v47, %v1296_v46  ;;  %v1001_v49 = vsub.f32 1.0, %v1000_v36  ;;  %v1015_v61 = vmul.f32 %v3234_v12, %v3170_v1 }
 0x21f   : > { %v3747_v59 = vsub.f32 %v2633_v32, %v2619_v28  ;;  %2332 = vrcp.f32 %v3330_v53  ;;  %v2329_v45 = vpop.eup %2328  ;;  %v952_v22 = vsel %vm3276_vm8, %v3168_v13, %v947_v3  ;;  %v963_v31 = vand.u32 2147483647, %v3044_v4 }
 0x220   : > { %v2174_v19 = vmul.f32 -1.442695, %v1312_v5  ;;  %v1591_v47 = vadd.f32 %v2862_v23, %v1583_v26  ;;  %v1008_v32 = vand.u32 2147483647, %v3152_v51  ;;  %v1010_v62 = vand.u32 2147483648, %v3152_v51  ;;  %v3769_v5 = vld [vmem:[#allocation12_spill] sm:$0xff] }
 0x221   : > { %v1478_v39 = vmul.f32 %v3747_v59, %v1433_v30  ;;  %v3359_v13 = vadd.f32 1.0, %v2329_v45  ;;  %v962_v41 = vsel %vm3353_vm11, %v3120_v11, %v958_v42  ;;  %v1584_v34 = vmul.f32 %v2856_v17, %v1574_v25 }
 0x222   : > { %2334 = vpow2.f32 %v2174_v19  ;;  %v1595_v18 = vmax.f32 %v1591_v47, 0.0  ;;  %v3750_v10 = vand.u32 2147483648, %v3044_v4  ;;  %v1002_v37 = vmul.f32 %v3219_v2, %v1001_v49 }
 0x223   : > { %v3361_v16 = vadd.f32 %v1478_v39, %v1050_v43  ;;  %v1016_v33 = vsub.f32 1.0, %v1015_v61  ;;  %2336 = vrcp.f32 %v3359_v13  ;;  %v1032_v11 = vsub.f32 %v3372_v56, %v3375_v48 }
 0x224   : > { %v966_v60 = vor.u32 1.1754944e-38, %v3750_v10  ;;  %v2331_v50 = vpop.eup %2330  ;;  %v3751_v15 = vsub.f32 %v2701_v57, %v2704_v58  ;;  %vm964_vm14 = vcmp.eq.f32.partialorder %v963_v31, 8.507059e+37  ;;  %v1592_v4 = vadd.f32 %v2862_v23, %v1584_v34  ;;  %2185 = vmatpush.msk.msrb.mxu2 %vm712_vm1, %v1595_v18 }
 0x225   : > { %v2333_v21 = vpop.eup %2332  ;;  %v1468_v38 = vsub.f32 %v3385_v27, %v3372_v56  ;;  %vm1004_vm15 = vweird.f32 %v3152_v51  ;;  %v3390_v35 = vadd.f32 1.0, %v2331_v50  ;;  %2186 = vmatmul.msk.f32.vlgmr.msrb.gmra.mxu2 %vm705_vm2, %v2788_v24  ;;  %vm3394_vm0 = vcmp.eq.f32.partialorder %v1008_v32, 8.507059e+37  ;;  %v3486_v56 = vld [vmem:[%s2622_s13 + $0x38] sm:$0xff] }
 0x226   : > { %v1039_v17 = vmul.f32 %v3751_v15, %v952_v22  ;;  %v967_v9 = vsel %vm964_vm14, %v966_v60, %v962_v41  ;;  %v1011_v23 = vor.u32 1.1754944e-38, %v1010_v62  ;;  %v1023_v36 = vand.u32 2147483647, %v3170_v1  ;;  %v3763_v15 = vld [vmem:[#allocation15_spill] sm:$0xff] }
 0x227   : > { %v1376_v40 = vmul.f32 %v2333_v21, %v3330_v53  ;;  %v1596_v14 = vmax.f32 %v1592_v4, 0.0  ;;  %v1003_v7 = vadd.f32 %v3219_v2, %v1002_v37  ;;  %vm1005_vm3 = vweird.f32 %v3219_v2  ;;  %v3764_v4 = vld [vmem:[#allocation8_spill] sm:$0xff] }
 0x228   : > { %v1017_v63 = vmul.f32 %v3234_v12, %v1016_v33  ;;  %2338 = vrcp.f32 %v3390_v35  ;;  %v2335_v43 = vpop.eup %2334  ;;  %v1047_v3 = vadd.f32 %v1039_v17, %v2739_v8  ;;  %v1040_v54 = vmul.f32 %v1032_v11, %v967_v9  ;;  %vm3418_vm5 = vmor %vm1004_vm15, %vm1005_vm3  ;;  %v3768_v8 = vld [vmem:[#allocation11_spill] sm:$0xff] }
 0x229   : > { %vm1019_vm4 = vweird.f32 %v3170_v1  ;;  %v1377_v46 = vsub.f32 1.0, %v1376_v40  ;;  %2188 = vmatpush.msk.msrb.mxu3 %vm712_vm1, %v1596_v14  ;;  %v2337_v52 = vpop.eup %2336  ;;  %v1025_v44 = vand.u32 2147483648, %v3170_v1  ;;  %v1384_v26 = vand.u32 2147483647, %v3330_v53 }
 0x22a   : > { %v1386_v42 = vand.u32 2147483648, %v3330_v53  ;;  %v3410_v30 = vadd.f32 1.0, %v2335_v43  ;;  %2189 = vmatmul.msk.f32.vlgmr.msrb.gmra.mxu3 %vm705_vm2, %v2788_v24  ;;  %vm3422_vm1 = vcmp.eq.f32.partialorder %v1023_v36, 8.507059e+37  ;;  %vm1381_vm6 = vweird.f32 %v2333_v21 }
 0x22b   : > { %v1378_v49 = vmul.f32 %v2333_v21, %v1377_v46  ;;  %v1391_v61 = vmul.f32 %v2337_v52, %v3359_v13  ;;  %v1007_v24 = vsel %vm3418_vm5, %v3219_v2, %v1003_v7  ;;  %v1018_v59 = vadd.f32 %v3234_v12, %v1017_v63 }
 0x22c   : > { %vm1020_vm7 = vweird.f32 %v3234_v12  ;;  %2340 = vrcp.f32 %v3410_v30  ;;  %vm1380_vm8 = vweird.f32 %v3330_v53  ;;  %v1399_v45 = vand.u32 2147483647, %v3359_v13 }
 0x22d   : > { %v1379_v51 = vadd.f32 %v2333_v21, %v1378_v49  ;;  %v1392_v39 = vsub.f32 1.0, %v1391_v61  ;;  %v1026_v31 = vor.u32 1.1754944e-38, %v1025_v44  ;;  %vm1382_vm9 = vmor %vm1380_vm8, %vm1381_vm6  ;;  %vm1385_vm10 = vcmp.eq.f32.partialorder %v1384_v26, 8.507059e+37  ;;  %2187 = vmatmul.msk.f32.gmra.mxu2 %vm705_vm2, %v2812_v6  ;;  %v2378_v44 = vld [vmem:[%s2607_s11 + $0x38] sm:$0xff]  ;;  %s3575_s11 = scalar_lea.vmem [#allocation5], %s2603_s30  ;;  %s2200_s30 = sshll.u32 (%p2559_p6), %s2431_s15, 2 }
 0x22e   : > { %v2339_v22 = vpop.eup %2338  ;;  %v1387_v19 = vor.u32 1.1754944e-38, %v1386_v42  ;;  %v1401_v47 = vand.u32 2147483648, %v3359_v13  ;;  %vm3440_vm12 = vmor %vm1019_vm4, %vm1020_vm7  ;;  %vm1396_vm13 = vweird.f32 %v2337_v52  ;;  %v1012_v62 = vsel %vm3394_vm0, %v1011_v23, %v1007_v24  ;;  %v3771_v24 = vld [vmem:[#allocation10_spill] sm:$0xff] }
 0x22f   : > { %v1383_v53 = vsel %vm1382_vm9, %v2333_v21, %v1379_v51  ;;  %v1393_v28 = vmul.f32 %v2337_v52, %v1392_v39  ;;  %v1436_v32 = vmul.f32 %v2339_v22, %v3390_v35  ;;  %v1022_v25 = vsel %vm3440_vm12, %v3234_v12, %v1018_v59  ;;  %v3765_v21 = vld [vmem:[#allocation9_spill] sm:$0xff] }
 0x230   : > { %v1388_v41 = vsel %vm1385_vm10, %v1387_v19, %v1383_v53  ;;  %vm1395_vm11 = vweird.f32 %v3359_v13  ;;  %v3760_v6 = vsub.f32 %v2719_v0, %v2701_v57  ;;  %vm3454_vm14 = vcmp.eq.f32.partialorder %v1399_v45, 8.507059e+37  ;;  %v2377_v13 = vld [vmem:[%s3674_s6 + $0x8] sm:$0xff] }
 0x231   : > { %v1394_v18 = vadd.f32 %v2337_v52, %v1393_v28  ;;  %v1437_v10 = vsub.f32 1.0, %v1436_v32  ;;  %vm1397_vm15 = vmor %vm1395_vm11, %vm1396_vm13  ;;  %v1402_v37 = vor.u32 1.1754944e-38, %v1401_v47  ;;  %vm1441_vm0 = vweird.f32 %v2339_v22  ;;  %v3773_v47 = vld [vmem:[#allocation14_spill] sm:$0xff]  ;;  %v3502_v32 = vpop.permute.xlu0 %1706 }
 0x232   : > { %v1475_v1 = vmul.f32 %v3760_v6, %v1388_v41  ;;  %v2341_v60 = vpop.eup %2340  ;;  %v1444_v33 = vand.u32 2147483647, %v3390_v35  ;;  %v1446_v12 = vand.u32 2147483648, %v3390_v35  ;;  %2190 = vmatmul.msk.f32.gmra.mxu3 %vm705_vm2, %v2377_v13  ;;  %v1048_v17 = vadd.f32 %v1040_v54, %v3763_v15  ;;  %v3774_v41 = vld [vmem:[#allocation16_spill] sm:$0xff] }
 0x233   : > { %v1398_v0 = vsel %vm1397_vm15, %v2337_v52, %v1394_v18  ;;  %v1438_v50 = vmul.f32 %v2339_v22, %v1437_v10  ;;  %v1451_v11 = vmul.f32 %v2341_v60, %v3410_v30  ;;  %v3766_v9 = vsub.f32 %v3764_v4, %v3765_v21 }
 0x234   : > { %v3464_v57 = vadd.f32 %v1475_v1, %v1047_v3  ;;  %v1027_v23 = vsel %vm3422_vm1, %v1026_v31, %v1022_v25  ;;  %v1403_v36 = vsel %vm3454_vm14, %v1402_v37, %v1398_v0  ;;  %vm1440_vm2 = vweird.f32 %v3390_v35  ;;  %v3767_v35 = vld [vmem:[#allocation13_spill] sm:$0xff]  ;;  %v3504_v25 = vpop.permute.xlu1 %1718 }
 0x235   : > { %v1043_v58 = vmul.f32 %v3766_v9, %v1012_v62  ;;  %v1476_v40 = vmul.f32 %v1468_v38, %v1403_v36  ;;  %v1439_v14 = vadd.f32 %v2339_v22, %v1438_v50  ;;  %v1452_v7 = vsub.f32 1.0, %v1451_v11  ;;  %vm1442_vm3 = vmor %vm1440_vm2, %vm1441_vm0 }
 0x236   : > { %vm1445_vm4 = vcmp.eq.f32.partialorder %v1444_v33, 8.507059e+37  ;;  %v1447_v63 = vor.u32 1.1754944e-38, %v1446_v12  ;;  %v1459_v43 = vand.u32 2147483647, %v3410_v30  ;;  %v1461_v3 = vand.u32 2147483648, %v3410_v30  ;;  %v3513_v12 = vpop.permute.xlu2 %1722 }
 0x237   : > { %v3482_v54 = vadd.f32 %v1476_v40, %v1048_v17  ;;  %v1443_v46 = vsel %vm1442_vm3, %v2339_v22, %v1439_v14  ;;  %v1453_v52 = vmul.f32 %v2341_v60, %v1452_v7  ;;  %vm1456_vm5 = vweird.f32 %v2341_v60 }
 0x238   : > { %v1472_v38 = vsub.f32 %v3486_v56, %v2378_v44  ;;  %v1051_v26 = vadd.f32 %v1043_v58, %v3767_v35  ;;  %v1448_v42 = vsel %vm1445_vm4, %v1447_v63, %v1443_v46  ;;  %v3770_v49 = vsub.f32 %v3768_v8, %v3769_v5  ;;  %v2380_v5 = vld [vmem:[%s2613_s12] sm:$0xff] }
 0x239   : > { %v3772_v59 = vsub.f32 %v3771_v24, %v3764_v4  ;;  %v1454_v39 = vadd.f32 %v2341_v60, %v1453_v52  ;;  %vm1455_vm1 = vweird.f32 %v3410_v30  ;;  %v1462_v45 = vor.u32 1.1754944e-38, %v1461_v3  ;;  %v3507_v30 = vpop.permute.xlu0 %1734 }
 0x23a   : > { %v1044_v61 = vmul.f32 %v3770_v49, %v1027_v23  ;;  %vm1457_vm6 = vmor %vm1455_vm1, %vm1456_vm5  ;;  %vm1460_vm7 = vcmp.eq.f32.partialorder %v1459_v43, 8.507059e+37  ;;  %v2381_v49 = vld [vmem:[%s2622_s13] sm:$0xff] }
 0x23b   : > { %v1479_v51 = vmul.f32 %v3772_v59, %v1448_v42  ;;  %v1458_v31 = vsel %vm1457_vm6, %v2341_v60, %v1454_v39 }
 0x23c   : > { %v1463_v19 = vsel %vm1460_vm7, %v1462_v45, %v1458_v31  ;;  %v1052_v2 = vadd.f32 %v1044_v61, %v3773_v47  ;;  %v3517_v50 = vpop.permute.xlu1 %1738  ;;  %v1901_v61 = vsub.f32 %v2380_v5, %v2381_v49 }
 0x23d   : > { %v3497_v22 = vadd.f32 %v1479_v51, %v1051_v26  ;;  %v1480_v53 = vmul.f32 %v1472_v38, %v1463_v19 }
 0x23f   : > { %v3500_v28 = vadd.f32 %v1480_v53, %v1052_v2 }
 0x285   : > { %v1626_v62 = vpop.f32.mrf.mxu0 }
 0x286   : > { %v1709_v6 = vmul.f32 %v3774_v41, %v1626_v62  ;;  %v2382_v62 = vld [vmem:[%s2613_s12 + $0x20] sm:$0xff] }
 0x287   : > { %v1649_v18 = vpop.f32.mrf.mxu1 }
 0x288   : > { %v1725_v1 = vadd.f32 %v3504_v25, %v1709_v6  ;;  %v1710_v34 = vmul.f32 %v3774_v41, %v1649_v18  ;;  %v2383_v6 = vld [vmem:[%s2622_s13 + $0x20] sm:$0xff] }
 0x28a   : > { %v1741_v10 = vadd.f32 %v3507_v30, %v1725_v1  ;;  %v1726_v60 = vadd.f32 %v3504_v25, %v1710_v34  ;;  %v1905_v1 = vsub.f32 %v2382_v62, %v2383_v6  ;;  %v2387_v62 = vld [vmem:[%s2622_s13 + $0x28] sm:$0xff] }
 0x28c   : > { %v2191_v37 = vmul.f32 -1.442695, %v1741_v10  ;;  %v1742_v13 = vadd.f32 %v3507_v30, %v1726_v60  ;;  %v2384_v10 = vld [vmem:[%s2613_s12 + $0x8] sm:$0xff] }
 0x28d   : > { %v1629_v33 = vpop.f32.mrf.mxu0  ;;  %v2385_v60 = vld [vmem:[%s2622_s13 + $0x8] sm:$0xff] }
 0x28e   : > { %2342 = vpow2.f32 %v2191_v37  ;;  %v1713_v0 = vmul.f32 %v3502_v32, %v1629_v33  ;;  %v2192_v11 = vmul.f32 -1.442695, %v1742_v13  ;;  %v1902_v37 = vsub.f32 %v2384_v10, %v2385_v60 }
 0x28f   : > { %v1652_v17 = vpop.f32.mrf.mxu1 }
 0x290   : > { %v1729_v15 = vadd.f32 %v3513_v12, %v1713_v0  ;;  %2344 = vpow2.f32 %v2192_v11  ;;  %v1714_v4 = vmul.f32 %v3502_v32, %v1652_v17 }
 0x292   : > { %v1745_v21 = vadd.f32 %v3517_v50, %v1729_v15  ;;  %v1730_v58 = vadd.f32 %v3513_v12, %v1714_v4 }
 0x294   : > { %v2343_v9 = vpop.eup %2342  ;;  %v2195_v23 = vmul.f32 -1.442695, %v1745_v21  ;;  %v1746_v40 = vadd.f32 %v3517_v50, %v1730_v58 }
 0x295   : > { %v1773_v36 = vadd.f32 1.0, %v2343_v9 }
 0x296   : > { %2346 = vpow2.f32 %v2195_v23  ;;  %v2345_v14 = vpop.eup %2344  ;;  %v2196_v7 = vmul.f32 -1.442695, %v1746_v40 }
 0x297   : > { %2348 = vrcp.f32 %v1773_v36  ;;  %v1774_v63 = vadd.f32 1.0, %v2345_v14  ;;  %v1790_v44 = vand.u32 2147483647, %v1773_v36  ;;  %v1792_v38 = vand.u32 2147483648, %v1773_v36 }
 0x298   : > { %2350 = vpow2.f32 %v2196_v7  ;;  %vm1786_vm8 = vweird.f32 %v1773_v36 }
 0x299   : > { %2352 = vrcp.f32 %v1774_v63  ;;  %vm3528_vm10 = vcmp.eq.f32.partialorder %v1790_v44, 8.507059e+37  ;;  %v1793_v45 = vor.u32 1.1754944e-38, %v1792_v38  ;;  %v1805_v31 = vand.u32 2147483647, %v1774_v63  ;;  %v2389_v38 = vld [vmem:[%s2622_s13 + $0x10] sm:$0xff] }
 0x29a   : > { %v1807_v19 = vand.u32 2147483648, %v1774_v63  ;;  %vm1801_vm13 = vweird.f32 %v1774_v63 }
 0x29b   : > { %vm3550_vm15 = vcmp.eq.f32.partialorder %v1805_v31, 8.507059e+37 }
 0x29c   : > { %v2347_v43 = vpop.eup %2346  ;;  %v1808_v4 = vor.u32 1.1754944e-38, %v1807_v19 }
 0x29d   : > { %v2349_v3 = vpop.eup %2348  ;;  %v1777_v46 = vadd.f32 1.0, %v2347_v43 }
 0x29e   : > { %v1782_v52 = vmul.f32 %v2349_v3, %v1773_v36  ;;  %v2351_v35 = vpop.eup %2350  ;;  %vm1787_vm9 = vweird.f32 %v2349_v3 }
 0x29f   : > { %2354 = vrcp.f32 %v1777_v46  ;;  %v2353_v42 = vpop.eup %2352  ;;  %v3524_v8 = vadd.f32 1.0, %v2351_v35  ;;  %vm3532_vm12 = vmor %vm1786_vm8, %vm1787_vm9  ;;  %v1850_v18 = vand.u32 2147483647, %v1777_v46  ;;  %v1852_v34 = vand.u32 2147483648, %v1777_v46 }
 0x2a0   : > { %v1783_v26 = vsub.f32 1.0, %v1782_v52  ;;  %v1797_v51 = vmul.f32 %v2353_v42, %v1774_v63  ;;  %vm1802_vm11 = vweird.f32 %v2353_v42  ;;  %vm1846_vm0 = vweird.f32 %v1777_v46 }
 0x2a1   : > { %2356 = vrcp.f32 %v3524_v8  ;;  %vm3546_vm14 = vmor %vm1801_vm13, %vm1802_vm11  ;;  %vm3554_vm3 = vcmp.eq.f32.partialorder %v1850_v18, 8.507059e+37  ;;  %v1853_v14 = vor.u32 1.1754944e-38, %v1852_v34  ;;  %vm1861_vm4 = vweird.f32 %v3524_v8 }
 0x2a2   : > { %v1784_v24 = vmul.f32 %v2349_v3, %v1783_v26  ;;  %v1798_v2 = vsub.f32 1.0, %v1797_v51  ;;  %v1865_v35 = vand.u32 2147483647, %v3524_v8  ;;  %v1867_v26 = vand.u32 2147483648, %v3524_v8 }
 0x2a4   : > { %v1785_v47 = vadd.f32 %v2349_v3, %v1784_v24  ;;  %v1799_v13 = vmul.f32 %v2353_v42, %v1798_v2  ;;  %v1868_v19 = vor.u32 1.1754944e-38, %v1867_v26  ;;  %vm1866_vm7 = vcmp.eq.f32.partialorder %v1865_v35, 8.507059e+37 }
 0x2a5   : > { %v2355_v53 = vpop.eup %2354 }
 0x2a6   : > { %v1789_v33 = vsel %vm3532_vm12, %v2349_v3, %v1785_v47  ;;  %v1842_v0 = vmul.f32 %v2355_v53, %v1777_v46  ;;  %v1800_v21 = vadd.f32 %v2353_v42, %v1799_v13  ;;  %vm1847_vm2 = vweird.f32 %v2355_v53 }
 0x2a7   : > { %v1794_v11 = vsel %vm3528_vm10, %v1793_v45, %v1789_v33  ;;  %v2357_v36 = vpop.eup %2356  ;;  %vm3567_vm5 = vmor %vm1846_vm0, %vm1847_vm2 }
 0x2a8   : > { %v1909_v9 = vmul.f32 %v1901_v61, %v1794_v11  ;;  %v1843_v58 = vsub.f32 1.0, %v1842_v0  ;;  %v1672_v23 = vpop.f32.mrf.mxu2  ;;  %v1804_v63 = vsel %vm3546_vm14, %v2353_v42, %v1800_v21  ;;  %v1857_v52 = vmul.f32 %v2357_v36, %v3524_v8 }
 0x2a9   : > { %v1711_v7 = vmul.f32 %v3774_v41, %v1672_v23  ;;  %v1809_v44 = vsel %vm3550_vm15, %v1808_v4, %v1804_v63  ;;  %vm1862_vm1 = vweird.f32 %v2357_v36 }
 0x2aa   : > { %v1917_v43 = vadd.f32 %v1909_v9, %v3284_v20  ;;  %v1844_v3 = vmul.f32 %v2355_v53, %v1843_v58  ;;  %v1910_v42 = vmul.f32 %v1902_v37, %v1809_v44  ;;  %v1858_v49 = vsub.f32 1.0, %v1857_v52  ;;  %vm3587_vm6 = vmor %vm1861_vm4, %vm1862_vm1  ;;  %v2388_v44 = vld [vmem:[%s2613_s12 + $0x10] sm:$0xff] }
 0x2ab   : > { %v1727_v5 = vadd.f32 %v3504_v25, %v1711_v7  ;;  %v1903_v35 = vsub.f32 %v2388_v44, %v2389_v38 }
 0x2ac   : > { %1925 = vst [vmem:[%s3575_s11] sm:$0xff] %v1917_v43  ;;  %v1845_v20 = vadd.f32 %v2355_v53, %v1844_v3  ;;  %v1918_v59 = vadd.f32 %v1910_v42, %v3296_v55  ;;  %v1859_v39 = vmul.f32 %v2357_v36, %v1858_v49 }
 0x2ad   : > { %v1695_v46 = vpop.f32.mrf.mxu3  ;;  %v1743_v61 = vadd.f32 %v3507_v30, %v1727_v5 }
 0x2ae   : > { %v1712_v24 = vmul.f32 %v3774_v41, %v1695_v46  ;;  %v1849_v51 = vsel %vm3567_vm5, %v2355_v53, %v1845_v20  ;;  %v2386_v41 = vld [vmem:[%s2613_s12 + $0x28] sm:$0xff]  ;;  %1926 = vst [vmem:[%s3575_s11 + $0x8] sm:$0xff] %v1918_v59  ;;  %v1860_v53 = vadd.f32 %v2357_v36, %v1859_v39 }
 0x2af   : > { %v1854_v45 = vsel %vm3554_vm3, %v1853_v14, %v1849_v51  ;;  %v2193_v47 = vmul.f32 -1.442695, %v1743_v61  ;;  %v1906_v55 = vsub.f32 %v2386_v41, %v2387_v62  ;;  %v1904_v51 = vsub.f32 %v3375_v48, %v3385_v27  ;;  %v2390_v27 = vld [vmem:[%s2613_s12 + $0x30] sm:$0xff] }
 0x2b0   : > { %v1728_v2 = vadd.f32 %v3504_v25, %v1712_v24  ;;  %v1913_v6 = vmul.f32 %v1905_v1, %v1854_v45  ;;  %v1675_v18 = vpop.f32.mrf.mxu2  ;;  %v1864_v10 = vsel %vm3587_vm6, %v2357_v36, %v1860_v53 }
 0x2b1   : > { %2358 = vpow2.f32 %v2193_v47  ;;  %v1715_v34 = vmul.f32 %v3502_v32, %v1675_v18  ;;  %v1869_v60 = vsel %vm1866_vm7, %v1868_v19, %v1864_v10  ;;  %v2391_v18 = vld [vmem:[%s2622_s13 + $0x30] sm:$0xff] }
 0x2b2   : > { %v1744_v8 = vadd.f32 %v3507_v30, %v1728_v2  ;;  %v1921_v25 = vadd.f32 %v1913_v6, %v3334_v29  ;;  %v1914_v13 = vmul.f32 %v1906_v55, %v1869_v60 }
 0x2b3   : > { %v1731_v33 = vadd.f32 %v3513_v12, %v1715_v34 }
 0x2b4   : > { %v2194_v37 = vmul.f32 -1.442695, %v1744_v8  ;;  %1929 = vst [vmem:[%s3575_s11 + $0x20] sm:$0xff] %v1921_v25  ;;  %v1922_v11 = vadd.f32 %v1914_v13, %v3361_v16  ;;  %v1907_v8 = vsub.f32 %v2390_v27, %v2391_v18 }
 0x2b5   : > { %v1698_v0 = vpop.f32.mrf.mxu3  ;;  %v1747_v1 = vadd.f32 %v3517_v50, %v1731_v33 }
 0x2b6   : > { %2360 = vpow2.f32 %v2194_v37  ;;  %v1716_v30 = vmul.f32 %v3502_v32, %v1698_v0  ;;  %1930 = vst [vmem:[%s3575_s11 + $0x28] sm:$0xff] %v1922_v11  ;;  %v2392_v11 = vld [vmem:[%s2613_s12 + $0x38] sm:$0xff]  ;;  %s2201_s12 = sshll.u32 (%p2559_p6), %s2435_s16, 4 }
 0x2b7   : > { %v2359_v15 = vpop.eup %2358  ;;  %v2197_v17 = vmul.f32 -1.442695, %v1747_v1  ;;  %s1942_s13 = sadd.s32 (%p2559_p6), %s2201_s12, %s2200_s30 }
 0x2b8   : > { %v1732_v4 = vadd.f32 %v3513_v12, %v1716_v30  ;;  %v1775_v29 = vadd.f32 1.0, %v2359_v15  ;;  %v1908_v15 = vsub.f32 %v2392_v11, %v3486_v56  ;;  %v1957_v56 = vld [vmem:[%s3575_s11] sm:$0xff] (%p2559_p6)  ;;  %s2202_s21 = sshll.u32 (%p2559_p6), %s1942_s13, 3 }
 0x2b9   : > { %2362 = vpow2.f32 %v2197_v17  ;;  %s1944_s25 = scalar_lea.vmem (%p2559_p6), %s3678_s10, %s2202_s21 }
 0x2ba   : > { %v1748_v21 = vadd.f32 %v3517_v50, %v1732_v4  ;;  %2364 = vrcp.f32 %v1775_v29  ;;  %v1820_v63 = vand.u32 2147483647, %v1775_v29  ;;  %v1822_v43 = vand.u32 2147483648, %v1775_v29  ;;  %1958 = vst [vmem:[%s1944_s25] sm:$0xff] (%p2559_p6), %v1957_v56 }
 0x2bb   : > { %vm1816_vm9 = vweird.f32 %v1775_v29 }
 0x2bc   : > { %v2361_v9 = vpop.eup %2360  ;;  %v2198_v58 = vmul.f32 -1.442695, %v1748_v21  ;;  %vm1821_vm12 = vcmp.eq.f32.partialorder %v1820_v63, 8.507059e+37  ;;  %v1823_v49 = vor.u32 1.1754944e-38, %v1822_v43 }
 0x2bd   : > { %v1776_v23 = vadd.f32 1.0, %v2361_v9 }
 0x2be   : > { %2366 = vpow2.f32 %v2198_v58 }
 0x2bf   : > { %2368 = vrcp.f32 %v1776_v23  ;;  %v2363_v32 = vpop.eup %2362  ;;  %v1835_v42 = vand.u32 2147483647, %v1776_v23  ;;  %v1837_v46 = vand.u32 2147483648, %v1776_v23  ;;  %vm1831_vm11 = vweird.f32 %v1776_v23 }
 0x2c0   : > { %v2365_v36 = vpop.eup %2364  ;;  %v1779_v16 = vadd.f32 1.0, %v2363_v32 }
 0x2c1   : > { %v1812_v40 = vmul.f32 %v2365_v36, %v1775_v29  ;;  %vm1817_vm8 = vweird.f32 %v2365_v36  ;;  %vm1836_vm14 = vcmp.eq.f32.partialorder %v1835_v42, 8.507059e+37  ;;  %v1838_v2 = vor.u32 1.1754944e-38, %v1837_v46 }
 0x2c2   : > { %2370 = vrcp.f32 %v1779_v16  ;;  %vm1818_vm10 = vmor %vm1816_vm9, %vm1817_vm8  ;;  %v1880_v41 = vand.u32 2147483647, %v1779_v16  ;;  %v1882_v62 = vand.u32 2147483648, %v1779_v16  ;;  %vm1876_vm2 = vweird.f32 %v1779_v16 }
 0x2c3   : > { %v1813_v12 = vsub.f32 1.0, %v1812_v40 }
 0x2c4   : > { %v2367_v14 = vpop.eup %2366  ;;  %vm1881_vm4 = vcmp.eq.f32.partialorder %v1880_v41, 8.507059e+37  ;;  %v1883_v37 = vor.u32 1.1754944e-38, %v1882_v62 }
 0x2c5   : > { %v2369_v7 = vpop.eup %2368  ;;  %v3608_v3 = vadd.f32 1.0, %v2367_v14  ;;  %v1814_v50 = vmul.f32 %v2365_v36, %v1813_v12 }
 0x2c6   : > { %v1827_v52 = vmul.f32 %v2369_v7, %v1776_v23  ;;  %vm1832_vm13 = vweird.f32 %v2369_v7 }
 0x2c7   : > { %2372 = vrcp.f32 %v3608_v3  ;;  %v1815_v26 = vadd.f32 %v2365_v36, %v1814_v50  ;;  %vm1833_vm15 = vmor %vm1831_vm11, %vm1832_vm13  ;;  %v1897_v33 = vand.u32 2147483648, %v3608_v3  ;;  %vm1891_vm1 = vweird.f32 %v3608_v3 }
 0x2c8   : > { %v1828_v5 = vsub.f32 1.0, %v1827_v52  ;;  %v2371_v20 = vpop.eup %2370 }
 0x2c9   : > { %v1819_v61 = vsel %vm1818_vm10, %v2365_v36, %v1815_v26  ;;  %v1872_v59 = vmul.f32 %v2371_v20, %v1779_v16  ;;  %vm1877_vm0 = vweird.f32 %v2371_v20  ;;  %v1898_v29 = vor.u32 1.1754944e-38, %v1897_v33  ;;  %v1965_v36 = vld [vmem:[%s3575_s11 + $0x20] sm:$0xff] (%p2559_p6)  ;;  %v1967_v16 = vld [vmem:[%s3575_s11 + $0x28] sm:$0xff] (%p2559_p6) }
 0x2ca   : > { %v1829_v24 = vmul.f32 %v2369_v7, %v1828_v5  ;;  %v1824_v39 = vsel %vm1821_vm12, %v1823_v49, %v1819_v61  ;;  %vm1878_vm3 = vmor %vm1876_vm2, %vm1877_vm0  ;;  %1966 = vst [vmem:[%s1944_s25 + $0x40] sm:$0xff] (%p2559_p6), %v1965_v36 }
 0x2cb   : > { %v1911_v45 = vmul.f32 %v1903_v35, %v1824_v39  ;;  %v1873_v19 = vsub.f32 1.0, %v1872_v59  ;;  %1968 = vst [vmem:[%s1944_s25 + $0x48] sm:$0xff] (%p2559_p6), %v1967_v16 }
 0x2cc   : > { %v1830_v31 = vadd.f32 %v2369_v7, %v1829_v24 }
 0x2cd   : > { %v2373_v47 = vpop.eup %2372  ;;  %v1919_v55 = vadd.f32 %v1911_v45, %v3464_v57  ;;  %v1874_v6 = vmul.f32 %v2371_v20, %v1873_v19  ;;  %v1895_v57 = vand.u32 2147483647, %v3608_v3 }
 0x2ce   : > { %v1834_v53 = vsel %vm1833_vm15, %v2369_v7, %v1830_v31  ;;  %v1887_v48 = vmul.f32 %v2373_v47, %v3608_v3  ;;  %vm1892_vm5 = vweird.f32 %v2373_v47 }
 0x2cf   : > { %v1839_v34 = vsel %vm1836_vm14, %v1838_v2, %v1834_v53  ;;  %1927 = vst [vmem:[%s3575_s11 + $0x10] sm:$0xff] %v1919_v55  ;;  %v1875_v25 = vadd.f32 %v2371_v20, %v1874_v6  ;;  %vm1893_vm6 = vmor %vm1891_vm1, %vm1892_vm5  ;;  %vm1896_vm7 = vcmp.eq.f32.partialorder %v1895_v57, 8.507059e+37 }
 0x2d0   : > { %v1912_v10 = vmul.f32 %v1904_v51, %v1839_v34  ;;  %v1888_v60 = vsub.f32 1.0, %v1887_v48 }
 0x2d1   : > { %v1879_v0 = vsel %vm1878_vm3, %v2371_v20, %v1875_v25 }
 0x2d2   : > { %v1920_v13 = vadd.f32 %v1912_v10, %v3482_v54  ;;  %v1889_v1 = vmul.f32 %v2373_v47, %v1888_v60  ;;  %v1884_v30 = vsel %vm1881_vm4, %v1883_v37, %v1879_v0 }
 0x2d3   : > { %v1915_v17 = vmul.f32 %v1907_v8, %v1884_v30 }
 0x2d4   : > { %1928 = vst [vmem:[%s3575_s11 + $0x18] sm:$0xff] %v1920_v13  ;;  %v1890_v4 = vadd.f32 %v2373_v47, %v1889_v1 }
 0x2d5   : > { %v1923_v21 = vadd.f32 %v1915_v17, %v3497_v22  ;;  %v1959_v22 = vld [vmem:[%s3575_s11 + $0x8] sm:$0xff] (%p2559_p6) }
 0x2d6   : > { %v1894_v9 = vsel %vm1893_vm6, %v2373_v47, %v1890_v4  ;;  %1960 = vst [vmem:[%s1944_s25 + $0x8] sm:$0xff] (%p2559_p6), %v1959_v22 }
 0x2d7   : > { %v1899_v54 = vsel %vm1896_vm7, %v1898_v29, %v1894_v9  ;;  %1931 = vst [vmem:[%s3575_s11 + $0x30] sm:$0xff] %v1923_v21 }
 0x2d8   : > { %v1916_v58 = vmul.f32 %v1908_v15, %v1899_v54  ;;  %1939 = sbr.rel (!%p2559_p6) target bundleno = 741 (0x2e5), region = 133 }
 0x2da   : > { %v1924_v23 = vadd.f32 %v1916_v58, %v3500_v28  ;;  %v1961_v28 = vld [vmem:[%s3575_s11 + $0x10] sm:$0xff] (%p2559_p6) }
 0x2db   : > { %v1963_v32 = vld [vmem:[%s3575_s11 + $0x18] sm:$0xff] (%p2559_p6)  ;;  %1962 = vst [vmem:[%s1944_s25 + $0x10] sm:$0xff] (%p2559_p6), %v1961_v28 }
 0x2dc   : > { %1932 = vst [vmem:[%s3575_s11 + $0x38] sm:$0xff] %v1924_v23 }
 0x2dd   : > { %1964 = vst [vmem:[%s1944_s25 + $0x18] sm:$0xff] %v1963_v32 }
 0x2de   : > { %v1969_v40 = vld [vmem:[%s3575_s11 + $0x30] sm:$0xff] }
 0x2df   : > { %1970 = vst [vmem:[%s1944_s25 + $0x50] sm:$0xff] %v1969_v40 }
 0x2e3   : > { %v1971_v14 = vld [vmem:[%s3575_s11 + $0x38] sm:$0xff] }
 0x2e4   : > { %1972 = vst [vmem:[%s1944_s25 + $0x58] sm:$0xff] %v1971_v14 }
 0x2e5 PF: > { %s20_s19 = sadd.s32 1, %s2447_s19   ;;  %s3789_s26 = sld [smem:[#allocation6_spill]] }
 0x2e6   : > { %p17_p13 = scmp.ge.s32.totalorder %s20_s19, 6   ;;  %s3790_s27 = sld [smem:[#allocation7_spill]] }
 0x2e7   : > { %s3791_s13 = smov %s2427_s14  ;;  %s3792_s14 = smov %s2567_s29 }
 0x2e8   : > { %s3793_s15 = smov %s2439_s17  ;;  %s3794_s16 = smov %s2443_s18 }
 0x2e9   :  { %19 = sbr.rel (!%p17_p13) target bundleno = 4 (0x4), region = 206 }
 0x2eb   : > { %s3795_s17 = smov %s3789_s26 }
 0x2ec   : > { %s3796_s18 = smov %s3790_s27 }

</bundles_post_ra>
